<compile_context>
chip_gen: v6e
topology: v6e:2x2x1
jax: 0.10.0
libtpu: 0.0.40
codegen_flags: <defaults>
</compile_context>

<pallas_src>
import functools
import numpy as np
import jax
import jax.numpy as jnp
from jax.experimental import pallas as pl
from jax.experimental.pallas import tpu as pltpu

LANE = 128


def conv2D_output_size(img_size, padding, kernel_size, stride):
    return (
        int(np.floor((img_size[0] + 2 * padding[0] - (kernel_size[0] - 1) - 1) / stride[0] + 1)),
        int(np.floor((img_size[1] + 2 * padding[1] - (kernel_size[1] - 1) - 1) / stride[1] + 1)),
    )


def _round_up(v, m):
    return ((v + m - 1) // m) * m


# ---------------------------------------------------------------------------
# Pallas kernel: fused chain of  h = [relu](h @ W_i + b_i)  on the MXU.
# Operands are bf16; accumulation, bias-add and ReLU are f32; cast at the store.
# ---------------------------------------------------------------------------
def _fused_chain_kernel(*refs, relu_flags):
    x_ref, o_ref = refs[0], refs[-1]
    wb = refs[1:-1]
    h = x_ref[...]
    n_layers = len(relu_flags)
    for i, relu in enumerate(relu_flags):
        acc = jnp.dot(h, wb[2 * i][...], preferred_element_type=jnp.float32)
        acc = acc + wb[2 * i + 1][...]
        if relu:
            acc = jnp.maximum(acc, 0.0)
        h = acc.astype(jnp.bfloat16) if i + 1 < n_layers else acc
    o_ref[...] = h.astype(o_ref.dtype)


def fused_chain(x, layers, *, out_dtype, tm_cap=2048):
    """x: (M, K0) bf16. layers: list of (w:(K,N) bf16, b:(1,N) f32, relu:bool)
    with every K and N a multiple of 128 (lane-dense, unmasked stores)."""
    M, K0 = x.shape
    relu_flags = tuple(bool(r) for (_, _, r) in layers)
    N_out = layers[-1][0].shape[1]

    # Row tile: 2 grid steps whenever possible (keeps both v7x TensorCores busy,
    # costs only ~0.35 us/step on single-TC v5e/v6e); big tiles, capped.
    if M >= 16:
        TM = min(tm_cap, _round_up((M + 1) // 2, 8))
    else:
        TM = _round_up(M, 8)
    Mp = _round_up(M, TM)
    if Mp != M:
        x = jnp.pad(x, ((0, Mp - M), (0, 0)))   # zero rows -> relu(bias); sliced off below

    args = [x]
    in_specs = [pl.BlockSpec((TM, K0), lambda i: (i, 0))]
    flops = 0
    bytes_acc = Mp * K0 * x.dtype.itemsize + Mp * N_out * np.dtype(out_dtype).itemsize
    for (w, b, _) in layers:
        K, N = w.shape
        args += [w, b]
        in_specs += [pl.BlockSpec((K, N), lambda i: (0, 0)),
                     pl.BlockSpec((1, N), lambda i: (0, 0))]
        flops += 2 * Mp * K * N
        bytes_acc += K * N * w.dtype.itemsize + N * 4

    out = pl.pallas_call(
        functools.partial(_fused_chain_kernel, relu_flags=relu_flags),
        out_shape=jax.ShapeDtypeStruct((Mp, N_out), out_dtype),
        grid_spec=pltpu.PrefetchScalarGridSpec(
            num_scalar_prefetch=0,
            grid=(Mp // TM,),
            in_specs=in_specs,
            out_specs=pl.BlockSpec((TM, N_out), lambda i: (i, 0)),
        ),
        compiler_params=pltpu.CompilerParams(dimension_semantics=("parallel",)),
        cost_estimate=pl.CostEstimate(flops=flops, transcendentals=0,
                                      bytes_accessed=bytes_acc),
    )(*args)
    return out if Mp == M else out[:M]


# ---------------------------------------------------------------------------
# Conv2d (valid padding, strided) via channel-last im2col + fused Pallas GEMM.
# The channel slice to the true Cout of the previous layer is fused into the
# slab slices (no standalone slice / pad op between layers).
# ---------------------------------------------------------------------------
def im2col_nhwc(x, ksize, stride, c_take):
    """x: (N,H,W,Cp) channel-last (possibly lane-padded).  Returns
    (N*Ho*Wo, round_up(kh*kw*c_take,128)) bf16 with K order (ky,kx,ci)."""
    N, H, W, _ = x.shape
    kh, kw = ksize
    sh, sw = stride
    Ho = (H - kh) // sh + 1
    Wo = (W - kw) // sw + 1
    slabs = [x[:, dy:dy + sh * Ho:sh, dx:dx + sw * Wo:sw, :c_take]
             for dy in range(kh) for dx in range(kw)]
    K = kh * kw * c_take
    Kp = _round_up(K, LANE)
    if Kp != K:
        slabs.append(jnp.zeros((N, Ho, Wo, Kp - K), x.dtype))
    cols = jnp.concatenate(slabs, axis=-1)
    return cols.reshape(N * Ho * Wo, Kp), (Ho, Wo)


def _fold_bn(w, b, gamma, beta, mean, var, eps=1e-5):
    """Fold eval-mode BatchNorm into the conv weights.
    Returns ((kh,kw,Cin,Cout) f32 weights, (Cout,) f32 bias)."""
    scale = gamma / jnp.sqrt(var + eps)
    w4d = jnp.transpose(w, (2, 3, 1, 0)) * scale            # broadcast over Cout
    b_fold = (b - mean) * scale + beta
    return w4d, b_fold


def _pack_conv_gemm(w, b, g, bt, m, v):
    w4d, b_fold = _fold_bn(w, b, g, bt, m, v)
    kh, kw, Cin, Cout = w4d.shape
    K = kh * kw * Cin
    Kp, Cp = _round_up(K, LANE), _round_up(Cout, LANE)
    w2d = jnp.pad(w4d.reshape(K, Cout), ((0, Kp - K), (0, Cp - Cout))).astype(jnp.bfloat16)
    bias = jnp.pad(b_fold, (0, Cp - Cout)).reshape(1, Cp).astype(jnp.float32)
    return w2d, bias, Cout, Cp


def conv_bn_relu(x_nhwc, c_in, params, idx, *, stride):
    """One Conv2d+BN+ReLU layer: XLA im2col (bf16, channel slice fused into the
    slabs) feeding a lane-dense Pallas GEMM.  Output stays channel-last and
    lane-padded; the padded channels are exactly zero (zero weight cols/bias)."""
    w = params[f"conv{idx}_w"]
    kh, kw = w.shape[2], w.shape[3]
    cols, (Ho, Wo) = im2col_nhwc(x_nhwc, (kh, kw), stride, c_take=c_in)
    w2d, bias, Cout, Cp = _pack_conv_gemm(
        w, params[f"conv{idx}_b"], params[f"bn{idx}_g"], params[f"bn{idx}_b"],
        params[f"bn{idx}_m"], params[f"bn{idx}_v"])
    y = fused_chain(cols, [(w2d, bias, True)], out_dtype=jnp.bfloat16)
    N = x_nhwc.shape[0]
    return y.reshape(N, Ho, Wo, Cp), Cout


# ---------------------------------------------------------------------------
# FC head preparation: torch nn.Linear weights are (out, in); fc1 rows are
# permuted from torch's NCHW flatten order (c,h,w) to our (h,w,c_padded) order
# and zero-padded at the padded-channel rows, all at prep time (zero runtime).
# ---------------------------------------------------------------------------
def _prep_fc_layers(params, H4, W4, C4, C4p):
    fc1_w, fc1_b = params["fc1_w"], params["fc1_b"]
    fc2_w, fc2_b = params["fc2_w"], params["fc2_b"]
    fc3_w, fc3_b = params["fc3_w"], params["fc3_b"]
    h1, h2, ed = fc1_w.shape[0], fc2_w.shape[0], fc3_w.shape[0]
    N1p, N2p, N3p = (_round_up(n, LANE) for n in (h1, h2, ed))

    w1 = fc1_w.T.reshape(C4, H4, W4, h1).transpose(1, 2, 0, 3)       # (H4,W4,C4,h1)
    w1 = jnp.pad(w1, ((0, 0), (0, 0), (0, C4p - C4), (0, N1p - h1)))
    w1 = w1.reshape(H4 * W4 * C4p, N1p).astype(jnp.bfloat16)
    b1 = jnp.pad(fc1_b, (0, N1p - h1)).reshape(1, N1p).astype(jnp.float32)

    w2 = jnp.pad(fc2_w.T, ((0, N1p - h1), (0, N2p - h2))).astype(jnp.bfloat16)
    b2 = jnp.pad(fc2_b, (0, N2p - h2)).reshape(1, N2p).astype(jnp.float32)

    w3 = jnp.pad(fc3_w.T, ((0, N2p - h2), (0, N3p - ed))).astype(jnp.bfloat16)
    b3 = jnp.pad(fc3_b, (0, N3p - ed)).reshape(1, N3p).astype(jnp.float32)
    return [(w1, b1, True), (w2, b2, True), (w3, b3, False)], ed


# ---------------------------------------------------------------------------
# Fused head: conv4 (1x1 spatial output) + flatten + fc1 + fc2 + fc3 in ONE
# pallas_call.  The conv4 im2col is done in-kernel as kh*kw accumulated MXU
# dots over static leading-dim taps — cols4 never exists in HBM.
# ---------------------------------------------------------------------------
def _head_kernel(x3_ref, w4_ref, b4_ref, w1_ref, b1_ref, w2_ref, b2_ref,
                 w3_ref, b3_ref, o_ref, *, tap_idx):
    bt = x3_ref.shape[1]
    acc = jnp.zeros((bt, w4_ref.shape[2]), jnp.float32)
    for t, s in enumerate(tap_idx):
        acc = acc + jnp.dot(x3_ref[s], w4_ref[t], preferred_element_type=jnp.float32)
    h = jnp.maximum(acc + b4_ref[...], 0.0).astype(jnp.bfloat16)
    h = jnp.maximum(jnp.dot(h, w1_ref[...], preferred_element_type=jnp.float32)
                    + b1_ref[...], 0.0).astype(jnp.bfloat16)
    h = jnp.maximum(jnp.dot(h, w2_ref[...], preferred_element_type=jnp.float32)
                    + b2_ref[...], 0.0).astype(jnp.bfloat16)
    # TODO(synk): F.dropout between fc2 and fc3 is identity in eval mode; torch RNG not reproduced.
    out = jnp.dot(h, w3_ref[...], preferred_element_type=jnp.float32) + b3_ref[...]
    o_ref[...] = out.astype(o_ref.dtype)


def fused_conv4_fc_head(x3_nhwc, c3, params):
    BT, H3, W3, C3p = x3_nhwc.shape
    w4 = params["conv4_w"]
    kh4, kw4 = w4.shape[2], w4.shape[3]
    w4d, b4 = _fold_bn(w4, params["conv4_b"], params["bn4_g"], params["bn4_b"],
                       params["bn4_m"], params["bn4_v"])
    Cin4, C4 = w4d.shape[2], w4d.shape[3]
    C4p = _round_up(C4, LANE)
    # Pad Cin rows up to the lane-padded conv3 channel count (those inputs are 0).
    w4p = jnp.pad(w4d, ((0, 0), (0, 0), (0, C3p - Cin4), (0, C4p - C4)))
    w4p = w4p.reshape(kh4 * kw4, C3p, C4p).astype(jnp.bfloat16)
    b4p = jnp.pad(b4, (0, C4p - C4)).reshape(1, C4p).astype(jnp.float32)

    fc_layers, ed = _prep_fc_layers(params, 1, 1, C4, C4p)
    (w1, b1, _), (w2, b2, _), (w3, b3, _) = fc_layers
    EDp = w3.shape[1]

    # (BT,H3,W3,C3p) -> (H3*W3, BT, C3p): conv4 taps become cheap static
    # leading-dim reads inside the kernel.
    x3t = jnp.transpose(x3_nhwc.reshape(BT, H3 * W3, C3p), (1, 0, 2))
    tap_idx = tuple(dy * W3 + dx for dy in range(kh4) for dx in range(kw4))

    full2d = lambda a: pl.BlockSpec(a.shape, lambda i: (0, 0))
    out = pl.pallas_call(
        functools.partial(_head_kernel, tap_idx=tap_idx),
        out_shape=jax.ShapeDtypeStruct((BT, EDp), jnp.float32),
        grid_spec=pltpu.PrefetchScalarGridSpec(
            num_scalar_prefetch=0,
            grid=(1,),
            in_specs=[
                pl.BlockSpec((H3 * W3, BT, C3p), lambda i: (0, 0, 0)),
                pl.BlockSpec((kh4 * kw4, C3p, C4p), lambda i: (0, 0, 0)),
                full2d(b4p), full2d(w1), full2d(b1),
                full2d(w2), full2d(b2), full2d(w3), full2d(b3),
            ],
            out_specs=pl.BlockSpec((BT, EDp), lambda i: (0, 0)),
        ),
        compiler_params=pltpu.CompilerParams(dimension_semantics=("arbitrary",)),
    )(x3t, w4p, b4p, w1, b1, w2, b2, w3, b3)
    return out, ed


# ---------------------------------------------------------------------------
# Full forward pass (eval mode).  The torch per-t loop uses shared weights, so
# batch and time are merged into one row axis and the whole clip runs at once.
# ---------------------------------------------------------------------------
def encoder_cnn_forward(x_3d, params):
    B, T, C, H, W = x_3d.shape
    x = x_3d.reshape(B * T, C, H, W)
    x = jnp.transpose(x, (0, 2, 3, 1)).astype(jnp.bfloat16)     # NCHW -> NHWC once, bf16
    x, c = conv_bn_relu(x, C, params, 1, stride=(2, 2))
    x, c = conv_bn_relu(x, c, params, 2, stride=(2, 2))
    x, c = conv_bn_relu(x, c, params, 3, stride=(2, 2))

    kh4, kw4 = params["conv4_w"].shape[2], params["conv4_w"].shape[3]
    H3, W3 = x.shape[1], x.shape[2]
    H4, W4 = (H3 - kh4) // 2 + 1, (W3 - kw4) // 2 + 1
    if H4 == 1 and W4 == 1:
        y, ed = fused_conv4_fc_head(x, c, params)
    else:
        # General fallback: conv4 as its own GEMM; fc1..fc3 fused into one call.
        # fc1 rows are built against the lane-padded (h,w,c) layout so the
        # hand-off is a free reshape (no slice / re-pad).
        x4, c4 = conv_bn_relu(x, c, params, 4, stride=(2, 2))
        BT, H4, W4, C4p = x4.shape
        fc_layers, ed = _prep_fc_layers(params, H4, W4, c4, C4p)
        y = fused_chain(x4.reshape(BT, H4 * W4 * C4p), fc_layers,
                        out_dtype=jnp.float32)
    return y[:, :ed].reshape(B, T, ed)


if __name__ == "__main__":
    # Small shapes consistent with the module (in_channels=3, ch1..ch4 fixed by EncoderCNN).
    batch, seq_len = 2, 4
    img_x = img_y = 48
    fc_hidden1, fc_hidden2, embed_dim = 64, 32, 48
    ch = (32, 64, 128, 256)
    ks = ((5, 5), (3, 3), (3, 3), (3, 3))
    pd, st = (0, 0), (2, 2)

    o1 = conv2D_output_size((img_x, img_y), pd, ks[0], st)   # (22, 22)
    o2 = conv2D_output_size(o1, pd, ks[1], st)               # (10, 10)
    o3 = conv2D_output_size(o2, pd, ks[2], st)               # (4, 4)
    o4 = conv2D_output_size(o3, pd, ks[3], st)               # (1, 1)
    flat = ch[3] * o4[0] * o4[1]                             # 256

    key = jax.random.PRNGKey(0)
    keys = iter(jax.random.split(key, 40))

    def init(shape, scale=0.05):
        return scale * jax.random.normal(next(keys), shape, dtype=jnp.float32)

    params = {}
    cins = (3,) + ch[:3]
    for i, (cin, cout, k) in enumerate(zip(cins, ch, ks), start=1):
        params[f"conv{i}_w"] = init((cout, cin) + k)
        params[f"conv{i}_b"] = init((cout,))
        params[f"bn{i}_g"] = 1.0 + 0.1 * jax.random.normal(next(keys), (cout,), jnp.float32)
        params[f"bn{i}_b"] = 0.1 * jax.random.normal(next(keys), (cout,), jnp.float32)
        params[f"bn{i}_m"] = 0.1 * jax.random.normal(next(keys), (cout,), jnp.float32)
        params[f"bn{i}_v"] = jnp.abs(jax.random.normal(next(keys), (cout,), jnp.float32)) + 0.5
    params["fc1_w"] = init((fc_hidden1, flat))    # torch nn.Linear layout (out, in)
    params["fc1_b"] = init((fc_hidden1,))
    params["fc2_w"] = init((fc_hidden2, fc_hidden1))
    params["fc2_b"] = init((fc_hidden2,))
    params["fc3_w"] = init((embed_dim, fc_hidden2))
    params["fc3_b"] = init((embed_dim,))

    x_3d = jax.random.normal(next(keys), (batch, seq_len, 3, img_x, img_y), jnp.float32)

    out = jax.jit(encoder_cnn_forward)(x_3d, params)
    out = jax.block_until_ready(out)
    assert out.shape == (batch, seq_len, embed_dim), out.shape
    assert bool(jnp.all(jnp.isfinite(out)))
    print("KERNEL_OK")
</pallas_src>

<mosaic_0001>
module attributes {stable_mosaic.version = 11 : i64} {
  func.func @_fused_chain_kernel(%arg0: i32, %arg1: memref<1936x128xbf16, #tpu.memory_space<vmem>>, %arg2: memref<128x128xbf16, #tpu.memory_space<vmem>>, %arg3: memref<1x128xf32, #tpu.memory_space<vmem>>, %arg4: memref<1936x128xbf16, #tpu.memory_space<vmem>>) attributes {dimension_semantics = [#tpu.dimension_semantics<parallel>], iteration_bounds = array<i64: 2>, scalar_prefetch = 0 : i64, scratch_operands = 0 : i64, tpu.core_type = #tpu.core_type<tc>, window_params = [{transform_indices = @transform_0, window_bounds = array<i64: 1936, 128>}, {pipeline_mode = #tpu.pipeline_mode<synchronous>, transform_indices = @transform_1, window_bounds = array<i64: 128, 128>}, {pipeline_mode = #tpu.pipeline_mode<synchronous>, transform_indices = @transform_2, window_bounds = array<i64: 1, 128>}, {transform_indices = @transform_3, window_bounds = array<i64: 1936, 128>}]} {
    %c0 = arith.constant 0 : index
    %c0_0 = arith.constant 0 : index
    %0 = vector.load %arg1[%c0, %c0_0] : memref<1936x128xbf16, #tpu.memory_space<vmem>>, vector<1936x128xbf16>
    %c0_1 = arith.constant 0 : index
    %c0_2 = arith.constant 0 : index
    %1 = vector.load %arg2[%c0_1, %c0_2] : memref<128x128xbf16, #tpu.memory_space<vmem>>, vector<128x128xbf16>
    %cst = arith.constant dense<0.000000e+00> : vector<1936x128xf32>
    %2 = tpu.matmul %0, %1, %cst {dimension_numbers = #tpu.dot_dimension_numbers<[1], [0], [0], [1], [0, 0, 1, 1], [], []>} : vector<1936x128xbf16>, vector<128x128xbf16>, vector<1936x128xf32> -> vector<1936x128xf32>
    %c0_3 = arith.constant 0 : index
    %c0_4 = arith.constant 0 : index
    %3 = vector.load %arg3[%c0_3, %c0_4] : memref<1x128xf32, #tpu.memory_space<vmem>>, vector<1x128xf32>
    %4 = vector.broadcast %3 : vector<1x128xf32> to vector<1936x128xf32>
    %5 = arith.addf %2, %4 : vector<1936x128xf32>
    %cst_5 = arith.constant 0.000000e+00 : f32
    %6 = vector.broadcast %cst_5 : f32 to vector<1936x128xf32>
    %7 = arith.maximumf %5, %6 : vector<1936x128xf32>
    %8 = arith.truncf %7 : vector<1936x128xf32> to vector<1936x128xbf16>
    %c0_6 = arith.constant 0 : index
    %c0_7 = arith.constant 0 : index
    %9 = vector.load %arg4[%c0_6, %c0_7] : memref<1936x128xbf16, #tpu.memory_space<vmem>>, vector<1936x128xbf16>
    tpu.vector_store %arg4[%c0_6, %c0_7], %8 {strides = array<i32>} : memref<1936x128xbf16, #tpu.memory_space<vmem>>, vector<1936x128xbf16>,
    return
  }
  func.func @transform_0(%arg0: i32) -> (i32, i32) {
    %c0_i32 = arith.constant 0 : i32
    %c0_i32_0 = arith.constant 0 : i32
    return %arg0, %c0_i32 : i32, i32
  }
  func.func @transform_1(%arg0: i32) -> (i32, i32) {
    %c0_i32 = arith.constant 0 : i32
    %c0_i32_0 = arith.constant 0 : i32
    %c0_i32_1 = arith.constant 0 : i32
    return %c0_i32, %c0_i32_0 : i32, i32
  }
  func.func @transform_2(%arg0: i32) -> (i32, i32) {
    %c0_i32 = arith.constant 0 : i32
    %c0_i32_0 = arith.constant 0 : i32
    %c0_i32_1 = arith.constant 0 : i32
    return %c0_i32, %c0_i32_0 : i32, i32
  }
  func.func @transform_3(%arg0: i32) -> (i32, i32) {
    %c0_i32 = arith.constant 0 : i32
    %c0_i32_0 = arith.constant 0 : i32
    return %arg0, %c0_i32 : i32, i32
  }
}

module attributes {stable_mosaic.version = 11 : i64} {
  func.func @_fused_chain_kernel(%arg0: i32, %arg1: memref<400x384xbf16, #tpu.memory_space<vmem>>, %arg2: memref<384x128xbf16, #tpu.memory_space<vmem>>, %arg3: memref<1x128xf32, #tpu.memory_space<vmem>>, %arg4: memref<400x128xbf16, #tpu.memory_space<vmem>>) attributes {dimension_semantics = [#tpu.dimension_semantics<parallel>], iteration_bounds = array<i64: 2>, scalar_prefetch = 0 : i64, scratch_operands = 0 : i64, tpu.core_type = #tpu.core_type<tc>, window_params = [{transform_indices = @transform_0, window_bounds = array<i64: 400, 384>}, {pipeline_mode = #tpu.pipeline_mode<synchronous>, transform_indices = @transform_1, window_bounds = array<i64: 384, 128>}, {pipeline_mode = #tpu.pipeline_mode<synchronous>, transform_indices = @transform_2, window_bounds = array<i64: 1, 128>}, {transform_indices = @transform_3, window_bounds = array<i64: 400, 128>}]} {
    %c0 = arith.constant 0 : index
    %c0_0 = arith.constant 0 : index
    %0 = vector.load %arg1[%c0, %c0_0] : memref<400x384xbf16, #tpu.memory_space<vmem>>, vector<400x384xbf16>
    %c0_1 = arith.constant 0 : index
    %c0_2 = arith.constant 0 : index
    %1 = vector.load %arg2[%c0_1, %c0_2] : memref<384x128xbf16, #tpu.memory_space<vmem>>, vector<384x128xbf16>
    %cst = arith.constant dense<0.000000e+00> : vector<400x128xf32>
    %2 = tpu.matmul %0, %1, %cst {dimension_numbers = #tpu.dot_dimension_numbers<[1], [0], [0], [1], [0, 0, 1, 1], [], []>} : vector<400x384xbf16>, vector<384x128xbf16>, vector<400x128xf32> -> vector<400x128xf32>
    %c0_3 = arith.constant 0 : index
    %c0_4 = arith.constant 0 : index
    %3 = vector.load %arg3[%c0_3, %c0_4] : memref<1x128xf32, #tpu.memory_space<vmem>>, vector<1x128xf32>
    %4 = vector.broadcast %3 : vector<1x128xf32> to vector<400x128xf32>
    %5 = arith.addf %2, %4 : vector<400x128xf32>
    %cst_5 = arith.constant 0.000000e+00 : f32
    %6 = vector.broadcast %cst_5 : f32 to vector<400x128xf32>
    %7 = arith.maximumf %5, %6 : vector<400x128xf32>
    %8 = arith.truncf %7 : vector<400x128xf32> to vector<400x128xbf16>
    %c0_6 = arith.constant 0 : index
    %c0_7 = arith.constant 0 : index
    %9 = vector.load %arg4[%c0_6, %c0_7] : memref<400x128xbf16, #tpu.memory_space<vmem>>, vector<400x128xbf16>
    tpu.vector_store %arg4[%c0_6, %c0_7], %8 {strides = array<i32>} : memref<400x128xbf16, #tpu.memory_space<vmem>>, vector<400x128xbf16>,
    return
  }
  func.func @transform_0(%arg0: i32) -> (i32, i32) {
    %c0_i32 = arith.constant 0 : i32
    %c0_i32_0 = arith.constant 0 : i32
    return %arg0, %c0_i32 : i32, i32
  }
  func.func @transform_1(%arg0: i32) -> (i32, i32) {
    %c0_i32 = arith.constant 0 : i32
    %c0_i32_0 = arith.constant 0 : i32
    %c0_i32_1 = arith.constant 0 : i32
    return %c0_i32, %c0_i32_0 : i32, i32
  }
  func.func @transform_2(%arg0: i32) -> (i32, i32) {
    %c0_i32 = arith.constant 0 : i32
    %c0_i32_0 = arith.constant 0 : i32
    %c0_i32_1 = arith.constant 0 : i32
    return %c0_i32, %c0_i32_0 : i32, i32
  }
  func.func @transform_3(%arg0: i32) -> (i32, i32) {
    %c0_i32 = arith.constant 0 : i32
    %c0_i32_0 = arith.constant 0 : i32
    return %arg0, %c0_i32 : i32, i32
  }
}

module attributes {stable_mosaic.version = 11 : i64} {
  func.func @_fused_chain_kernel(%arg0: i32, %arg1: memref<64x640xbf16, #tpu.memory_space<vmem>>, %arg2: memref<640x128xbf16, #tpu.memory_space<vmem>>, %arg3: memref<1x128xf32, #tpu.memory_space<vmem>>, %arg4: memref<64x128xbf16, #tpu.memory_space<vmem>>) attributes {dimension_semantics = [#tpu.dimension_semantics<parallel>], iteration_bounds = array<i64: 2>, scalar_prefetch = 0 : i64, scratch_operands = 0 : i64, tpu.core_type = #tpu.core_type<tc>, window_params = [{transform_indices = @transform_0, window_bounds = array<i64: 64, 640>}, {pipeline_mode = #tpu.pipeline_mode<synchronous>, transform_indices = @transform_1, window_bounds = array<i64: 640, 128>}, {pipeline_mode = #tpu.pipeline_mode<synchronous>, transform_indices = @transform_2, window_bounds = array<i64: 1, 128>}, {transform_indices = @transform_3, window_bounds = array<i64: 64, 128>}]} {
    %c0 = arith.constant 0 : index
    %c0_0 = arith.constant 0 : index
    %0 = vector.load %arg1[%c0, %c0_0] : memref<64x640xbf16, #tpu.memory_space<vmem>>, vector<64x640xbf16>
    %c0_1 = arith.constant 0 : index
    %c0_2 = arith.constant 0 : index
    %1 = vector.load %arg2[%c0_1, %c0_2] : memref<640x128xbf16, #tpu.memory_space<vmem>>, vector<640x128xbf16>
    %cst = arith.constant dense<0.000000e+00> : vector<64x128xf32>
    %2 = tpu.matmul %0, %1, %cst {dimension_numbers = #tpu.dot_dimension_numbers<[1], [0], [0], [1], [0, 0, 1, 1], [], []>} : vector<64x640xbf16>, vector<640x128xbf16>, vector<64x128xf32> -> vector<64x128xf32>
    %c0_3 = arith.constant 0 : index
    %c0_4 = arith.constant 0 : index
    %3 = vector.load %arg3[%c0_3, %c0_4] : memref<1x128xf32, #tpu.memory_space<vmem>>, vector<1x128xf32>
    %4 = vector.broadcast %3 : vector<1x128xf32> to vector<64x128xf32>
    %5 = arith.addf %2, %4 : vector<64x128xf32>
    %cst_5 = arith.constant 0.000000e+00 : f32
    %6 = vector.broadcast %cst_5 : f32 to vector<64x128xf32>
    %7 = arith.maximumf %5, %6 : vector<64x128xf32>
    %8 = arith.truncf %7 : vector<64x128xf32> to vector<64x128xbf16>
    %c0_6 = arith.constant 0 : index
    %c0_7 = arith.constant 0 : index
    %9 = vector.load %arg4[%c0_6, %c0_7] : memref<64x128xbf16, #tpu.memory_space<vmem>>, vector<64x128xbf16>
    tpu.vector_store %arg4[%c0_6, %c0_7], %8 {strides = array<i32>} : memref<64x128xbf16, #tpu.memory_space<vmem>>, vector<64x128xbf16>,
    return
  }
  func.func @transform_0(%arg0: i32) -> (i32, i32) {
    %c0_i32 = arith.constant 0 : i32
    %c0_i32_0 = arith.constant 0 : i32
    return %arg0, %c0_i32 : i32, i32
  }
  func.func @transform_1(%arg0: i32) -> (i32, i32) {
    %c0_i32 = arith.constant 0 : i32
    %c0_i32_0 = arith.constant 0 : i32
    %c0_i32_1 = arith.constant 0 : i32
    return %c0_i32, %c0_i32_0 : i32, i32
  }
  func.func @transform_2(%arg0: i32) -> (i32, i32) {
    %c0_i32 = arith.constant 0 : i32
    %c0_i32_0 = arith.constant 0 : i32
    %c0_i32_1 = arith.constant 0 : i32
    return %c0_i32, %c0_i32_0 : i32, i32
  }
  func.func @transform_3(%arg0: i32) -> (i32, i32) {
    %c0_i32 = arith.constant 0 : i32
    %c0_i32_0 = arith.constant 0 : i32
    return %arg0, %c0_i32 : i32, i32
  }
}

module attributes {stable_mosaic.version = 11 : i64} {
  func.func @_head_kernel(%arg0: i32, %arg1: memref<16x8x128xbf16, #tpu.memory_space<vmem>>, %arg2: memref<9x128x256xbf16, #tpu.memory_space<vmem>>, %arg3: memref<1x256xf32, #tpu.memory_space<vmem>>, %arg4: memref<256x128xbf16, #tpu.memory_space<vmem>>, %arg5: memref<1x128xf32, #tpu.memory_space<vmem>>, %arg6: memref<128x128xbf16, #tpu.memory_space<vmem>>, %arg7: memref<1x128xf32, #tpu.memory_space<vmem>>, %arg8: memref<128x128xbf16, #tpu.memory_space<vmem>>, %arg9: memref<1x128xf32, #tpu.memory_space<vmem>>, %arg10: memref<8x128xf32, #tpu.memory_space<vmem>>) attributes {dimension_semantics = [#tpu.dimension_semantics<arbitrary>], iteration_bounds = array<i64: 1>, scalar_prefetch = 0 : i64, scratch_operands = 0 : i64, tpu.core_type = #tpu.core_type<tc>, window_params = [{pipeline_mode = #tpu.pipeline_mode<synchronous>, transform_indices = @transform_0, window_bounds = array<i64: 16, 8, 128>}, {pipeline_mode = #tpu.pipeline_mode<synchronous>, transform_indices = @transform_1, window_bounds = array<i64: 9, 128, 256>}, {pipeline_mode = #tpu.pipeline_mode<synchronous>, transform_indices = @transform_2, window_bounds = array<i64: 1, 256>}, {pipeline_mode = #tpu.pipeline_mode<synchronous>, transform_indices = @transform_3, window_bounds = array<i64: 256, 128>}, {pipeline_mode = #tpu.pipeline_mode<synchronous>, transform_indices = @transform_4, window_bounds = array<i64: 1, 128>}, {pipeline_mode = #tpu.pipeline_mode<synchronous>, transform_indices = @transform_5, window_bounds = array<i64: 128, 128>}, {pipeline_mode = #tpu.pipeline_mode<synchronous>, transform_indices = @transform_6, window_bounds = array<i64: 1, 128>}, {pipeline_mode = #tpu.pipeline_mode<synchronous>, transform_indices = @transform_7, window_bounds = array<i64: 128, 128>}, {pipeline_mode = #tpu.pipeline_mode<synchronous>, transform_indices = @transform_8, window_bounds = array<i64: 1, 128>}, {pipeline_mode = #tpu.pipeline_mode<synchronous>, transform_indices = @transform_9, window_bounds = array<i64: 8, 128>}]} {
    %cst = arith.constant 0.000000e+00 : f32
    %0 = vector.broadcast %cst : f32 to vector<8x256xf32>
    %c0 = arith.constant 0 : index
    %c0_0 = arith.constant 0 : index
    %c0_1 = arith.constant 0 : index
    %1 = vector.load %arg1[%c0, %c0_0, %c0_1] : memref<16x8x128xbf16, #tpu.memory_space<vmem>>, vector<1x8x128xbf16>
    %2 = vector.shape_cast %1 : vector<1x8x128xbf16> to vector<8x128xbf16>
    %c0_2 = arith.constant 0 : index
    %c0_3 = arith.constant 0 : index
    %c0_4 = arith.constant 0 : index
    %3 = vector.load %arg2[%c0_2, %c0_3, %c0_4] : memref<9x128x256xbf16, #tpu.memory_space<vmem>>, vector<1x128x256xbf16>
    %4 = vector.shape_cast %3 : vector<1x128x256xbf16> to vector<128x256xbf16>
    %cst_5 = arith.constant dense<0.000000e+00> : vector<8x256xf32>
    %5 = tpu.matmul %2, %4, %cst_5 {dimension_numbers = #tpu.dot_dimension_numbers<[1], [0], [0], [1], [0, 0, 1, 1], [], []>} : vector<8x128xbf16>, vector<128x256xbf16>, vector<8x256xf32> -> vector<8x256xf32>
    %6 = arith.addf %0, %5 : vector<8x256xf32>
    %c1 = arith.constant 1 : index
    %c0_6 = arith.constant 0 : index
    %c0_7 = arith.constant 0 : index
    %7 = vector.load %arg1[%c1, %c0_6, %c0_7] : memref<16x8x128xbf16, #tpu.memory_space<vmem>>, vector<1x8x128xbf16>
    %8 = vector.shape_cast %7 : vector<1x8x128xbf16> to vector<8x128xbf16>
    %c1_8 = arith.constant 1 : index
    %c0_9 = arith.constant 0 : index
    %c0_10 = arith.constant 0 : index
    %9 = vector.load %arg2[%c1_8, %c0_9, %c0_10] : memref<9x128x256xbf16, #tpu.memory_space<vmem>>, vector<1x128x256xbf16>
    %10 = vector.shape_cast %9 : vector<1x128x256xbf16> to vector<128x256xbf16>
    %cst_11 = arith.constant dense<0.000000e+00> : vector<8x256xf32>
    %11 = tpu.matmul %8, %10, %cst_11 {dimension_numbers = #tpu.dot_dimension_numbers<[1], [0], [0], [1], [0, 0, 1, 1], [], []>} : vector<8x128xbf16>, vector<128x256xbf16>, vector<8x256xf32> -> vector<8x256xf32>
    %12 = arith.addf %6, %11 : vector<8x256xf32>
    %c2 = arith.constant 2 : index
    %c0_12 = arith.constant 0 : index
    %c0_13 = arith.constant 0 : index
    %13 = vector.load %arg1[%c2, %c0_12, %c0_13] : memref<16x8x128xbf16, #tpu.memory_space<vmem>>, vector<1x8x128xbf16>
    %14 = vector.shape_cast %13 : vector<1x8x128xbf16> to vector<8x128xbf16>
    %c2_14 = arith.constant 2 : index
    %c0_15 = arith.constant 0 : index
    %c0_16 = arith.constant 0 : index
    %15 = vector.load %arg2[%c2_14, %c0_15, %c0_16] : memref<9x128x256xbf16, #tpu.memory_space<vmem>>, vector<1x128x256xbf16>
    %16 = vector.shape_cast %15 : vector<1x128x256xbf16> to vector<128x256xbf16>
    %cst_17 = arith.constant dense<0.000000e+00> : vector<8x256xf32>
    %17 = tpu.matmul %14, %16, %cst_17 {dimension_numbers = #tpu.dot_dimension_numbers<[1], [0], [0], [1], [0, 0, 1, 1], [], []>} : vector<8x128xbf16>, vector<128x256xbf16>, vector<8x256xf32> -> vector<8x256xf32>
    %18 = arith.addf %12, %17 : vector<8x256xf32>
    %c4 = arith.constant 4 : index
    %c0_18 = arith.constant 0 : index
    %c0_19 = arith.constant 0 : index
    %19 = vector.load %arg1[%c4, %c0_18, %c0_19] : memref<16x8x128xbf16, #tpu.memory_space<vmem>>, vector<1x8x128xbf16>
    %20 = vector.shape_cast %19 : vector<1x8x128xbf16> to vector<8x128xbf16>
    %c3 = arith.constant 3 : index
    %c0_20 = arith.constant 0 : index
    %c0_21 = arith.constant 0 : index
    %21 = vector.load %arg2[%c3, %c0_20, %c0_21] : memref<9x128x256xbf16, #tpu.memory_space<vmem>>, vector<1x128x256xbf16>
    %22 = vector.shape_cast %21 : vector<1x128x256xbf16> to vector<128x256xbf16>
    %cst_22 = arith.constant dense<0.000000e+00> : vector<8x256xf32>
    %23 = tpu.matmul %20, %22, %cst_22 {dimension_numbers = #tpu.dot_dimension_numbers<[1], [0], [0], [1], [0, 0, 1, 1], [], []>} : vector<8x128xbf16>, vector<128x256xbf16>, vector<8x256xf32> -> vector<8x256xf32>
    %24 = arith.addf %18, %23 : vector<8x256xf32>
    %c5 = arith.constant 5 : index
    %c0_23 = arith.constant 0 : index
    %c0_24 = arith.constant 0 : index
    %25 = vector.load %arg1[%c5, %c0_23, %c0_24] : memref<16x8x128xbf16, #tpu.memory_space<vmem>>, vector<1x8x128xbf16>
    %26 = vector.shape_cast %25 : vector<1x8x128xbf16> to vector<8x128xbf16>
    %c4_25 = arith.constant 4 : index
    %c0_26 = arith.constant 0 : index
    %c0_27 = arith.constant 0 : index
    %27 = vector.load %arg2[%c4_25, %c0_26, %c0_27] : memref<9x128x256xbf16, #tpu.memory_space<vmem>>, vector<1x128x256xbf16>
    %28 = vector.shape_cast %27 : vector<1x128x256xbf16> to vector<128x256xbf16>
    %cst_28 = arith.constant dense<0.000000e+00> : vector<8x256xf32>
    %29 = tpu.matmul %26, %28, %cst_28 {dimension_numbers = #tpu.dot_dimension_numbers<[1], [0], [0], [1], [0, 0, 1, 1], [], []>} : vector<8x128xbf16>, vector<128x256xbf16>, vector<8x256xf32> -> vector<8x256xf32>
    %30 = arith.addf %24, %29 : vector<8x256xf32>
    %c6 = arith.constant 6 : index
    %c0_29 = arith.constant 0 : index
    %c0_30 = arith.constant 0 : index
    %31 = vector.load %arg1[%c6, %c0_29, %c0_30] : memref<16x8x128xbf16, #tpu.memory_space<vmem>>, vector<1x8x128xbf16>
    %32 = vector.shape_cast %31 : vector<1x8x128xbf16> to vector<8x128xbf16>
    %c5_31 = arith.constant 5 : index
    %c0_32 = arith.constant 0 : index
    %c0_33 = arith.constant 0 : index
    %33 = vector.load %arg2[%c5_31, %c0_32, %c0_33] : memref<9x128x256xbf16, #tpu.memory_space<vmem>>, vector<1x128x256xbf16>
    %34 = vector.shape_cast %33 : vector<1x128x256xbf16> to vector<128x256xbf16>
    %cst_34 = arith.constant dense<0.000000e+00> : vector<8x256xf32>
    %35 = tpu.matmul %32, %34, %cst_34 {dimension_numbers = #tpu.dot_dimension_numbers<[1], [0], [0], [1], [0, 0, 1, 1], [], []>} : vector<8x128xbf16>, vector<128x256xbf16>, vector<8x256xf32> -> vector<8x256xf32>
    %36 = arith.addf %30, %35 : vector<8x256xf32>
    %c8 = arith.constant 8 : index
    %c0_35 = arith.constant 0 : index
    %c0_36 = arith.constant 0 : index
    %37 = vector.load %arg1[%c8, %c0_35, %c0_36] : memref<16x8x128xbf16, #tpu.memory_space<vmem>>, vector<1x8x128xbf16>
    %38 = vector.shape_cast %37 : vector<1x8x128xbf16> to vector<8x128xbf16>
    %c6_37 = arith.constant 6 : index
    %c0_38 = arith.constant 0 : index
    %c0_39 = arith.constant 0 : index
    %39 = vector.load %arg2[%c6_37, %c0_38, %c0_39] : memref<9x128x256xbf16, #tpu.memory_space<vmem>>, vector<1x128x256xbf16>
    %40 = vector.shape_cast %39 : vector<1x128x256xbf16> to vector<128x256xbf16>
    %cst_40 = arith.constant dense<0.000000e+00> : vector<8x256xf32>
    %41 = tpu.matmul %38, %40, %cst_40 {dimension_numbers = #tpu.dot_dimension_numbers<[1], [0], [0], [1], [0, 0, 1, 1], [], []>} : vector<8x128xbf16>, vector<128x256xbf16>, vector<8x256xf32> -> vector<8x256xf32>
    %42 = arith.addf %36, %41 : vector<8x256xf32>
    %c9 = arith.constant 9 : index
    %c0_41 = arith.constant 0 : index
    %c0_42 = arith.constant 0 : index
    %43 = vector.load %arg1[%c9, %c0_41, %c0_42] : memref<16x8x128xbf16, #tpu.memory_space<vmem>>, vector<1x8x128xbf16>
    %44 = vector.shape_cast %43 : vector<1x8x128xbf16> to vector<8x128xbf16>
    %c7 = arith.constant 7 : index
    %c0_43 = arith.constant 0 : index
    %c0_44 = arith.constant 0 : index
    %45 = vector.load %arg2[%c7, %c0_43, %c0_44] : memref<9x128x256xbf16, #tpu.memory_space<vmem>>, vector<1x128x256xbf16>
    %46 = vector.shape_cast %45 : vector<1x128x256xbf16> to vector<128x256xbf16>
    %cst_45 = arith.constant dense<0.000000e+00> : vector<8x256xf32>
    %47 = tpu.matmul %44, %46, %cst_45 {dimension_numbers = #tpu.dot_dimension_numbers<[1], [0], [0], [1], [0, 0, 1, 1], [], []>} : vector<8x128xbf16>, vector<128x256xbf16>, vector<8x256xf32> -> vector<8x256xf32>
    %48 = arith.addf %42, %47 : vector<8x256xf32>
    %c10 = arith.constant 10 : index
    %c0_46 = arith.constant 0 : index
    %c0_47 = arith.constant 0 : index
    %49 = vector.load %arg1[%c10, %c0_46, %c0_47] : memref<16x8x128xbf16, #tpu.memory_space<vmem>>, vector<1x8x128xbf16>
    %50 = vector.shape_cast %49 : vector<1x8x128xbf16> to vector<8x128xbf16>
    %c8_48 = arith.constant 8 : index
    %c0_49 = arith.constant 0 : index
    %c0_50 = arith.constant 0 : index
    %51 = vector.load %arg2[%c8_48, %c0_49, %c0_50] : memref<9x128x256xbf16, #tpu.memory_space<vmem>>, vector<1x128x256xbf16>
    %52 = vector.shape_cast %51 : vector<1x128x256xbf16> to vector<128x256xbf16>
    %cst_51 = arith.constant dense<0.000000e+00> : vector<8x256xf32>
    %53 = tpu.matmul %50, %52, %cst_51 {dimension_numbers = #tpu.dot_dimension_numbers<[1], [0], [0], [1], [0, 0, 1, 1], [], []>} : vector<8x128xbf16>, vector<128x256xbf16>, vector<8x256xf32> -> vector<8x256xf32>
    %54 = arith.addf %48, %53 : vector<8x256xf32>
    %c0_52 = arith.constant 0 : index
    %c0_53 = arith.constant 0 : index
    %55 = vector.load %arg3[%c0_52, %c0_53] : memref<1x256xf32, #tpu.memory_space<vmem>>, vector<1x256xf32>
    %56 = vector.broadcast %55 : vector<1x256xf32> to vector<8x256xf32>
    %57 = arith.addf %54, %56 : vector<8x256xf32>
    %cst_54 = arith.constant 0.000000e+00 : f32
    %58 = vector.broadcast %cst_54 : f32 to vector<8x256xf32>
    %59 = arith.maximumf %57, %58 : vector<8x256xf32>
    %60 = arith.truncf %59 : vector<8x256xf32> to vector<8x256xbf16>
    %c0_55 = arith.constant 0 : index
    %c0_56 = arith.constant 0 : index
    %61 = vector.load %arg4[%c0_55, %c0_56] : memref<256x128xbf16, #tpu.memory_space<vmem>>, vector<256x128xbf16>
    %cst_57 = arith.constant dense<0.000000e+00> : vector<8x128xf32>
    %62 = tpu.matmul %60, %61, %cst_57 {dimension_numbers = #tpu.dot_dimension_numbers<[1], [0], [0], [1], [0, 0, 1, 1], [], []>} : vector<8x256xbf16>, vector<256x128xbf16>, vector<8x128xf32> -> vector<8x128xf32>
    %c0_58 = arith.constant 0 : index
    %c0_59 = arith.constant 0 : index
    %63 = vector.load %arg5[%c0_58, %c0_59] : memref<1x128xf32, #tpu.memory_space<vmem>>, vector<1x128xf32>
    %64 = vector.broadcast %63 : vector<1x128xf32> to vector<8x128xf32>
    %65 = arith.addf %62, %64 : vector<8x128xf32>
    %cst_60 = arith.constant 0.000000e+00 : f32
    %66 = vector.broadcast %cst_60 : f32 to vector<8x128xf32>
    %67 = arith.maximumf %65, %66 : vector<8x128xf32>
    %68 = arith.truncf %67 : vector<8x128xf32> to vector<8x128xbf16>
    %c0_61 = arith.constant 0 : index
    %c0_62 = arith.constant 0 : index
    %69 = vector.load %arg6[%c0_61, %c0_62] : memref<128x128xbf16, #tpu.memory_space<vmem>>, vector<128x128xbf16>
    %cst_63 = arith.constant dense<0.000000e+00> : vector<8x128xf32>
    %70 = tpu.matmul %68, %69, %cst_63 {dimension_numbers = #tpu.dot_dimension_numbers<[1], [0], [0], [1], [0, 0, 1, 1], [], []>} : vector<8x128xbf16>, vector<128x128xbf16>, vector<8x128xf32> -> vector<8x128xf32>
    %c0_64 = arith.constant 0 : index
    %c0_65 = arith.constant 0 : index
    %71 = vector.load %arg7[%c0_64, %c0_65] : memref<1x128xf32, #tpu.memory_space<vmem>>, vector<1x128xf32>
    %72 = vector.broadcast %71 : vector<1x128xf32> to vector<8x128xf32>
    %73 = arith.addf %70, %72 : vector<8x128xf32>
    %cst_66 = arith.constant 0.000000e+00 : f32
    %74 = vector.broadcast %cst_66 : f32 to vector<8x128xf32>
    %75 = arith.maximumf %73, %74 : vector<8x128xf32>
    %76 = arith.truncf %75 : vector<8x128xf32> to vector<8x128xbf16>
    %c0_67 = arith.constant 0 : index
    %c0_68 = arith.constant 0 : index
    %77 = vector.load %arg8[%c0_67, %c0_68] : memref<128x128xbf16, #tpu.memory_space<vmem>>, vector<128x128xbf16>
    %cst_69 = arith.constant dense<0.000000e+00> : vector<8x128xf32>
    %78 = tpu.matmul %76, %77, %cst_69 {dimension_numbers = #tpu.dot_dimension_numbers<[1], [0], [0], [1], [0, 0, 1, 1], [], []>} : vector<8x128xbf16>, vector<128x128xbf16>, vector<8x128xf32> -> vector<8x128xf32>
    %c0_70 = arith.constant 0 : index
    %c0_71 = arith.constant 0 : index
    %79 = vector.load %arg9[%c0_70, %c0_71] : memref<1x128xf32, #tpu.memory_space<vmem>>, vector<1x128xf32>
    %80 = vector.broadcast %79 : vector<1x128xf32> to vector<8x128xf32>
    %81 = arith.addf %78, %80 : vector<8x128xf32>
    %c0_72 = arith.constant 0 : index
    %c0_73 = arith.constant 0 : index
    %82 = vector.load %arg10[%c0_72, %c0_73] : memref<8x128xf32, #tpu.memory_space<vmem>>, vector<8x128xf32>
    tpu.vector_store %arg10[%c0_72, %c0_73], %81 {strides = array<i32>} : memref<8x128xf32, #tpu.memory_space<vmem>>, vector<8x128xf32>,
    return
  }
  func.func @transform_0(%arg0: i32) -> (i32, i32, i32) {
    %c0_i32 = arith.constant 0 : i32
    %c0_i32_0 = arith.constant 0 : i32
    %c0_i32_1 = arith.constant 0 : i32
    %c0_i32_2 = arith.constant 0 : i32
    return %c0_i32, %c0_i32_0, %c0_i32_1 : i32, i32, i32
  }
  func.func @transform_1(%arg0: i32) -> (i32, i32, i32) {
    %c0_i32 = arith.constant 0 : i32
    %c0_i32_0 = arith.constant 0 : i32
    %c0_i32_1 = arith.constant 0 : i32
    %c0_i32_2 = arith.constant 0 : i32
    return %c0_i32, %c0_i32_0, %c0_i32_1 : i32, i32, i32
  }
  func.func @transform_2(%arg0: i32) -> (i32, i32) {
    %c0_i32 = arith.constant 0 : i32
    %c0_i32_0 = arith.constant 0 : i32
    %c0_i32_1 = arith.constant 0 : i32
    return %c0_i32, %c0_i32_0 : i32, i32
  }
  func.func @transform_3(%arg0: i32) -> (i32, i32) {
    %c0_i32 = arith.constant 0 : i32
    %c0_i32_0 = arith.constant 0 : i32
    %c0_i32_1 = arith.constant 0 : i32
    return %c0_i32, %c0_i32_0 : i32, i32
  }
  func.func @transform_4(%arg0: i32) -> (i32, i32) {
    %c0_i32 = arith.constant 0 : i32
    %c0_i32_0 = arith.constant 0 : i32
    %c0_i32_1 = arith.constant 0 : i32
    return %c0_i32, %c0_i32_0 : i32, i32
  }
  func.func @transform_5(%arg0: i32) -> (i32, i32) {
    %c0_i32 = arith.constant 0 : i32
    %c0_i32_0 = arith.constant 0 : i32
    %c0_i32_1 = arith.constant 0 : i32
    return %c0_i32, %c0_i32_0 : i32, i32
  }
  func.func @transform_6(%arg0: i32) -> (i32, i32) {
    %c0_i32 = arith.constant 0 : i32
    %c0_i32_0 = arith.constant 0 : i32
    %c0_i32_1 = arith.constant 0 : i32
    return %c0_i32, %c0_i32_0 : i32, i32
  }
  func.func @transform_7(%arg0: i32) -> (i32, i32) {
    %c0_i32 = arith.constant 0 : i32
    %c0_i32_0 = arith.constant 0 : i32
    %c0_i32_1 = arith.constant 0 : i32
    return %c0_i32, %c0_i32_0 : i32, i32
  }
  func.func @transform_8(%arg0: i32) -> (i32, i32) {
    %c0_i32 = arith.constant 0 : i32
    %c0_i32_0 = arith.constant 0 : i32
    %c0_i32_1 = arith.constant 0 : i32
    return %c0_i32, %c0_i32_0 : i32, i32
  }
  func.func @transform_9(%arg0: i32) -> (i32, i32) {
    %c0_i32 = arith.constant 0 : i32
    %c0_i32_0 = arith.constant 0 : i32
    %c0_i32_1 = arith.constant 0 : i32
    return %c0_i32, %c0_i32_0 : i32, i32
  }
}

</mosaic_0001>

<bundles_post_ra>
// kernel: encoder_cnn_forward.4
= control target key start
LH: loop header
LB: loop body
LE: loop exit
PB: predicated region body
PF: predicated region fallthrough
CT: control target
= control target key end

     0   :  { %s5887_s12 = smov 0   ;;  %s6696_s0 = inlined_call_operand.vmem [shape: bf16[3872,128], index: 0, kind: input, shape index: {}]   ;;  %s6697_s1 = inlined_call_operand.vmem [shape: bf16[128,128], index: 1, kind: input, shape index: {}]   ;;  %s6698_s2 = inlined_call_operand.vmem [shape: f32[1,128], index: 2, kind: input, shape index: {}]   ;;  %s6699_s3 = inlined_call_operand.vmem [shape: bf16[3872,128], index: 3, kind: output, shape index: {}]  }
   0x1 LB: > { %s3723_s13 = sadd.s32 4294967295, %s5863_s12   ;;  %p3727_p0 = scmp.ge.s32.totalorder %s5863_s12, 1  ;;  %s5863_s12 = sphi %s5887_s12, %s13_s12  }
   0x2   : > { %p138_p1 = scmp.lt.s32.totalorder %s5863_s12, 3 }
   0x4   : > { %p139_p2 = pnand %p3727_p0, %p138_p1 }
   0x5   : > { %s162_s18 = smul.u32 (!%p139_p2), 242, %s3723_s13 }
   0x6   : > { %142 = sbr.rel (%p139_p2) target bundleno = 728 (0x2d8), region = 32 }
   0x7   : > { %p163_p3 = scmp.lt.s32.totalorder (!%p139_p2), %s162_s18, 483 }
   0xb   : > { %v5726_v0 = vld [vmem:[%s6697_s1 + $0x38] sm:$0xff]   ;;  %v5865_v1 = vmov 0.0   ;;  %v5727_v2 = vld [vmem:[%s6697_s1 + $0x30] sm:$0xff]   ;;  %vm5866_vm0 = vmmov 0   ;;  %v5728_v3 = vld [vmem:[%s6697_s1 + $0x28] sm:$0xff]   ;;  %s6701_s18 = smov (!%p163_p3, %s162_s18), 483 }
   0xc   : > { %5200 = vmatprep.subr.bf16.mxu0 %v5865_v1  ;;  %5700 = vmatprep.subr.bf16.mxu1 %v5865_v1  ;;  %s3728_s21 = sshll.u32 %s6701_s18, 2  ;;  %v5729_v4 = vld [vmem:[%s6697_s1 + $0x20] sm:$0xff]   ;;  %v5730_v5 = vld [vmem:[%s6697_s1 + $0x18] sm:$0xff]   ;;  %v5731_v6 = vld [vmem:[%s6697_s1 + $0x10] sm:$0xff]  }
   0xd   : > { %5201 = vmatpush3.bf16.msra.mxu0 %v5726_v0  ;;  %5708 = vmatpush3.bf16.msra.mxu1 %v5726_v0  ;;  %s5922_s24 = scalar_lea.vmem %s6696_s0, %s3728_s21  ;;  %v5732_v7 = vld [vmem:[%s6697_s1 + $0x8] sm:$0xff]   ;;  %v5733_v8 = vld [vmem:[%s6697_s1] sm:$0xff]   ;;  %s6115_s13 = scalar_lea.vmem %s6699_s3, %s3728_s21 }
   0xe   : > { %5202 = vmatprep.subr.bf16.mxu0 %v5865_v1  ;;  %5701 = vmatprep.subr.bf16.mxu1 %v5865_v1  ;;  %v5734_v9 = vld [vmem:[%s5922_s24] sm:$0xff]   ;;  %v5735_v10 = vld [vmem:[%s5922_s24 + $0x1e8] sm:$0xff]   ;;  %v5737_v12 = vld [vmem:[%s5922_s24 + $0x1f0] sm:$0xff]  }
   0xf   : > { %5216 = vmatprep.mubr.msk.bf16.mxu0 %vm5866_vm0, %v5865_v1  ;;  %5460 = vmatprep.mubr.msk.bf16.mxu1 %vm5866_vm0, %v5865_v1  ;;  %v5736_v11 = vld [vmem:[%s5922_s24 + $0x8] sm:$0xff]   ;;  %v5738_v13 = vld [vmem:[%s5922_s24 + $0x10] sm:$0xff]   ;;  %v5739_v14 = vld [vmem:[%s5922_s24 + $0x1f8] sm:$0xff]  }
  0x10   : > { %v5740_v15 = vld [vmem:[%s5922_s24 + $0x18] sm:$0xff]   ;;  %v5741_v16 = vld [vmem:[%s5922_s24 + $0x200] sm:$0xff]   ;;  %v5743_v18 = vld [vmem:[%s5922_s24 + $0x208] sm:$0xff]  }
  0x11   : > { %5203 = vmatpush3.bf16.msra.mxu0 %v5727_v2  ;;  %5709 = vmatpush3.bf16.msra.mxu1 %v5727_v2  ;;  %v5742_v17 = vld [vmem:[%s5922_s24 + $0x20] sm:$0xff]   ;;  %v5744_v19 = vld [vmem:[%s5922_s24 + $0x28] sm:$0xff]   ;;  %v5745_v20 = vld [vmem:[%s5922_s24 + $0x210] sm:$0xff]  }
  0x12   : > { %5204 = vmatprep.subr.bf16.mxu0 %v5865_v1  ;;  %5702 = vmatprep.subr.bf16.mxu1 %v5865_v1  ;;  %v5746_v21 = vld [vmem:[%s5922_s24 + $0x30] sm:$0xff]   ;;  %v5747_v22 = vld [vmem:[%s5922_s24 + $0x218] sm:$0xff]   ;;  %v5749_v24 = vld [vmem:[%s5922_s24 + $0x220] sm:$0xff]  }
  0x13   : > { %v5748_v23 = vld [vmem:[%s5922_s24 + $0x38] sm:$0xff]   ;;  %v5750_v25 = vld [vmem:[%s5922_s24 + $0x40] sm:$0xff]   ;;  %v5751_v26 = vld [vmem:[%s5922_s24 + $0x228] sm:$0xff]  }
  0x14   : > { %v5752_v27 = vld [vmem:[%s5922_s24 + $0x48] sm:$0xff]   ;;  %v5753_v28 = vld [vmem:[%s5922_s24 + $0x230] sm:$0xff]   ;;  %v5755_v30 = vld [vmem:[%s5922_s24 + $0x238] sm:$0xff]  }
  0x15   : > { %5205 = vmatpush3.bf16.msra.mxu0 %v5728_v3  ;;  %5710 = vmatpush3.bf16.msra.mxu1 %v5728_v3  ;;  %v5754_v29 = vld [vmem:[%s5922_s24 + $0x50] sm:$0xff]   ;;  %v5756_v31 = vld [vmem:[%s5922_s24 + $0x58] sm:$0xff]   ;;  %v5757_v32 = vld [vmem:[%s5922_s24 + $0x240] sm:$0xff]  }
  0x16   : > { %5206 = vmatprep.subr.bf16.mxu0 %v5865_v1  ;;  %5703 = vmatprep.subr.bf16.mxu1 %v5865_v1  ;;  %v5758_v33 = vld [vmem:[%s5922_s24 + $0x60] sm:$0xff]   ;;  %v5759_v34 = vld [vmem:[%s5922_s24 + $0x248] sm:$0xff]   ;;  %v5761_v36 = vld [vmem:[%s5922_s24 + $0x250] sm:$0xff]  }
  0x17   : > { %v5760_v35 = vld [vmem:[%s5922_s24 + $0x68] sm:$0xff]   ;;  %v5762_v37 = vld [vmem:[%s5922_s24 + $0x70] sm:$0xff]   ;;  %v5763_v38 = vld [vmem:[%s5922_s24 + $0x258] sm:$0xff]  }
  0x18   : > { %v5764_v39 = vld [vmem:[%s5922_s24 + $0x78] sm:$0xff]   ;;  %v5765_v40 = vld [vmem:[%s5922_s24 + $0x260] sm:$0xff]   ;;  %v5767_v42 = vld [vmem:[%s5922_s24 + $0x268] sm:$0xff]  }
  0x19   : > { %5207 = vmatpush3.bf16.msra.mxu0 %v5729_v4  ;;  %5711 = vmatpush3.bf16.msra.mxu1 %v5729_v4  ;;  %v5766_v41 = vld [vmem:[%s5922_s24 + $0x80] sm:$0xff]   ;;  %v5768_v43 = vld [vmem:[%s5922_s24 + $0x88] sm:$0xff]   ;;  %v5769_v44 = vld [vmem:[%s5922_s24 + $0x270] sm:$0xff]  }
  0x1a   : > { %5208 = vmatprep.subr.bf16.mxu0 %v5865_v1  ;;  %5704 = vmatprep.subr.bf16.mxu1 %v5865_v1  ;;  %v5770_v45 = vld [vmem:[%s5922_s24 + $0x90] sm:$0xff]   ;;  %v5771_v46 = vld [vmem:[%s5922_s24 + $0x278] sm:$0xff]   ;;  %v5773_v48 = vld [vmem:[%s5922_s24 + $0x280] sm:$0xff]  }
  0x1b   : > { %v5772_v47 = vld [vmem:[%s5922_s24 + $0x98] sm:$0xff]   ;;  %v5774_v49 = vld [vmem:[%s5922_s24 + $0xa0] sm:$0xff]   ;;  %v5775_v50 = vld [vmem:[%s5922_s24 + $0x288] sm:$0xff]  }
  0x1c   : > { %v5776_v51 = vld [vmem:[%s5922_s24 + $0xa8] sm:$0xff]   ;;  %v5777_v52 = vld [vmem:[%s5922_s24 + $0x290] sm:$0xff]   ;;  %v5779_v54 = vld [vmem:[%s5922_s24 + $0x298] sm:$0xff]  }
  0x1d   : > { %5209 = vmatpush3.bf16.msra.mxu0 %v5730_v5  ;;  %5712 = vmatpush3.bf16.msra.mxu1 %v5730_v5  ;;  %v5778_v53 = vld [vmem:[%s5922_s24 + $0xb0] sm:$0xff]   ;;  %v5780_v55 = vld [vmem:[%s5922_s24 + $0xb8] sm:$0xff]   ;;  %v5781_v56 = vld [vmem:[%s5922_s24 + $0x2a0] sm:$0xff]  }
  0x1e   : > { %5210 = vmatprep.subr.bf16.mxu0 %v5865_v1  ;;  %5705 = vmatprep.subr.bf16.mxu1 %v5865_v1  ;;  %v5782_v57 = vld [vmem:[%s5922_s24 + $0xc0] sm:$0xff]   ;;  %v5783_v58 = vld [vmem:[%s5922_s24 + $0x2a8] sm:$0xff]  }
  0x1f   : > { %v6098_v59 = vld [vmem:[%s6698_s2] ss:$0 sm:$0xff]  ;;  %v5784_v5 = vld [vmem:[%s5922_s24 + $0xc8] sm:$0xff]  }
  0x21   : > { %5211 = vmatpush3.bf16.msra.mxu0 %v5731_v6  ;;  %5713 = vmatpush3.bf16.msra.mxu1 %v5731_v6  ;;  %v5785_v6 = vld [vmem:[%s5922_s24 + $0x2b0] sm:$0xff]  }
  0x22   : > { %5212 = vmatprep.subr.bf16.mxu0 %v5865_v1  ;;  %5706 = vmatprep.subr.bf16.mxu1 %v5865_v1 }
  0x25   : > { %5213 = vmatpush3.bf16.msra.mxu0 %v5732_v7  ;;  %5714 = vmatpush3.bf16.msra.mxu1 %v5732_v7 }
  0x26   : > { %5214 = vmatprep.subr.bf16.mxu0 %v5865_v1  ;;  %5707 = vmatprep.subr.bf16.mxu1 %v5865_v1 }
  0x29   : > { %5215 = vmatpush3.bf16.msra.mxu0 %v5733_v8  ;;  %5715 = vmatpush3.bf16.msra.mxu1 %v5733_v8 }
  0x2c   : > { %5217 = vmatmul.mubr.bf16.vlgmr.msra.gmra.mxu0 %v5734_v9  ;;  %5461 = vmatmul.mubr.bf16.vlgmr.msra.gmra.mxu1 %v5735_v10 }
  0x2d   : > { %5220 = vmatprep.mubr.msk.bf16.mxu0 %vm5866_vm0, %v5865_v1  ;;  %5464 = vmatprep.mubr.msk.bf16.mxu1 %vm5866_vm0, %v5865_v1 }
  0x34   : > { %5221 = vmatmul.mubr.bf16.gmra.mxu0 %v5736_v11  ;;  %5465 = vmatmul.mubr.bf16.gmra.mxu1 %v5737_v12 }
  0x35   : > { %5224 = vmatprep.mubr.msk.bf16.mxu0 %vm5866_vm0, %v5865_v1  ;;  %5468 = vmatprep.mubr.msk.bf16.mxu1 %vm5866_vm0, %v5865_v1 }
  0x3c   : > { %5225 = vmatmul.mubr.bf16.gmra.mxu0 %v5738_v13  ;;  %5469 = vmatmul.mubr.bf16.gmra.mxu1 %v5739_v14 }
  0x3d   : > { %5228 = vmatprep.mubr.msk.bf16.mxu0 %vm5866_vm0, %v5865_v1  ;;  %5472 = vmatprep.mubr.msk.bf16.mxu1 %vm5866_vm0, %v5865_v1 }
  0x44   : > { %5229 = vmatmul.mubr.bf16.gmra.mxu0 %v5740_v15  ;;  %5473 = vmatmul.mubr.bf16.gmra.mxu1 %v5741_v16 }
  0x45   : > { %5232 = vmatprep.mubr.msk.bf16.mxu0 %vm5866_vm0, %v5865_v1  ;;  %5476 = vmatprep.mubr.msk.bf16.mxu1 %vm5866_vm0, %v5865_v1 }
  0x4c   : > { %5233 = vmatmul.mubr.bf16.gmra.mxu0 %v5742_v17  ;;  %5477 = vmatmul.mubr.bf16.gmra.mxu1 %v5743_v18 }
  0x4d   : > { %5236 = vmatprep.mubr.msk.bf16.mxu0 %vm5866_vm0, %v5865_v1  ;;  %5480 = vmatprep.mubr.msk.bf16.mxu1 %vm5866_vm0, %v5865_v1 }
  0x54   : > { %5237 = vmatmul.mubr.bf16.gmra.mxu0 %v5744_v19  ;;  %5481 = vmatmul.mubr.bf16.gmra.mxu1 %v5745_v20 }
  0x55   : > { %5240 = vmatprep.mubr.msk.bf16.mxu0 %vm5866_vm0, %v5865_v1  ;;  %5484 = vmatprep.mubr.msk.bf16.mxu1 %vm5866_vm0, %v5865_v1 }
  0x5c   : > { %5241 = vmatmul.mubr.bf16.gmra.mxu0 %v5746_v21  ;;  %5485 = vmatmul.mubr.bf16.gmra.mxu1 %v5747_v22 }
  0x5d   : > { %5244 = vmatprep.mubr.msk.bf16.mxu0 %vm5866_vm0, %v5865_v1  ;;  %5488 = vmatprep.mubr.msk.bf16.mxu1 %vm5866_vm0, %v5865_v1 }
  0x64   : > { %5245 = vmatmul.mubr.bf16.gmra.mxu0 %v5748_v23  ;;  %5489 = vmatmul.mubr.bf16.gmra.mxu1 %v5749_v24 }
  0x65   : > { %5248 = vmatprep.mubr.msk.bf16.mxu0 %vm5866_vm0, %v5865_v1  ;;  %5492 = vmatprep.mubr.msk.bf16.mxu1 %vm5866_vm0, %v5865_v1 }
  0x6c   : > { %5249 = vmatmul.mubr.bf16.gmra.mxu0 %v5750_v25  ;;  %5493 = vmatmul.mubr.bf16.gmra.mxu1 %v5751_v26  ;;  %v5786_v25 = vld [vmem:[%s5922_s24 + $0xd0] sm:$0xff]   ;;  %v5787_v26 = vld [vmem:[%s5922_s24 + $0x2b8] sm:$0xff]  }
  0x6d   : > { %5252 = vmatprep.mubr.msk.bf16.mxu0 %vm5866_vm0, %v5865_v1  ;;  %5496 = vmatprep.mubr.msk.bf16.mxu1 %vm5866_vm0, %v5865_v1 }
  0x74   : > { %5253 = vmatmul.mubr.bf16.gmra.mxu0 %v5752_v27  ;;  %5497 = vmatmul.mubr.bf16.gmra.mxu1 %v5753_v28 }
  0x75   : > { %5256 = vmatprep.mubr.msk.bf16.mxu0 %vm5866_vm0, %v5865_v1  ;;  %5500 = vmatprep.mubr.msk.bf16.mxu1 %vm5866_vm0, %v5865_v1 }
  0x7c   : > { %5257 = vmatmul.mubr.bf16.gmra.mxu0 %v5754_v29  ;;  %5501 = vmatmul.mubr.bf16.gmra.mxu1 %v5755_v30 }
  0x7d   : > { %5260 = vmatprep.mubr.msk.bf16.mxu0 %vm5866_vm0, %v5865_v1  ;;  %5504 = vmatprep.mubr.msk.bf16.mxu1 %vm5866_vm0, %v5865_v1 }
  0x84   : > { %5261 = vmatmul.mubr.bf16.gmra.mxu0 %v5756_v31  ;;  %5505 = vmatmul.mubr.bf16.gmra.mxu1 %v5757_v32 }
  0x85   : > { %5264 = vmatprep.mubr.msk.bf16.mxu0 %vm5866_vm0, %v5865_v1  ;;  %5508 = vmatprep.mubr.msk.bf16.mxu1 %vm5866_vm0, %v5865_v1 }
  0x8c   : > { %5265 = vmatmul.mubr.bf16.gmra.mxu0 %v5758_v33  ;;  %5509 = vmatmul.mubr.bf16.gmra.mxu1 %v5759_v34 }
  0x8d   : > { %5268 = vmatprep.mubr.msk.bf16.mxu0 %vm5866_vm0, %v5865_v1  ;;  %5512 = vmatprep.mubr.msk.bf16.mxu1 %vm5866_vm0, %v5865_v1 }
  0x94   : > { %5269 = vmatmul.mubr.bf16.gmra.mxu0 %v5760_v35  ;;  %5513 = vmatmul.mubr.bf16.gmra.mxu1 %v5761_v36 }
  0x95   : > { %5272 = vmatprep.mubr.msk.bf16.mxu0 %vm5866_vm0, %v5865_v1  ;;  %5516 = vmatprep.mubr.msk.bf16.mxu1 %vm5866_vm0, %v5865_v1 }
  0x9c   : > { %5273 = vmatmul.mubr.bf16.gmra.mxu0 %v5762_v37  ;;  %5517 = vmatmul.mubr.bf16.gmra.mxu1 %v5763_v38 }
  0x9d   : > { %5276 = vmatprep.mubr.msk.bf16.mxu0 %vm5866_vm0, %v5865_v1  ;;  %5520 = vmatprep.mubr.msk.bf16.mxu1 %vm5866_vm0, %v5865_v1 }
  0xa4   : > { %5277 = vmatmul.mubr.bf16.gmra.mxu0 %v5764_v39  ;;  %5521 = vmatmul.mubr.bf16.gmra.mxu1 %v5765_v40 }
  0xa5   : > { %5280 = vmatprep.mubr.msk.bf16.mxu0 %vm5866_vm0, %v5865_v1  ;;  %5524 = vmatprep.mubr.msk.bf16.mxu1 %vm5866_vm0, %v5865_v1 }
  0xac   : > { %5281 = vmatmul.mubr.bf16.gmra.mxu0 %v5766_v41  ;;  %5525 = vmatmul.mubr.bf16.gmra.mxu1 %v5767_v42 }
  0xad   : > { %5284 = vmatprep.mubr.msk.bf16.mxu0 %vm5866_vm0, %v5865_v1  ;;  %5528 = vmatprep.mubr.msk.bf16.mxu1 %vm5866_vm0, %v5865_v1 }
  0xb4   : > { %5285 = vmatmul.mubr.bf16.gmra.mxu0 %v5768_v43  ;;  %5529 = vmatmul.mubr.bf16.gmra.mxu1 %v5769_v44 }
  0xb5   : > { %5288 = vmatprep.mubr.msk.bf16.mxu0 %vm5866_vm0, %v5865_v1  ;;  %5532 = vmatprep.mubr.msk.bf16.mxu1 %vm5866_vm0, %v5865_v1 }
  0xbc   : > { %5289 = vmatmul.mubr.bf16.gmra.mxu0 %v5770_v45  ;;  %5533 = vmatmul.mubr.bf16.gmra.mxu1 %v5771_v46  ;;  %v5788_v45 = vld [vmem:[%s5922_s24 + $0xd8] sm:$0xff]   ;;  %v5789_v46 = vld [vmem:[%s5922_s24 + $0x2c0] sm:$0xff]  }
  0xbd   : > { %5292 = vmatprep.mubr.msk.bf16.mxu0 %vm5866_vm0, %v5865_v1  ;;  %5536 = vmatprep.mubr.msk.bf16.mxu1 %vm5866_vm0, %v5865_v1 }
  0xc4   : > { %5293 = vmatmul.mubr.bf16.gmra.mxu0 %v5772_v47  ;;  %5537 = vmatmul.mubr.bf16.gmra.mxu1 %v5773_v48 }
  0xc5   : > { %5296 = vmatprep.mubr.msk.bf16.mxu0 %vm5866_vm0, %v5865_v1  ;;  %5540 = vmatprep.mubr.msk.bf16.mxu1 %vm5866_vm0, %v5865_v1 }
  0xcc   : > { %5297 = vmatmul.mubr.bf16.gmra.mxu0 %v5774_v49  ;;  %5541 = vmatmul.mubr.bf16.gmra.mxu1 %v5775_v50 }
  0xcd   : > { %5300 = vmatprep.mubr.msk.bf16.mxu0 %vm5866_vm0, %v5865_v1  ;;  %5544 = vmatprep.mubr.msk.bf16.mxu1 %vm5866_vm0, %v5865_v1 }
  0xd4   : > { %5301 = vmatmul.mubr.bf16.gmra.mxu0 %v5776_v51  ;;  %5545 = vmatmul.mubr.bf16.gmra.mxu1 %v5777_v52 }
  0xd5   : > { %5304 = vmatprep.mubr.msk.bf16.mxu0 %vm5866_vm0, %v5865_v1  ;;  %5548 = vmatprep.mubr.msk.bf16.mxu1 %vm5866_vm0, %v5865_v1 }
  0xdc   : > { %5305 = vmatmul.mubr.bf16.gmra.mxu0 %v5778_v53  ;;  %5549 = vmatmul.mubr.bf16.gmra.mxu1 %v5779_v54 }
  0xdd   : > { %5308 = vmatprep.mubr.msk.bf16.mxu0 %vm5866_vm0, %v5865_v1  ;;  %5552 = vmatprep.mubr.msk.bf16.mxu1 %vm5866_vm0, %v5865_v1 }
  0xe4   : > { %5309 = vmatmul.mubr.bf16.gmra.mxu0 %v5780_v55  ;;  %5553 = vmatmul.mubr.bf16.gmra.mxu1 %v5781_v56 }
  0xe5   : > { %5312 = vmatprep.mubr.msk.bf16.mxu0 %vm5866_vm0, %v5865_v1  ;;  %5556 = vmatprep.mubr.msk.bf16.mxu1 %vm5866_vm0, %v5865_v1 }
  0xec   : > { %v1248_v60 = vpop.f32.mrf.mxu0  ;;  %5313 = vmatmul.mubr.bf16.gmra.mxu0 %v5782_v57  ;;  %v1736_v61 = vpop.f32.mrf.mxu1  ;;  %5557 = vmatmul.mubr.bf16.gmra.mxu1 %v5783_v58 }
  0xed   : > { %v1737_v62 = vadd.f32 %v6098_v59, %v1736_v61  ;;  %5316 = vmatprep.mubr.msk.bf16.mxu0 %vm5866_vm0, %v5865_v1  ;;  %5560 = vmatprep.mubr.msk.bf16.mxu1 %vm5866_vm0, %v5865_v1  ;;  %v1249_v2 = vadd.f32 %v6098_v59, %v1248_v60 }
  0xee   : > { %v5218_v63 = vpop.f32.mrf.mxu0  ;;  %v5462_v0 = vpop.f32.mrf.mxu1 }
  0xef   : > { %v2337_v7 = vmax.f32 %v1737_v62, 0.0  ;;  %v2215_v12 = vmax.f32 %v1249_v2, 0.0 }
  0xf0   : > { %v1251_v3 = vpop.f32.mrf.mxu0  ;;  %v1739_v4 = vpop.f32.mrf.mxu1 }
  0xf1   : > { %v1252_v8 = vadd.f32 %v6098_v59, %v1251_v3  ;;  %v1740_v9 = vadd.f32 %v6098_v59, %v1739_v4  ;;  %v5790_v3 = vld [vmem:[%s5922_s24 + $0xe0] sm:$0xff]   ;;  %v5791_v4 = vld [vmem:[%s5922_s24 + $0x2c8] sm:$0xff]  }
  0xf2   : > { %v5219_v10 = vpop.f32.mrf.mxu0  ;;  %v5463_v11 = vpop.f32.mrf.mxu1 }
  0xf3   : > { %v2216_v13 = vmax.f32 %v1252_v8, 0.0  ;;  %v2338_v14 = vmax.f32 %v1740_v9, 0.0 }
  0xf4   : > { %v1256_v15 = vpop.f32.mrf.mxu0  ;;  %5317 = vmatmul.mubr.bf16.gmra.mxu0 %v5784_v5  ;;  %v1744_v16 = vpop.f32.mrf.mxu1  ;;  %5561 = vmatmul.mubr.bf16.gmra.mxu1 %v5785_v6 }
  0xf5   : > { %v4349_v17 = vpack.c.bf16 %v2216_v13, %v2215_v12  ;;  %v4654_v18 = vpack.c.bf16 %v2338_v14, %v2337_v7  ;;  %v1745_v19 = vadd.f32 %v6098_v59, %v1744_v16  ;;  %5320 = vmatprep.mubr.msk.bf16.mxu0 %vm5866_vm0, %v5865_v1  ;;  %5564 = vmatprep.mubr.msk.bf16.mxu1 %vm5866_vm0, %v5865_v1 }
  0xf6   : > { %v5222_v20 = vpop.f32.mrf.mxu0  ;;  %v5466_v21 = vpop.f32.mrf.mxu1  ;;  %v1257_v22 = vadd.f32 %v6098_v59, %v1256_v15 }
  0xf7   : > { %4350 = vst [vmem:[%s6115_s13] sm:$0xff] %v4349_v17   ;;  %5011 = vst [vmem:[%s6115_s13 + $0x1e8] sm:$0xff] %v4654_v18   ;;  %v2339_v27 = vmax.f32 %v1745_v19, 0.0 }
  0xf8   : > { %v1259_v23 = vpop.f32.mrf.mxu0  ;;  %v1747_v24 = vpop.f32.mrf.mxu1  ;;  %v2217_v32 = vmax.f32 %v1257_v22, 0.0 }
  0xf9   : > { %v1260_v28 = vadd.f32 %v6098_v59, %v1259_v23  ;;  %v1748_v29 = vadd.f32 %v6098_v59, %v1747_v24  ;;  %v5792_v23 = vld [vmem:[%s5922_s24 + $0xe8] sm:$0xff]   ;;  %v5793_v24 = vld [vmem:[%s5922_s24 + $0x2d0] sm:$0xff]  }
  0xfa   : > { %v5223_v30 = vpop.f32.mrf.mxu0  ;;  %v5467_v31 = vpop.f32.mrf.mxu1 }
  0xfb   : > { %v2218_v33 = vmax.f32 %v1260_v28, 0.0  ;;  %v2340_v34 = vmax.f32 %v1748_v29, 0.0 }
  0xfc   : > { %v1264_v35 = vpop.f32.mrf.mxu0  ;;  %5321 = vmatmul.mubr.bf16.gmra.mxu0 %v5786_v25  ;;  %v1752_v36 = vpop.f32.mrf.mxu1  ;;  %5565 = vmatmul.mubr.bf16.gmra.mxu1 %v5787_v26 }
  0xfd   : > { %v4354_v37 = vpack.c.bf16 %v2218_v33, %v2217_v32  ;;  %v4659_v38 = vpack.c.bf16 %v2340_v34, %v2339_v27  ;;  %v1753_v39 = vadd.f32 %v6098_v59, %v1752_v36  ;;  %5324 = vmatprep.mubr.msk.bf16.mxu0 %vm5866_vm0, %v5865_v1  ;;  %5568 = vmatprep.mubr.msk.bf16.mxu1 %vm5866_vm0, %v5865_v1 }
  0xfe   : > { %v5226_v40 = vpop.f32.mrf.mxu0  ;;  %v5470_v41 = vpop.f32.mrf.mxu1  ;;  %v1265_v42 = vadd.f32 %v6098_v59, %v1264_v35 }
  0xff   : > { %4951 = vst [vmem:[%s6115_s13 + $0x8] sm:$0xff] %v4354_v37   ;;  %5012 = vst [vmem:[%s6115_s13 + $0x1f0] sm:$0xff] %v4659_v38   ;;  %v2341_v47 = vmax.f32 %v1753_v39, 0.0 }
 0x100   : > { %v1267_v43 = vpop.f32.mrf.mxu0  ;;  %v1755_v44 = vpop.f32.mrf.mxu1  ;;  %v2219_v52 = vmax.f32 %v1265_v42, 0.0 }
 0x101   : > { %v1268_v48 = vadd.f32 %v6098_v59, %v1267_v43  ;;  %v1756_v49 = vadd.f32 %v6098_v59, %v1755_v44  ;;  %v5794_v43 = vld [vmem:[%s5922_s24 + $0xf0] sm:$0xff]   ;;  %v5795_v44 = vld [vmem:[%s5922_s24 + $0x2d8] sm:$0xff]  }
 0x102   : > { %v5227_v50 = vpop.f32.mrf.mxu0  ;;  %v5471_v51 = vpop.f32.mrf.mxu1 }
 0x103   : > { %v2220_v53 = vmax.f32 %v1268_v48, 0.0  ;;  %v2342_v54 = vmax.f32 %v1756_v49, 0.0 }
 0x104   : > { %v1272_v55 = vpop.f32.mrf.mxu0  ;;  %5325 = vmatmul.mubr.bf16.gmra.mxu0 %v5788_v45  ;;  %v1760_v56 = vpop.f32.mrf.mxu1  ;;  %5569 = vmatmul.mubr.bf16.gmra.mxu1 %v5789_v46 }
 0x105   : > { %v4359_v57 = vpack.c.bf16 %v2220_v53, %v2219_v52  ;;  %v4664_v58 = vpack.c.bf16 %v2342_v54, %v2341_v47  ;;  %v1761_v60 = vadd.f32 %v6098_v59, %v1760_v56  ;;  %5328 = vmatprep.mubr.msk.bf16.mxu0 %vm5866_vm0, %v5865_v1  ;;  %5572 = vmatprep.mubr.msk.bf16.mxu1 %vm5866_vm0, %v5865_v1 }
 0x106   : > { %v5230_v61 = vpop.f32.mrf.mxu0  ;;  %v5474_v62 = vpop.f32.mrf.mxu1  ;;  %v1273_v63 = vadd.f32 %v6098_v59, %v1272_v55 }
 0x107   : > { %4952 = vst [vmem:[%s6115_s13 + $0x10] sm:$0xff] %v4359_v57   ;;  %5013 = vst [vmem:[%s6115_s13 + $0x1f8] sm:$0xff] %v4664_v58   ;;  %v2343_v5 = vmax.f32 %v1761_v60, 0.0 }
 0x108   : > { %v1275_v0 = vpop.f32.mrf.mxu0  ;;  %v1763_v2 = vpop.f32.mrf.mxu1  ;;  %v2221_v10 = vmax.f32 %v1273_v63, 0.0 }
 0x109   : > { %v1276_v6 = vadd.f32 %v6098_v59, %v1275_v0  ;;  %v1764_v7 = vadd.f32 %v6098_v59, %v1763_v2  ;;  %v5796_v0 = vld [vmem:[%s5922_s24 + $0xf8] sm:$0xff]   ;;  %v5797_v2 = vld [vmem:[%s5922_s24 + $0x2e0] sm:$0xff]  }
 0x10a   : > { %v5231_v8 = vpop.f32.mrf.mxu0  ;;  %v5475_v9 = vpop.f32.mrf.mxu1 }
 0x10b   : > { %v2222_v11 = vmax.f32 %v1276_v6, 0.0  ;;  %v2344_v12 = vmax.f32 %v1764_v7, 0.0 }
 0x10c   : > { %v1280_v13 = vpop.f32.mrf.mxu0  ;;  %5329 = vmatmul.mubr.bf16.gmra.mxu0 %v5790_v3  ;;  %v1768_v14 = vpop.f32.mrf.mxu1  ;;  %5573 = vmatmul.mubr.bf16.gmra.mxu1 %v5791_v4 }
 0x10d   : > { %v4364_v15 = vpack.c.bf16 %v2222_v11, %v2221_v10  ;;  %v4669_v16 = vpack.c.bf16 %v2344_v12, %v2343_v5  ;;  %v1769_v17 = vadd.f32 %v6098_v59, %v1768_v14  ;;  %5332 = vmatprep.mubr.msk.bf16.mxu0 %vm5866_vm0, %v5865_v1  ;;  %5576 = vmatprep.mubr.msk.bf16.mxu1 %vm5866_vm0, %v5865_v1 }
 0x10e   : > { %v5234_v18 = vpop.f32.mrf.mxu0  ;;  %v5478_v19 = vpop.f32.mrf.mxu1  ;;  %v1281_v20 = vadd.f32 %v6098_v59, %v1280_v13 }
 0x10f   : > { %4953 = vst [vmem:[%s6115_s13 + $0x18] sm:$0xff] %v4364_v15   ;;  %5014 = vst [vmem:[%s6115_s13 + $0x200] sm:$0xff] %v4669_v16   ;;  %v2345_v25 = vmax.f32 %v1769_v17, 0.0 }
 0x110   : > { %v1283_v21 = vpop.f32.mrf.mxu0  ;;  %v1771_v22 = vpop.f32.mrf.mxu1  ;;  %v2223_v30 = vmax.f32 %v1281_v20, 0.0 }
 0x111   : > { %v1284_v26 = vadd.f32 %v6098_v59, %v1283_v21  ;;  %v1772_v27 = vadd.f32 %v6098_v59, %v1771_v22  ;;  %v5798_v21 = vld [vmem:[%s5922_s24 + $0x100] sm:$0xff]   ;;  %v5799_v22 = vld [vmem:[%s5922_s24 + $0x2e8] sm:$0xff]  }
 0x112   : > { %v5235_v28 = vpop.f32.mrf.mxu0  ;;  %v5479_v29 = vpop.f32.mrf.mxu1 }
 0x113   : > { %v2224_v31 = vmax.f32 %v1284_v26, 0.0  ;;  %v2346_v32 = vmax.f32 %v1772_v27, 0.0 }
 0x114   : > { %v1288_v33 = vpop.f32.mrf.mxu0  ;;  %5333 = vmatmul.mubr.bf16.gmra.mxu0 %v5792_v23  ;;  %v1776_v34 = vpop.f32.mrf.mxu1  ;;  %5577 = vmatmul.mubr.bf16.gmra.mxu1 %v5793_v24 }
 0x115   : > { %v4369_v35 = vpack.c.bf16 %v2224_v31, %v2223_v30  ;;  %v4674_v36 = vpack.c.bf16 %v2346_v32, %v2345_v25  ;;  %v1777_v37 = vadd.f32 %v6098_v59, %v1776_v34  ;;  %5336 = vmatprep.mubr.msk.bf16.mxu0 %vm5866_vm0, %v5865_v1  ;;  %5580 = vmatprep.mubr.msk.bf16.mxu1 %vm5866_vm0, %v5865_v1 }
 0x116   : > { %v5238_v38 = vpop.f32.mrf.mxu0  ;;  %v5482_v39 = vpop.f32.mrf.mxu1  ;;  %v1289_v40 = vadd.f32 %v6098_v59, %v1288_v33 }
 0x117   : > { %4954 = vst [vmem:[%s6115_s13 + $0x20] sm:$0xff] %v4369_v35   ;;  %5015 = vst [vmem:[%s6115_s13 + $0x208] sm:$0xff] %v4674_v36   ;;  %v2347_v45 = vmax.f32 %v1777_v37, 0.0 }
 0x118   : > { %v1291_v41 = vpop.f32.mrf.mxu0  ;;  %v1779_v42 = vpop.f32.mrf.mxu1  ;;  %v2225_v50 = vmax.f32 %v1289_v40, 0.0 }
 0x119   : > { %v1292_v46 = vadd.f32 %v6098_v59, %v1291_v41  ;;  %v1780_v47 = vadd.f32 %v6098_v59, %v1779_v42  ;;  %v5800_v41 = vld [vmem:[%s5922_s24 + $0x108] sm:$0xff]   ;;  %v5801_v42 = vld [vmem:[%s5922_s24 + $0x2f0] sm:$0xff]  }
 0x11a   : > { %v5239_v48 = vpop.f32.mrf.mxu0  ;;  %v5483_v49 = vpop.f32.mrf.mxu1 }
 0x11b   : > { %v2226_v51 = vmax.f32 %v1292_v46, 0.0  ;;  %v2348_v52 = vmax.f32 %v1780_v47, 0.0 }
 0x11c   : > { %v1296_v53 = vpop.f32.mrf.mxu0  ;;  %5337 = vmatmul.mubr.bf16.gmra.mxu0 %v5794_v43  ;;  %v1784_v54 = vpop.f32.mrf.mxu1  ;;  %5581 = vmatmul.mubr.bf16.gmra.mxu1 %v5795_v44 }
 0x11d   : > { %v4374_v55 = vpack.c.bf16 %v2226_v51, %v2225_v50  ;;  %v4679_v56 = vpack.c.bf16 %v2348_v52, %v2347_v45  ;;  %v1785_v57 = vadd.f32 %v6098_v59, %v1784_v54  ;;  %5340 = vmatprep.mubr.msk.bf16.mxu0 %vm5866_vm0, %v5865_v1  ;;  %5584 = vmatprep.mubr.msk.bf16.mxu1 %vm5866_vm0, %v5865_v1 }
 0x11e   : > { %v5242_v58 = vpop.f32.mrf.mxu0  ;;  %v5486_v60 = vpop.f32.mrf.mxu1  ;;  %v1297_v61 = vadd.f32 %v6098_v59, %v1296_v53 }
 0x11f   : > { %4955 = vst [vmem:[%s6115_s13 + $0x28] sm:$0xff] %v4374_v55   ;;  %5016 = vst [vmem:[%s6115_s13 + $0x210] sm:$0xff] %v4679_v56   ;;  %v2349_v3 = vmax.f32 %v1785_v57, 0.0 }
 0x120   : > { %v1299_v62 = vpop.f32.mrf.mxu0  ;;  %v1787_v63 = vpop.f32.mrf.mxu1  ;;  %v2227_v8 = vmax.f32 %v1297_v61, 0.0 }
 0x121   : > { %v1300_v4 = vadd.f32 %v6098_v59, %v1299_v62  ;;  %v1788_v5 = vadd.f32 %v6098_v59, %v1787_v63  ;;  %v5802_v62 = vld [vmem:[%s5922_s24 + $0x110] sm:$0xff]   ;;  %v5803_v63 = vld [vmem:[%s5922_s24 + $0x2f8] sm:$0xff]  }
 0x122   : > { %v5243_v6 = vpop.f32.mrf.mxu0  ;;  %v5487_v7 = vpop.f32.mrf.mxu1 }
 0x123   : > { %v2228_v9 = vmax.f32 %v1300_v4, 0.0  ;;  %v2350_v10 = vmax.f32 %v1788_v5, 0.0 }
 0x124   : > { %v1304_v11 = vpop.f32.mrf.mxu0  ;;  %5341 = vmatmul.mubr.bf16.gmra.mxu0 %v5796_v0  ;;  %v1792_v12 = vpop.f32.mrf.mxu1  ;;  %5585 = vmatmul.mubr.bf16.gmra.mxu1 %v5797_v2 }
 0x125   : > { %v4379_v13 = vpack.c.bf16 %v2228_v9, %v2227_v8  ;;  %v4684_v14 = vpack.c.bf16 %v2350_v10, %v2349_v3  ;;  %v1793_v15 = vadd.f32 %v6098_v59, %v1792_v12  ;;  %5344 = vmatprep.mubr.msk.bf16.mxu0 %vm5866_vm0, %v5865_v1  ;;  %5588 = vmatprep.mubr.msk.bf16.mxu1 %vm5866_vm0, %v5865_v1 }
 0x126   : > { %v5246_v16 = vpop.f32.mrf.mxu0  ;;  %v5490_v17 = vpop.f32.mrf.mxu1  ;;  %v1305_v18 = vadd.f32 %v6098_v59, %v1304_v11 }
 0x127   : > { %4956 = vst [vmem:[%s6115_s13 + $0x30] sm:$0xff] %v4379_v13   ;;  %5017 = vst [vmem:[%s6115_s13 + $0x218] sm:$0xff] %v4684_v14   ;;  %v2351_v23 = vmax.f32 %v1793_v15, 0.0 }
 0x128   : > { %v1307_v19 = vpop.f32.mrf.mxu0  ;;  %v1795_v20 = vpop.f32.mrf.mxu1  ;;  %v2229_v28 = vmax.f32 %v1305_v18, 0.0 }
 0x129   : > { %v1308_v24 = vadd.f32 %v6098_v59, %v1307_v19  ;;  %v1796_v25 = vadd.f32 %v6098_v59, %v1795_v20  ;;  %v5804_v19 = vld [vmem:[%s5922_s24 + $0x118] sm:$0xff]   ;;  %v5805_v20 = vld [vmem:[%s5922_s24 + $0x300] sm:$0xff]  }
 0x12a   : > { %v5247_v26 = vpop.f32.mrf.mxu0  ;;  %v5491_v27 = vpop.f32.mrf.mxu1 }
 0x12b   : > { %v2230_v29 = vmax.f32 %v1308_v24, 0.0  ;;  %v2352_v30 = vmax.f32 %v1796_v25, 0.0 }
 0x12c   : > { %v1312_v31 = vpop.f32.mrf.mxu0  ;;  %5345 = vmatmul.mubr.bf16.gmra.mxu0 %v5798_v21  ;;  %v1800_v32 = vpop.f32.mrf.mxu1  ;;  %5589 = vmatmul.mubr.bf16.gmra.mxu1 %v5799_v22 }
 0x12d   : > { %v4384_v33 = vpack.c.bf16 %v2230_v29, %v2229_v28  ;;  %v4689_v34 = vpack.c.bf16 %v2352_v30, %v2351_v23  ;;  %v1801_v35 = vadd.f32 %v6098_v59, %v1800_v32  ;;  %5348 = vmatprep.mubr.msk.bf16.mxu0 %vm5866_vm0, %v5865_v1  ;;  %5592 = vmatprep.mubr.msk.bf16.mxu1 %vm5866_vm0, %v5865_v1 }
 0x12e   : > { %v5250_v36 = vpop.f32.mrf.mxu0  ;;  %v5494_v37 = vpop.f32.mrf.mxu1  ;;  %v1313_v38 = vadd.f32 %v6098_v59, %v1312_v31 }
 0x12f   : > { %4957 = vst [vmem:[%s6115_s13 + $0x38] sm:$0xff] %v4384_v33   ;;  %5018 = vst [vmem:[%s6115_s13 + $0x220] sm:$0xff] %v4689_v34   ;;  %v2353_v43 = vmax.f32 %v1801_v35, 0.0 }
 0x130   : > { %v1315_v39 = vpop.f32.mrf.mxu0  ;;  %v1803_v40 = vpop.f32.mrf.mxu1  ;;  %v2231_v48 = vmax.f32 %v1313_v38, 0.0 }
 0x131   : > { %v1316_v44 = vadd.f32 %v6098_v59, %v1315_v39  ;;  %v1804_v45 = vadd.f32 %v6098_v59, %v1803_v40  ;;  %v5806_v39 = vld [vmem:[%s5922_s24 + $0x120] sm:$0xff]   ;;  %v5807_v40 = vld [vmem:[%s5922_s24 + $0x308] sm:$0xff]  }
 0x132   : > { %v5251_v46 = vpop.f32.mrf.mxu0  ;;  %v5495_v47 = vpop.f32.mrf.mxu1 }
 0x133   : > { %v2232_v49 = vmax.f32 %v1316_v44, 0.0  ;;  %v2354_v50 = vmax.f32 %v1804_v45, 0.0 }
 0x134   : > { %v1320_v51 = vpop.f32.mrf.mxu0  ;;  %5349 = vmatmul.mubr.bf16.gmra.mxu0 %v5800_v41  ;;  %v1808_v52 = vpop.f32.mrf.mxu1  ;;  %5593 = vmatmul.mubr.bf16.gmra.mxu1 %v5801_v42 }
 0x135   : > { %v4389_v53 = vpack.c.bf16 %v2232_v49, %v2231_v48  ;;  %v4694_v54 = vpack.c.bf16 %v2354_v50, %v2353_v43  ;;  %v1809_v55 = vadd.f32 %v6098_v59, %v1808_v52  ;;  %5352 = vmatprep.mubr.msk.bf16.mxu0 %vm5866_vm0, %v5865_v1  ;;  %5596 = vmatprep.mubr.msk.bf16.mxu1 %vm5866_vm0, %v5865_v1 }
 0x136   : > { %v5254_v56 = vpop.f32.mrf.mxu0  ;;  %v5498_v57 = vpop.f32.mrf.mxu1  ;;  %v1321_v58 = vadd.f32 %v6098_v59, %v1320_v51 }
 0x137   : > { %4958 = vst [vmem:[%s6115_s13 + $0x40] sm:$0xff] %v4389_v53   ;;  %5019 = vst [vmem:[%s6115_s13 + $0x228] sm:$0xff] %v4694_v54   ;;  %v2355_v0 = vmax.f32 %v1809_v55, 0.0 }
 0x138   : > { %v1323_v60 = vpop.f32.mrf.mxu0  ;;  %v1811_v61 = vpop.f32.mrf.mxu1  ;;  %v2233_v6 = vmax.f32 %v1321_v58, 0.0 }
 0x139   : > { %v1324_v2 = vadd.f32 %v6098_v59, %v1323_v60  ;;  %v1812_v3 = vadd.f32 %v6098_v59, %v1811_v61  ;;  %v5808_v60 = vld [vmem:[%s5922_s24 + $0x128] sm:$0xff]   ;;  %v5809_v61 = vld [vmem:[%s5922_s24 + $0x310] sm:$0xff]  }
 0x13a   : > { %v5255_v4 = vpop.f32.mrf.mxu0  ;;  %v5499_v5 = vpop.f32.mrf.mxu1 }
 0x13b   : > { %v2234_v7 = vmax.f32 %v1324_v2, 0.0  ;;  %v2356_v8 = vmax.f32 %v1812_v3, 0.0 }
 0x13c   : > { %v1328_v9 = vpop.f32.mrf.mxu0  ;;  %5353 = vmatmul.mubr.bf16.gmra.mxu0 %v5802_v62  ;;  %v1816_v10 = vpop.f32.mrf.mxu1  ;;  %5597 = vmatmul.mubr.bf16.gmra.mxu1 %v5803_v63 }
 0x13d   : > { %v4394_v11 = vpack.c.bf16 %v2234_v7, %v2233_v6  ;;  %v4699_v12 = vpack.c.bf16 %v2356_v8, %v2355_v0  ;;  %v1817_v13 = vadd.f32 %v6098_v59, %v1816_v10  ;;  %5356 = vmatprep.mubr.msk.bf16.mxu0 %vm5866_vm0, %v5865_v1  ;;  %5600 = vmatprep.mubr.msk.bf16.mxu1 %vm5866_vm0, %v5865_v1 }
 0x13e   : > { %v5258_v14 = vpop.f32.mrf.mxu0  ;;  %v5502_v15 = vpop.f32.mrf.mxu1  ;;  %v1329_v16 = vadd.f32 %v6098_v59, %v1328_v9 }
 0x13f   : > { %4959 = vst [vmem:[%s6115_s13 + $0x48] sm:$0xff] %v4394_v11   ;;  %5020 = vst [vmem:[%s6115_s13 + $0x230] sm:$0xff] %v4699_v12   ;;  %v2357_v21 = vmax.f32 %v1817_v13, 0.0 }
 0x140   : > { %v1331_v17 = vpop.f32.mrf.mxu0  ;;  %v1819_v18 = vpop.f32.mrf.mxu1  ;;  %v2235_v26 = vmax.f32 %v1329_v16, 0.0 }
 0x141   : > { %v1332_v22 = vadd.f32 %v6098_v59, %v1331_v17  ;;  %v1820_v23 = vadd.f32 %v6098_v59, %v1819_v18  ;;  %v5810_v17 = vld [vmem:[%s5922_s24 + $0x130] sm:$0xff]   ;;  %v5811_v18 = vld [vmem:[%s5922_s24 + $0x318] sm:$0xff]  }
 0x142   : > { %v5259_v24 = vpop.f32.mrf.mxu0  ;;  %v5503_v25 = vpop.f32.mrf.mxu1 }
 0x143   : > { %v2236_v27 = vmax.f32 %v1332_v22, 0.0  ;;  %v2358_v28 = vmax.f32 %v1820_v23, 0.0 }
 0x144   : > { %v1336_v29 = vpop.f32.mrf.mxu0  ;;  %5357 = vmatmul.mubr.bf16.gmra.mxu0 %v5804_v19  ;;  %v1824_v30 = vpop.f32.mrf.mxu1  ;;  %5601 = vmatmul.mubr.bf16.gmra.mxu1 %v5805_v20 }
 0x145   : > { %v4399_v31 = vpack.c.bf16 %v2236_v27, %v2235_v26  ;;  %v4704_v32 = vpack.c.bf16 %v2358_v28, %v2357_v21  ;;  %v1825_v33 = vadd.f32 %v6098_v59, %v1824_v30  ;;  %5360 = vmatprep.mubr.msk.bf16.mxu0 %vm5866_vm0, %v5865_v1  ;;  %5604 = vmatprep.mubr.msk.bf16.mxu1 %vm5866_vm0, %v5865_v1 }
 0x146   : > { %v5262_v34 = vpop.f32.mrf.mxu0  ;;  %v5506_v35 = vpop.f32.mrf.mxu1  ;;  %v1337_v36 = vadd.f32 %v6098_v59, %v1336_v29 }
 0x147   : > { %4960 = vst [vmem:[%s6115_s13 + $0x50] sm:$0xff] %v4399_v31   ;;  %5021 = vst [vmem:[%s6115_s13 + $0x238] sm:$0xff] %v4704_v32   ;;  %v2359_v41 = vmax.f32 %v1825_v33, 0.0 }
 0x148   : > { %v1339_v37 = vpop.f32.mrf.mxu0  ;;  %v1827_v38 = vpop.f32.mrf.mxu1  ;;  %v2237_v46 = vmax.f32 %v1337_v36, 0.0 }
 0x149   : > { %v1340_v42 = vadd.f32 %v6098_v59, %v1339_v37  ;;  %v1828_v43 = vadd.f32 %v6098_v59, %v1827_v38  ;;  %v5812_v37 = vld [vmem:[%s5922_s24 + $0x138] sm:$0xff]   ;;  %v5813_v38 = vld [vmem:[%s5922_s24 + $0x320] sm:$0xff]  }
 0x14a   : > { %v5263_v44 = vpop.f32.mrf.mxu0  ;;  %v5507_v45 = vpop.f32.mrf.mxu1 }
 0x14b   : > { %v2238_v47 = vmax.f32 %v1340_v42, 0.0  ;;  %v2360_v48 = vmax.f32 %v1828_v43, 0.0 }
 0x14c   : > { %v1344_v49 = vpop.f32.mrf.mxu0  ;;  %5361 = vmatmul.mubr.bf16.gmra.mxu0 %v5806_v39  ;;  %v1832_v50 = vpop.f32.mrf.mxu1  ;;  %5605 = vmatmul.mubr.bf16.gmra.mxu1 %v5807_v40 }
 0x14d   : > { %v4404_v51 = vpack.c.bf16 %v2238_v47, %v2237_v46  ;;  %v4709_v52 = vpack.c.bf16 %v2360_v48, %v2359_v41  ;;  %v1833_v53 = vadd.f32 %v6098_v59, %v1832_v50  ;;  %5364 = vmatprep.mubr.msk.bf16.mxu0 %vm5866_vm0, %v5865_v1  ;;  %5608 = vmatprep.mubr.msk.bf16.mxu1 %vm5866_vm0, %v5865_v1 }
 0x14e   : > { %v5266_v54 = vpop.f32.mrf.mxu0  ;;  %v5510_v55 = vpop.f32.mrf.mxu1  ;;  %v1345_v56 = vadd.f32 %v6098_v59, %v1344_v49 }
 0x14f   : > { %4961 = vst [vmem:[%s6115_s13 + $0x58] sm:$0xff] %v4404_v51   ;;  %5022 = vst [vmem:[%s6115_s13 + $0x240] sm:$0xff] %v4709_v52   ;;  %v2361_v62 = vmax.f32 %v1833_v53, 0.0 }
 0x150   : > { %v1347_v57 = vpop.f32.mrf.mxu0  ;;  %v1835_v58 = vpop.f32.mrf.mxu1  ;;  %v2239_v4 = vmax.f32 %v1345_v56, 0.0 }
 0x151   : > { %v1348_v63 = vadd.f32 %v6098_v59, %v1347_v57  ;;  %v1836_v0 = vadd.f32 %v6098_v59, %v1835_v58  ;;  %v5814_v57 = vld [vmem:[%s5922_s24 + $0x140] sm:$0xff]   ;;  %v5815_v58 = vld [vmem:[%s5922_s24 + $0x328] sm:$0xff]  }
 0x152   : > { %v5267_v2 = vpop.f32.mrf.mxu0  ;;  %v5511_v3 = vpop.f32.mrf.mxu1 }
 0x153   : > { %v2240_v5 = vmax.f32 %v1348_v63, 0.0  ;;  %v2362_v6 = vmax.f32 %v1836_v0, 0.0 }
 0x154   : > { %v1352_v7 = vpop.f32.mrf.mxu0  ;;  %5365 = vmatmul.mubr.bf16.gmra.mxu0 %v5808_v60  ;;  %v1840_v8 = vpop.f32.mrf.mxu1  ;;  %5609 = vmatmul.mubr.bf16.gmra.mxu1 %v5809_v61 }
 0x155   : > { %v4409_v9 = vpack.c.bf16 %v2240_v5, %v2239_v4  ;;  %v4714_v10 = vpack.c.bf16 %v2362_v6, %v2361_v62  ;;  %v1841_v11 = vadd.f32 %v6098_v59, %v1840_v8  ;;  %5368 = vmatprep.mubr.msk.bf16.mxu0 %vm5866_vm0, %v5865_v1  ;;  %5612 = vmatprep.mubr.msk.bf16.mxu1 %vm5866_vm0, %v5865_v1 }
 0x156   : > { %v5270_v12 = vpop.f32.mrf.mxu0  ;;  %v5514_v13 = vpop.f32.mrf.mxu1  ;;  %v1353_v14 = vadd.f32 %v6098_v59, %v1352_v7 }
 0x157   : > { %4962 = vst [vmem:[%s6115_s13 + $0x60] sm:$0xff] %v4409_v9   ;;  %5023 = vst [vmem:[%s6115_s13 + $0x248] sm:$0xff] %v4714_v10   ;;  %v2363_v19 = vmax.f32 %v1841_v11, 0.0 }
 0x158   : > { %v1355_v15 = vpop.f32.mrf.mxu0  ;;  %v1843_v16 = vpop.f32.mrf.mxu1  ;;  %v2241_v24 = vmax.f32 %v1353_v14, 0.0 }
 0x159   : > { %v1356_v20 = vadd.f32 %v6098_v59, %v1355_v15  ;;  %v1844_v21 = vadd.f32 %v6098_v59, %v1843_v16  ;;  %v5816_v15 = vld [vmem:[%s5922_s24 + $0x148] sm:$0xff]   ;;  %v5817_v16 = vld [vmem:[%s5922_s24 + $0x330] sm:$0xff]  }
 0x15a   : > { %v5271_v22 = vpop.f32.mrf.mxu0  ;;  %v5515_v23 = vpop.f32.mrf.mxu1 }
 0x15b   : > { %v2242_v25 = vmax.f32 %v1356_v20, 0.0  ;;  %v2364_v26 = vmax.f32 %v1844_v21, 0.0 }
 0x15c   : > { %v1360_v27 = vpop.f32.mrf.mxu0  ;;  %5369 = vmatmul.mubr.bf16.gmra.mxu0 %v5810_v17  ;;  %v1848_v28 = vpop.f32.mrf.mxu1  ;;  %5613 = vmatmul.mubr.bf16.gmra.mxu1 %v5811_v18 }
 0x15d   : > { %v4414_v29 = vpack.c.bf16 %v2242_v25, %v2241_v24  ;;  %v4719_v30 = vpack.c.bf16 %v2364_v26, %v2363_v19  ;;  %v1849_v31 = vadd.f32 %v6098_v59, %v1848_v28  ;;  %5372 = vmatprep.mubr.msk.bf16.mxu0 %vm5866_vm0, %v5865_v1  ;;  %5616 = vmatprep.mubr.msk.bf16.mxu1 %vm5866_vm0, %v5865_v1 }
 0x15e   : > { %v5274_v32 = vpop.f32.mrf.mxu0  ;;  %v5518_v33 = vpop.f32.mrf.mxu1  ;;  %v1361_v34 = vadd.f32 %v6098_v59, %v1360_v27 }
 0x15f   : > { %4963 = vst [vmem:[%s6115_s13 + $0x68] sm:$0xff] %v4414_v29   ;;  %5024 = vst [vmem:[%s6115_s13 + $0x250] sm:$0xff] %v4719_v30   ;;  %v2365_v39 = vmax.f32 %v1849_v31, 0.0 }
 0x160   : > { %v1363_v35 = vpop.f32.mrf.mxu0  ;;  %v1851_v36 = vpop.f32.mrf.mxu1  ;;  %v2243_v44 = vmax.f32 %v1361_v34, 0.0 }
 0x161   : > { %v1364_v40 = vadd.f32 %v6098_v59, %v1363_v35  ;;  %v1852_v41 = vadd.f32 %v6098_v59, %v1851_v36  ;;  %v5818_v35 = vld [vmem:[%s5922_s24 + $0x150] sm:$0xff]   ;;  %v5819_v36 = vld [vmem:[%s5922_s24 + $0x338] sm:$0xff]  }
 0x162   : > { %v5275_v42 = vpop.f32.mrf.mxu0  ;;  %v5519_v43 = vpop.f32.mrf.mxu1 }
 0x163   : > { %v2244_v45 = vmax.f32 %v1364_v40, 0.0  ;;  %v2366_v46 = vmax.f32 %v1852_v41, 0.0 }
 0x164   : > { %v1368_v47 = vpop.f32.mrf.mxu0  ;;  %5373 = vmatmul.mubr.bf16.gmra.mxu0 %v5812_v37  ;;  %v1856_v48 = vpop.f32.mrf.mxu1  ;;  %5617 = vmatmul.mubr.bf16.gmra.mxu1 %v5813_v38 }
 0x165   : > { %v4419_v49 = vpack.c.bf16 %v2244_v45, %v2243_v44  ;;  %v4724_v50 = vpack.c.bf16 %v2366_v46, %v2365_v39  ;;  %v1857_v51 = vadd.f32 %v6098_v59, %v1856_v48  ;;  %5376 = vmatprep.mubr.msk.bf16.mxu0 %vm5866_vm0, %v5865_v1  ;;  %5620 = vmatprep.mubr.msk.bf16.mxu1 %vm5866_vm0, %v5865_v1 }
 0x166   : > { %v5278_v52 = vpop.f32.mrf.mxu0  ;;  %v5522_v53 = vpop.f32.mrf.mxu1  ;;  %v1369_v54 = vadd.f32 %v6098_v59, %v1368_v47 }
 0x167   : > { %4964 = vst [vmem:[%s6115_s13 + $0x70] sm:$0xff] %v4419_v49   ;;  %5025 = vst [vmem:[%s6115_s13 + $0x258] sm:$0xff] %v4724_v50   ;;  %v2367_v60 = vmax.f32 %v1857_v51, 0.0 }
 0x168   : > { %v1371_v55 = vpop.f32.mrf.mxu0  ;;  %v1859_v56 = vpop.f32.mrf.mxu1  ;;  %v2245_v2 = vmax.f32 %v1369_v54, 0.0 }
 0x169   : > { %v1372_v61 = vadd.f32 %v6098_v59, %v1371_v55  ;;  %v1860_v62 = vadd.f32 %v6098_v59, %v1859_v56  ;;  %v5820_v55 = vld [vmem:[%s5922_s24 + $0x158] sm:$0xff]   ;;  %v5821_v56 = vld [vmem:[%s5922_s24 + $0x340] sm:$0xff]  }
 0x16a   : > { %v5279_v63 = vpop.f32.mrf.mxu0  ;;  %v5523_v0 = vpop.f32.mrf.mxu1 }
 0x16b   : > { %v2246_v3 = vmax.f32 %v1372_v61, 0.0  ;;  %v2368_v4 = vmax.f32 %v1860_v62, 0.0 }
 0x16c   : > { %v1376_v5 = vpop.f32.mrf.mxu0  ;;  %5377 = vmatmul.mubr.bf16.gmra.mxu0 %v5814_v57  ;;  %v1864_v6 = vpop.f32.mrf.mxu1  ;;  %5621 = vmatmul.mubr.bf16.gmra.mxu1 %v5815_v58 }
 0x16d   : > { %v4424_v7 = vpack.c.bf16 %v2246_v3, %v2245_v2  ;;  %v4729_v8 = vpack.c.bf16 %v2368_v4, %v2367_v60  ;;  %v1865_v9 = vadd.f32 %v6098_v59, %v1864_v6  ;;  %5380 = vmatprep.mubr.msk.bf16.mxu0 %vm5866_vm0, %v5865_v1  ;;  %5624 = vmatprep.mubr.msk.bf16.mxu1 %vm5866_vm0, %v5865_v1 }
 0x16e   : > { %v5282_v10 = vpop.f32.mrf.mxu0  ;;  %v5526_v11 = vpop.f32.mrf.mxu1  ;;  %v1377_v12 = vadd.f32 %v6098_v59, %v1376_v5 }
 0x16f   : > { %4965 = vst [vmem:[%s6115_s13 + $0x78] sm:$0xff] %v4424_v7   ;;  %5026 = vst [vmem:[%s6115_s13 + $0x260] sm:$0xff] %v4729_v8   ;;  %v2369_v17 = vmax.f32 %v1865_v9, 0.0 }
 0x170   : > { %v1379_v13 = vpop.f32.mrf.mxu0  ;;  %v1867_v14 = vpop.f32.mrf.mxu1  ;;  %v2247_v22 = vmax.f32 %v1377_v12, 0.0 }
 0x171   : > { %v1380_v18 = vadd.f32 %v6098_v59, %v1379_v13  ;;  %v1868_v19 = vadd.f32 %v6098_v59, %v1867_v14  ;;  %v5822_v13 = vld [vmem:[%s5922_s24 + $0x160] sm:$0xff]   ;;  %v5823_v14 = vld [vmem:[%s5922_s24 + $0x348] sm:$0xff]  }
 0x172   : > { %v5283_v20 = vpop.f32.mrf.mxu0  ;;  %v5527_v21 = vpop.f32.mrf.mxu1 }
 0x173   : > { %v2248_v23 = vmax.f32 %v1380_v18, 0.0  ;;  %v2370_v24 = vmax.f32 %v1868_v19, 0.0 }
 0x174   : > { %v1384_v25 = vpop.f32.mrf.mxu0  ;;  %5381 = vmatmul.mubr.bf16.gmra.mxu0 %v5816_v15  ;;  %v1872_v26 = vpop.f32.mrf.mxu1  ;;  %5625 = vmatmul.mubr.bf16.gmra.mxu1 %v5817_v16 }
 0x175   : > { %v4429_v27 = vpack.c.bf16 %v2248_v23, %v2247_v22  ;;  %v4734_v28 = vpack.c.bf16 %v2370_v24, %v2369_v17  ;;  %v1873_v29 = vadd.f32 %v6098_v59, %v1872_v26  ;;  %5384 = vmatprep.mubr.msk.bf16.mxu0 %vm5866_vm0, %v5865_v1  ;;  %5628 = vmatprep.mubr.msk.bf16.mxu1 %vm5866_vm0, %v5865_v1  ;;  %v6347_v17 = vld [vmem:[%s6698_s2] ss:$0 sm:$0xff] }
 0x176   : > { %v5286_v30 = vpop.f32.mrf.mxu0  ;;  %v5530_v31 = vpop.f32.mrf.mxu1  ;;  %v1385_v32 = vadd.f32 %v6098_v59, %v1384_v25 }
 0x177   : > { %4966 = vst [vmem:[%s6115_s13 + $0x80] sm:$0xff] %v4429_v27   ;;  %5027 = vst [vmem:[%s6115_s13 + $0x268] sm:$0xff] %v4734_v28   ;;  %v2371_v37 = vmax.f32 %v1873_v29, 0.0 }
 0x178   : > { %v1387_v33 = vpop.f32.mrf.mxu0  ;;  %v1875_v34 = vpop.f32.mrf.mxu1  ;;  %v2249_v42 = vmax.f32 %v1385_v32, 0.0 }
 0x179   : > { %v1388_v38 = vadd.f32 %v6098_v59, %v1387_v33  ;;  %v1876_v39 = vadd.f32 %v6098_v59, %v1875_v34  ;;  %v5824_v33 = vld [vmem:[%s5922_s24 + $0x168] sm:$0xff]   ;;  %v5825_v34 = vld [vmem:[%s5922_s24 + $0x350] sm:$0xff]  }
 0x17a   : > { %v5287_v40 = vpop.f32.mrf.mxu0  ;;  %v5531_v41 = vpop.f32.mrf.mxu1 }
 0x17b   : > { %v2250_v43 = vmax.f32 %v1388_v38, 0.0  ;;  %v2372_v44 = vmax.f32 %v1876_v39, 0.0 }
 0x17c   : > { %v1392_v45 = vpop.f32.mrf.mxu0  ;;  %5385 = vmatmul.mubr.bf16.gmra.mxu0 %v5818_v35  ;;  %v1880_v46 = vpop.f32.mrf.mxu1  ;;  %5629 = vmatmul.mubr.bf16.gmra.mxu1 %v5819_v36 }
 0x17d   : > { %v4434_v47 = vpack.c.bf16 %v2250_v43, %v2249_v42  ;;  %v4739_v48 = vpack.c.bf16 %v2372_v44, %v2371_v37  ;;  %v1881_v49 = vadd.f32 %v6098_v59, %v1880_v46  ;;  %5388 = vmatprep.mubr.msk.bf16.mxu0 %vm5866_vm0, %v5865_v1  ;;  %5632 = vmatprep.mubr.msk.bf16.mxu1 %vm5866_vm0, %v5865_v1 }
 0x17e   : > { %v5290_v50 = vpop.f32.mrf.mxu0  ;;  %v5534_v51 = vpop.f32.mrf.mxu1  ;;  %v1393_v52 = vadd.f32 %v6098_v59, %v1392_v45 }
 0x17f   : > { %4967 = vst [vmem:[%s6115_s13 + $0x88] sm:$0xff] %v4434_v47   ;;  %5028 = vst [vmem:[%s6115_s13 + $0x270] sm:$0xff] %v4739_v48   ;;  %v2373_v57 = vmax.f32 %v1881_v49, 0.0 }
 0x180   : > { %v1395_v53 = vpop.f32.mrf.mxu0  ;;  %v1883_v54 = vpop.f32.mrf.mxu1  ;;  %v2251_v63 = vmax.f32 %v1393_v52, 0.0 }
 0x181   : > { %v1396_v58 = vadd.f32 %v6098_v59, %v1395_v53  ;;  %v1884_v60 = vadd.f32 %v6098_v59, %v1883_v54  ;;  %v5826_v53 = vld [vmem:[%s5922_s24 + $0x170] sm:$0xff]   ;;  %v5827_v54 = vld [vmem:[%s5922_s24 + $0x358] sm:$0xff]  }
 0x182   : > { %v5291_v61 = vpop.f32.mrf.mxu0  ;;  %v5535_v62 = vpop.f32.mrf.mxu1 }
 0x183   : > { %v2252_v0 = vmax.f32 %v1396_v58, 0.0  ;;  %v2374_v2 = vmax.f32 %v1884_v60, 0.0 }
 0x184   : > { %v1400_v3 = vpop.f32.mrf.mxu0  ;;  %5389 = vmatmul.mubr.bf16.gmra.mxu0 %v5820_v55  ;;  %v1888_v4 = vpop.f32.mrf.mxu1  ;;  %5633 = vmatmul.mubr.bf16.gmra.mxu1 %v5821_v56 }
 0x185   : > { %v4439_v5 = vpack.c.bf16 %v2252_v0, %v2251_v63  ;;  %v4744_v6 = vpack.c.bf16 %v2374_v2, %v2373_v57  ;;  %v1889_v7 = vadd.f32 %v6098_v59, %v1888_v4  ;;  %5392 = vmatprep.mubr.msk.bf16.mxu0 %vm5866_vm0, %v5865_v1  ;;  %5636 = vmatprep.mubr.msk.bf16.mxu1 %vm5866_vm0, %v5865_v1 }
 0x186   : > { %v5294_v8 = vpop.f32.mrf.mxu0  ;;  %v5538_v9 = vpop.f32.mrf.mxu1  ;;  %v1401_v10 = vadd.f32 %v6098_v59, %v1400_v3 }
 0x187   : > { %4968 = vst [vmem:[%s6115_s13 + $0x90] sm:$0xff] %v4439_v5   ;;  %5029 = vst [vmem:[%s6115_s13 + $0x278] sm:$0xff] %v4744_v6   ;;  %v2375_v15 = vmax.f32 %v1889_v7, 0.0 }
 0x188   : > { %v1403_v11 = vpop.f32.mrf.mxu0  ;;  %v1891_v12 = vpop.f32.mrf.mxu1  ;;  %v2253_v21 = vmax.f32 %v1401_v10, 0.0 }
 0x189   : > { %v1404_v16 = vadd.f32 %v6098_v59, %v1403_v11  ;;  %v1892_v18 = vadd.f32 %v6347_v17, %v1891_v12  ;;  %v5828_v11 = vld [vmem:[%s5922_s24 + $0x178] sm:$0xff]   ;;  %v5829_v12 = vld [vmem:[%s5922_s24 + $0x360] sm:$0xff]  }
 0x18a   : > { %v5295_v19 = vpop.f32.mrf.mxu0  ;;  %v5539_v20 = vpop.f32.mrf.mxu1 }
 0x18b   : > { %v2254_v22 = vmax.f32 %v1404_v16, 0.0  ;;  %v2376_v23 = vmax.f32 %v1892_v18, 0.0 }
 0x18c   : > { %v1408_v24 = vpop.f32.mrf.mxu0  ;;  %5393 = vmatmul.mubr.bf16.gmra.mxu0 %v5822_v13  ;;  %v1896_v25 = vpop.f32.mrf.mxu1  ;;  %5637 = vmatmul.mubr.bf16.gmra.mxu1 %v5823_v14 }
 0x18d   : > { %v4444_v59 = vpack.c.bf16 %v2254_v22, %v2253_v21  ;;  %v4749_v26 = vpack.c.bf16 %v2376_v23, %v2375_v15  ;;  %v1897_v27 = vadd.f32 %v6347_v17, %v1896_v25  ;;  %5396 = vmatprep.mubr.msk.bf16.mxu0 %vm5866_vm0, %v5865_v1  ;;  %5640 = vmatprep.mubr.msk.bf16.mxu1 %vm5866_vm0, %v5865_v1 }
 0x18e   : > { %v5298_v28 = vpop.f32.mrf.mxu0  ;;  %v5542_v29 = vpop.f32.mrf.mxu1  ;;  %v1409_v30 = vadd.f32 %v6347_v17, %v1408_v24 }
 0x18f   : > { %4969 = vst [vmem:[%s6115_s13 + $0x98] sm:$0xff] %v4444_v59   ;;  %5030 = vst [vmem:[%s6115_s13 + $0x280] sm:$0xff] %v4749_v26   ;;  %v2377_v35 = vmax.f32 %v1897_v27, 0.0 }
 0x190   : > { %v1411_v31 = vpop.f32.mrf.mxu0  ;;  %v1899_v32 = vpop.f32.mrf.mxu1  ;;  %v2255_v40 = vmax.f32 %v1409_v30, 0.0 }
 0x191   : > { %v1412_v36 = vadd.f32 %v6347_v17, %v1411_v31  ;;  %v1900_v37 = vadd.f32 %v6347_v17, %v1899_v32  ;;  %v5830_v31 = vld [vmem:[%s5922_s24 + $0x180] sm:$0xff]   ;;  %v5831_v32 = vld [vmem:[%s5922_s24 + $0x368] sm:$0xff]  }
 0x192   : > { %v5299_v38 = vpop.f32.mrf.mxu0  ;;  %v5543_v39 = vpop.f32.mrf.mxu1 }
 0x193   : > { %v2256_v41 = vmax.f32 %v1412_v36, 0.0  ;;  %v2378_v42 = vmax.f32 %v1900_v37, 0.0 }
 0x194   : > { %v1416_v43 = vpop.f32.mrf.mxu0  ;;  %5397 = vmatmul.mubr.bf16.gmra.mxu0 %v5824_v33  ;;  %v1904_v44 = vpop.f32.mrf.mxu1  ;;  %5641 = vmatmul.mubr.bf16.gmra.mxu1 %v5825_v34 }
 0x195   : > { %v4449_v45 = vpack.c.bf16 %v2256_v41, %v2255_v40  ;;  %v4754_v46 = vpack.c.bf16 %v2378_v42, %v2377_v35  ;;  %v1905_v47 = vadd.f32 %v6347_v17, %v1904_v44  ;;  %5400 = vmatprep.mubr.msk.bf16.mxu0 %vm5866_vm0, %v5865_v1  ;;  %5644 = vmatprep.mubr.msk.bf16.mxu1 %vm5866_vm0, %v5865_v1 }
 0x196   : > { %v5302_v48 = vpop.f32.mrf.mxu0  ;;  %v5546_v49 = vpop.f32.mrf.mxu1  ;;  %v1417_v50 = vadd.f32 %v6347_v17, %v1416_v43 }
 0x197   : > { %4970 = vst [vmem:[%s6115_s13 + $0xa0] sm:$0xff] %v4449_v45   ;;  %5031 = vst [vmem:[%s6115_s13 + $0x288] sm:$0xff] %v4754_v46   ;;  %v2379_v55 = vmax.f32 %v1905_v47, 0.0 }
 0x198   : > { %v1419_v51 = vpop.f32.mrf.mxu0  ;;  %v1907_v52 = vpop.f32.mrf.mxu1  ;;  %v2257_v61 = vmax.f32 %v1417_v50, 0.0 }
 0x199   : > { %v1420_v56 = vadd.f32 %v6347_v17, %v1419_v51  ;;  %v1908_v57 = vadd.f32 %v6347_v17, %v1907_v52  ;;  %v5832_v51 = vld [vmem:[%s5922_s24 + $0x188] sm:$0xff]   ;;  %v5833_v52 = vld [vmem:[%s5922_s24 + $0x370] sm:$0xff]  }
 0x19a   : > { %v5303_v58 = vpop.f32.mrf.mxu0  ;;  %v5547_v60 = vpop.f32.mrf.mxu1 }
 0x19b   : > { %v2258_v62 = vmax.f32 %v1420_v56, 0.0  ;;  %v2380_v63 = vmax.f32 %v1908_v57, 0.0 }
 0x19c   : > { %v1424_v0 = vpop.f32.mrf.mxu0  ;;  %5401 = vmatmul.mubr.bf16.gmra.mxu0 %v5826_v53  ;;  %v1912_v2 = vpop.f32.mrf.mxu1  ;;  %5645 = vmatmul.mubr.bf16.gmra.mxu1 %v5827_v54 }
 0x19d   : > { %v4454_v3 = vpack.c.bf16 %v2258_v62, %v2257_v61  ;;  %v4759_v4 = vpack.c.bf16 %v2380_v63, %v2379_v55  ;;  %v1913_v5 = vadd.f32 %v6347_v17, %v1912_v2  ;;  %5404 = vmatprep.mubr.msk.bf16.mxu0 %vm5866_vm0, %v5865_v1  ;;  %5648 = vmatprep.mubr.msk.bf16.mxu1 %vm5866_vm0, %v5865_v1 }
 0x19e   : > { %v5306_v6 = vpop.f32.mrf.mxu0  ;;  %v5550_v7 = vpop.f32.mrf.mxu1  ;;  %v1425_v8 = vadd.f32 %v6347_v17, %v1424_v0 }
 0x19f   : > { %4971 = vst [vmem:[%s6115_s13 + $0xa8] sm:$0xff] %v4454_v3   ;;  %5032 = vst [vmem:[%s6115_s13 + $0x290] sm:$0xff] %v4759_v4   ;;  %v2381_v13 = vmax.f32 %v1913_v5, 0.0 }
 0x1a0   : > { %v1427_v9 = vpop.f32.mrf.mxu0  ;;  %v1915_v10 = vpop.f32.mrf.mxu1  ;;  %v2259_v19 = vmax.f32 %v1425_v8, 0.0 }
 0x1a1   : > { %v1428_v14 = vadd.f32 %v6347_v17, %v1427_v9  ;;  %v1916_v15 = vadd.f32 %v6347_v17, %v1915_v10  ;;  %v5834_v9 = vld [vmem:[%s5922_s24 + $0x190] sm:$0xff]   ;;  %v5835_v10 = vld [vmem:[%s5922_s24 + $0x378] sm:$0xff]  }
 0x1a2   : > { %v5307_v16 = vpop.f32.mrf.mxu0  ;;  %v5551_v18 = vpop.f32.mrf.mxu1 }
 0x1a3   : > { %v2260_v20 = vmax.f32 %v1428_v14, 0.0  ;;  %v2382_v21 = vmax.f32 %v1916_v15, 0.0 }
 0x1a4   : > { %v1432_v22 = vpop.f32.mrf.mxu0  ;;  %5405 = vmatmul.mubr.bf16.gmra.mxu0 %v5828_v11  ;;  %v1920_v23 = vpop.f32.mrf.mxu1  ;;  %5649 = vmatmul.mubr.bf16.gmra.mxu1 %v5829_v12 }
 0x1a5   : > { %v4459_v24 = vpack.c.bf16 %v2260_v20, %v2259_v19  ;;  %v4764_v25 = vpack.c.bf16 %v2382_v21, %v2381_v13  ;;  %v1921_v59 = vadd.f32 %v6347_v17, %v1920_v23  ;;  %5408 = vmatprep.mubr.msk.bf16.mxu0 %vm5866_vm0, %v5865_v1  ;;  %5652 = vmatprep.mubr.msk.bf16.mxu1 %vm5866_vm0, %v5865_v1 }
 0x1a6   : > { %v5310_v26 = vpop.f32.mrf.mxu0  ;;  %v5554_v27 = vpop.f32.mrf.mxu1  ;;  %v1433_v28 = vadd.f32 %v6347_v17, %v1432_v22 }
 0x1a7   : > { %4972 = vst [vmem:[%s6115_s13 + $0xb0] sm:$0xff] %v4459_v24   ;;  %5033 = vst [vmem:[%s6115_s13 + $0x298] sm:$0xff] %v4764_v25   ;;  %v2383_v33 = vmax.f32 %v1921_v59, 0.0 }
 0x1a8   : > { %v1435_v29 = vpop.f32.mrf.mxu0  ;;  %v1923_v30 = vpop.f32.mrf.mxu1  ;;  %v2261_v38 = vmax.f32 %v1433_v28, 0.0 }
 0x1a9   : > { %v1436_v34 = vadd.f32 %v6347_v17, %v1435_v29  ;;  %v1924_v35 = vadd.f32 %v6347_v17, %v1923_v30  ;;  %v5836_v29 = vld [vmem:[%s5922_s24 + $0x198] sm:$0xff]   ;;  %v5837_v30 = vld [vmem:[%s5922_s24 + $0x380] sm:$0xff]  }
 0x1aa   : > { %v5311_v36 = vpop.f32.mrf.mxu0  ;;  %v5555_v37 = vpop.f32.mrf.mxu1 }
 0x1ab   : > { %v2262_v39 = vmax.f32 %v1436_v34, 0.0  ;;  %v2384_v40 = vmax.f32 %v1924_v35, 0.0 }
 0x1ac   : > { %v1440_v41 = vpop.f32.mrf.mxu0  ;;  %5409 = vmatmul.mubr.bf16.gmra.mxu0 %v5830_v31  ;;  %v1928_v42 = vpop.f32.mrf.mxu1  ;;  %5653 = vmatmul.mubr.bf16.gmra.mxu1 %v5831_v32 }
 0x1ad   : > { %v4464_v43 = vpack.c.bf16 %v2262_v39, %v2261_v38  ;;  %v4769_v44 = vpack.c.bf16 %v2384_v40, %v2383_v33  ;;  %v1929_v45 = vadd.f32 %v6347_v17, %v1928_v42  ;;  %5412 = vmatprep.mubr.msk.bf16.mxu0 %vm5866_vm0, %v5865_v1  ;;  %5656 = vmatprep.mubr.msk.bf16.mxu1 %vm5866_vm0, %v5865_v1 }
 0x1ae   : > { %v5314_v46 = vpop.f32.mrf.mxu0  ;;  %v5558_v47 = vpop.f32.mrf.mxu1  ;;  %v1441_v48 = vadd.f32 %v6347_v17, %v1440_v41 }
 0x1af   : > { %4973 = vst [vmem:[%s6115_s13 + $0xb8] sm:$0xff] %v4464_v43   ;;  %5034 = vst [vmem:[%s6115_s13 + $0x2a0] sm:$0xff] %v4769_v44   ;;  %v2385_v53 = vmax.f32 %v1929_v45, 0.0 }
 0x1b0   : > { %v1443_v49 = vpop.f32.mrf.mxu0  ;;  %v1931_v50 = vpop.f32.mrf.mxu1  ;;  %v2263_v58 = vmax.f32 %v1441_v48, 0.0 }
 0x1b1   : > { %v1444_v54 = vadd.f32 %v6347_v17, %v1443_v49  ;;  %v1932_v55 = vadd.f32 %v6347_v17, %v1931_v50  ;;  %v5838_v49 = vld [vmem:[%s5922_s24 + $0x1a0] sm:$0xff]   ;;  %v5839_v50 = vld [vmem:[%s5922_s24 + $0x388] sm:$0xff]  }
 0x1b2   : > { %v5315_v56 = vpop.f32.mrf.mxu0  ;;  %v5559_v57 = vpop.f32.mrf.mxu1 }
 0x1b3   : > { %v2264_v60 = vmax.f32 %v1444_v54, 0.0  ;;  %v2386_v61 = vmax.f32 %v1932_v55, 0.0 }
 0x1b4   : > { %v1448_v62 = vpop.f32.mrf.mxu0  ;;  %5413 = vmatmul.mubr.bf16.gmra.mxu0 %v5832_v51  ;;  %v1936_v63 = vpop.f32.mrf.mxu1  ;;  %5657 = vmatmul.mubr.bf16.gmra.mxu1 %v5833_v52 }
 0x1b5   : > { %v4469_v0 = vpack.c.bf16 %v2264_v60, %v2263_v58  ;;  %v4774_v2 = vpack.c.bf16 %v2386_v61, %v2385_v53  ;;  %v1937_v3 = vadd.f32 %v6347_v17, %v1936_v63  ;;  %5416 = vmatprep.mubr.msk.bf16.mxu0 %vm5866_vm0, %v5865_v1  ;;  %5660 = vmatprep.mubr.msk.bf16.mxu1 %vm5866_vm0, %v5865_v1 }
 0x1b6   : > { %v5318_v4 = vpop.f32.mrf.mxu0  ;;  %v5562_v5 = vpop.f32.mrf.mxu1  ;;  %v1449_v6 = vadd.f32 %v6347_v17, %v1448_v62 }
 0x1b7   : > { %4974 = vst [vmem:[%s6115_s13 + $0xc0] sm:$0xff] %v4469_v0   ;;  %5035 = vst [vmem:[%s6115_s13 + $0x2a8] sm:$0xff] %v4774_v2   ;;  %v2387_v11 = vmax.f32 %v1937_v3, 0.0 }
 0x1b8   : > { %v1451_v7 = vpop.f32.mrf.mxu0  ;;  %v1939_v8 = vpop.f32.mrf.mxu1  ;;  %v2265_v16 = vmax.f32 %v1449_v6, 0.0 }
 0x1b9   : > { %v1452_v12 = vadd.f32 %v6347_v17, %v1451_v7  ;;  %v1940_v13 = vadd.f32 %v6347_v17, %v1939_v8  ;;  %v5840_v7 = vld [vmem:[%s5922_s24 + $0x1a8] sm:$0xff]   ;;  %v5841_v8 = vld [vmem:[%s5922_s24 + $0x390] sm:$0xff]  }
 0x1ba   : > { %v5319_v14 = vpop.f32.mrf.mxu0  ;;  %v5563_v15 = vpop.f32.mrf.mxu1 }
 0x1bb   : > { %v2266_v18 = vmax.f32 %v1452_v12, 0.0  ;;  %v2388_v19 = vmax.f32 %v1940_v13, 0.0 }
 0x1bc   : > { %v1456_v20 = vpop.f32.mrf.mxu0  ;;  %5417 = vmatmul.mubr.bf16.gmra.mxu0 %v5834_v9  ;;  %v1944_v21 = vpop.f32.mrf.mxu1  ;;  %5661 = vmatmul.mubr.bf16.gmra.mxu1 %v5835_v10 }
 0x1bd   : > { %v4474_v22 = vpack.c.bf16 %v2266_v18, %v2265_v16  ;;  %v4779_v23 = vpack.c.bf16 %v2388_v19, %v2387_v11  ;;  %v1945_v24 = vadd.f32 %v6347_v17, %v1944_v21  ;;  %5420 = vmatprep.mubr.msk.bf16.mxu0 %vm5866_vm0, %v5865_v1  ;;  %5664 = vmatprep.mubr.msk.bf16.mxu1 %vm5866_vm0, %v5865_v1 }
 0x1be   : > { %v5322_v25 = vpop.f32.mrf.mxu0  ;;  %v5566_v59 = vpop.f32.mrf.mxu1  ;;  %v1457_v26 = vadd.f32 %v6347_v17, %v1456_v20 }
 0x1bf   : > { %4975 = vst [vmem:[%s6115_s13 + $0xc8] sm:$0xff] %v4474_v22   ;;  %5036 = vst [vmem:[%s6115_s13 + $0x2b0] sm:$0xff] %v4779_v23   ;;  %v2389_v31 = vmax.f32 %v1945_v24, 0.0 }
 0x1c0   : > { %v1459_v27 = vpop.f32.mrf.mxu0  ;;  %v1947_v28 = vpop.f32.mrf.mxu1  ;;  %v2267_v36 = vmax.f32 %v1457_v26, 0.0 }
 0x1c1   : > { %v1460_v32 = vadd.f32 %v6347_v17, %v1459_v27  ;;  %v1948_v33 = vadd.f32 %v6347_v17, %v1947_v28  ;;  %v5842_v27 = vld [vmem:[%s5922_s24 + $0x1b0] sm:$0xff]   ;;  %v5843_v28 = vld [vmem:[%s5922_s24 + $0x398] sm:$0xff]  }
 0x1c2   : > { %v5323_v34 = vpop.f32.mrf.mxu0  ;;  %v5567_v35 = vpop.f32.mrf.mxu1 }
 0x1c3   : > { %v2268_v37 = vmax.f32 %v1460_v32, 0.0  ;;  %v2390_v38 = vmax.f32 %v1948_v33, 0.0 }
 0x1c4   : > { %v1464_v39 = vpop.f32.mrf.mxu0  ;;  %5421 = vmatmul.mubr.bf16.gmra.mxu0 %v5836_v29  ;;  %v1952_v40 = vpop.f32.mrf.mxu1  ;;  %5665 = vmatmul.mubr.bf16.gmra.mxu1 %v5837_v30 }
 0x1c5   : > { %v4479_v41 = vpack.c.bf16 %v2268_v37, %v2267_v36  ;;  %v4784_v42 = vpack.c.bf16 %v2390_v38, %v2389_v31  ;;  %v1953_v43 = vadd.f32 %v6347_v17, %v1952_v40  ;;  %5424 = vmatprep.mubr.msk.bf16.mxu0 %vm5866_vm0, %v5865_v1  ;;  %5668 = vmatprep.mubr.msk.bf16.mxu1 %vm5866_vm0, %v5865_v1 }
 0x1c6   : > { %v5326_v44 = vpop.f32.mrf.mxu0  ;;  %v5570_v45 = vpop.f32.mrf.mxu1  ;;  %v1465_v46 = vadd.f32 %v6347_v17, %v1464_v39 }
 0x1c7   : > { %4976 = vst [vmem:[%s6115_s13 + $0xd0] sm:$0xff] %v4479_v41   ;;  %5037 = vst [vmem:[%s6115_s13 + $0x2b8] sm:$0xff] %v4784_v42   ;;  %v2391_v51 = vmax.f32 %v1953_v43, 0.0 }
 0x1c8   : > { %v1467_v47 = vpop.f32.mrf.mxu0  ;;  %v1955_v48 = vpop.f32.mrf.mxu1  ;;  %v2269_v56 = vmax.f32 %v1465_v46, 0.0 }
 0x1c9   : > { %v1468_v52 = vadd.f32 %v6347_v17, %v1467_v47  ;;  %v1956_v53 = vadd.f32 %v6347_v17, %v1955_v48  ;;  %v5844_v47 = vld [vmem:[%s5922_s24 + $0x1b8] sm:$0xff]   ;;  %v5845_v48 = vld [vmem:[%s5922_s24 + $0x3a0] sm:$0xff]  }
 0x1ca   : > { %v5327_v54 = vpop.f32.mrf.mxu0  ;;  %v5571_v55 = vpop.f32.mrf.mxu1 }
 0x1cb   : > { %v2270_v57 = vmax.f32 %v1468_v52, 0.0  ;;  %v2392_v58 = vmax.f32 %v1956_v53, 0.0 }
 0x1cc   : > { %v1472_v60 = vpop.f32.mrf.mxu0  ;;  %5425 = vmatmul.mubr.bf16.gmra.mxu0 %v5838_v49  ;;  %v1960_v61 = vpop.f32.mrf.mxu1  ;;  %5669 = vmatmul.mubr.bf16.gmra.mxu1 %v5839_v50 }
 0x1cd   : > { %v4484_v62 = vpack.c.bf16 %v2270_v57, %v2269_v56  ;;  %v4789_v63 = vpack.c.bf16 %v2392_v58, %v2391_v51  ;;  %v1961_v0 = vadd.f32 %v6347_v17, %v1960_v61  ;;  %5428 = vmatprep.mubr.msk.bf16.mxu0 %vm5866_vm0, %v5865_v1  ;;  %5672 = vmatprep.mubr.msk.bf16.mxu1 %vm5866_vm0, %v5865_v1 }
 0x1ce   : > { %v5330_v2 = vpop.f32.mrf.mxu0  ;;  %v5574_v3 = vpop.f32.mrf.mxu1  ;;  %v1473_v4 = vadd.f32 %v6347_v17, %v1472_v60 }
 0x1cf   : > { %4977 = vst [vmem:[%s6115_s13 + $0xd8] sm:$0xff] %v4484_v62   ;;  %5038 = vst [vmem:[%s6115_s13 + $0x2c0] sm:$0xff] %v4789_v63   ;;  %v2393_v9 = vmax.f32 %v1961_v0, 0.0 }
 0x1d0   : > { %v1475_v5 = vpop.f32.mrf.mxu0  ;;  %v1963_v6 = vpop.f32.mrf.mxu1  ;;  %v2271_v14 = vmax.f32 %v1473_v4, 0.0 }
 0x1d1   : > { %v1476_v10 = vadd.f32 %v6347_v17, %v1475_v5  ;;  %v1964_v11 = vadd.f32 %v6347_v17, %v1963_v6  ;;  %v5846_v5 = vld [vmem:[%s5922_s24 + $0x1c0] sm:$0xff]   ;;  %v5847_v6 = vld [vmem:[%s5922_s24 + $0x3a8] sm:$0xff]  }
 0x1d2   : > { %v5331_v12 = vpop.f32.mrf.mxu0  ;;  %v5575_v13 = vpop.f32.mrf.mxu1 }
 0x1d3   : > { %v2272_v15 = vmax.f32 %v1476_v10, 0.0  ;;  %v2394_v16 = vmax.f32 %v1964_v11, 0.0 }
 0x1d4   : > { %v1480_v18 = vpop.f32.mrf.mxu0  ;;  %5429 = vmatmul.mubr.bf16.gmra.mxu0 %v5840_v7  ;;  %v1968_v19 = vpop.f32.mrf.mxu1  ;;  %5673 = vmatmul.mubr.bf16.gmra.mxu1 %v5841_v8 }
 0x1d5   : > { %v4489_v20 = vpack.c.bf16 %v2272_v15, %v2271_v14  ;;  %v4794_v21 = vpack.c.bf16 %v2394_v16, %v2393_v9  ;;  %v1969_v22 = vadd.f32 %v6347_v17, %v1968_v19  ;;  %5432 = vmatprep.mubr.msk.bf16.mxu0 %vm5866_vm0, %v5865_v1  ;;  %5676 = vmatprep.mubr.msk.bf16.mxu1 %vm5866_vm0, %v5865_v1 }
 0x1d6   : > { %v5334_v23 = vpop.f32.mrf.mxu0  ;;  %v5578_v24 = vpop.f32.mrf.mxu1  ;;  %v1481_v25 = vadd.f32 %v6347_v17, %v1480_v18 }
 0x1d7   : > { %4978 = vst [vmem:[%s6115_s13 + $0xe0] sm:$0xff] %v4489_v20   ;;  %5039 = vst [vmem:[%s6115_s13 + $0x2c8] sm:$0xff] %v4794_v21   ;;  %v2395_v29 = vmax.f32 %v1969_v22, 0.0 }
 0x1d8   : > { %v1483_v59 = vpop.f32.mrf.mxu0  ;;  %v1971_v26 = vpop.f32.mrf.mxu1  ;;  %v2273_v34 = vmax.f32 %v1481_v25, 0.0 }
 0x1d9   : > { %v1484_v30 = vadd.f32 %v6347_v17, %v1483_v59  ;;  %v1972_v31 = vadd.f32 %v6347_v17, %v1971_v26  ;;  %v5848_v59 = vld [vmem:[%s5922_s24 + $0x1c8] sm:$0xff]   ;;  %v5849_v26 = vld [vmem:[%s5922_s24 + $0x3b0] sm:$0xff]  }
 0x1da   : > { %v5335_v32 = vpop.f32.mrf.mxu0  ;;  %v5579_v33 = vpop.f32.mrf.mxu1 }
 0x1db   : > { %v2274_v35 = vmax.f32 %v1484_v30, 0.0  ;;  %v2396_v36 = vmax.f32 %v1972_v31, 0.0 }
 0x1dc   : > { %v1488_v37 = vpop.f32.mrf.mxu0  ;;  %5433 = vmatmul.mubr.bf16.gmra.mxu0 %v5842_v27  ;;  %v1976_v38 = vpop.f32.mrf.mxu1  ;;  %5677 = vmatmul.mubr.bf16.gmra.mxu1 %v5843_v28 }
 0x1dd   : > { %v4494_v39 = vpack.c.bf16 %v2274_v35, %v2273_v34  ;;  %v4799_v40 = vpack.c.bf16 %v2396_v36, %v2395_v29  ;;  %v1977_v41 = vadd.f32 %v6347_v17, %v1976_v38  ;;  %5436 = vmatprep.mubr.msk.bf16.mxu0 %vm5866_vm0, %v5865_v1  ;;  %5680 = vmatprep.mubr.msk.bf16.mxu1 %vm5866_vm0, %v5865_v1 }
 0x1de   : > { %v5338_v42 = vpop.f32.mrf.mxu0  ;;  %v5582_v43 = vpop.f32.mrf.mxu1  ;;  %v1489_v44 = vadd.f32 %v6347_v17, %v1488_v37 }
 0x1df   : > { %4979 = vst [vmem:[%s6115_s13 + $0xe8] sm:$0xff] %v4494_v39   ;;  %5040 = vst [vmem:[%s6115_s13 + $0x2d0] sm:$0xff] %v4799_v40   ;;  %v2397_v49 = vmax.f32 %v1977_v41, 0.0 }
 0x1e0   : > { %v1491_v45 = vpop.f32.mrf.mxu0  ;;  %v1979_v46 = vpop.f32.mrf.mxu1  ;;  %v2275_v54 = vmax.f32 %v1489_v44, 0.0 }
 0x1e1   : > { %v1492_v50 = vadd.f32 %v6347_v17, %v1491_v45  ;;  %v1980_v51 = vadd.f32 %v6347_v17, %v1979_v46  ;;  %v5850_v45 = vld [vmem:[%s5922_s24 + $0x1d0] sm:$0xff]   ;;  %v5851_v46 = vld [vmem:[%s5922_s24 + $0x3b8] sm:$0xff]  }
 0x1e2   : > { %v5339_v52 = vpop.f32.mrf.mxu0  ;;  %v5583_v53 = vpop.f32.mrf.mxu1 }
 0x1e3   : > { %v2276_v55 = vmax.f32 %v1492_v50, 0.0  ;;  %v2398_v56 = vmax.f32 %v1980_v51, 0.0 }
 0x1e4   : > { %v1496_v57 = vpop.f32.mrf.mxu0  ;;  %5437 = vmatmul.mubr.bf16.gmra.mxu0 %v5844_v47  ;;  %v1984_v58 = vpop.f32.mrf.mxu1  ;;  %5681 = vmatmul.mubr.bf16.gmra.mxu1 %v5845_v48 }
 0x1e5   : > { %v4499_v60 = vpack.c.bf16 %v2276_v55, %v2275_v54  ;;  %v4804_v61 = vpack.c.bf16 %v2398_v56, %v2397_v49  ;;  %v1985_v62 = vadd.f32 %v6347_v17, %v1984_v58  ;;  %5440 = vmatprep.mubr.msk.bf16.mxu0 %vm5866_vm0, %v5865_v1  ;;  %5684 = vmatprep.mubr.msk.bf16.mxu1 %vm5866_vm0, %v5865_v1 }
 0x1e6   : > { %v5342_v63 = vpop.f32.mrf.mxu0  ;;  %v5586_v0 = vpop.f32.mrf.mxu1  ;;  %v1497_v2 = vadd.f32 %v6347_v17, %v1496_v57 }
 0x1e7   : > { %4980 = vst [vmem:[%s6115_s13 + $0xf0] sm:$0xff] %v4499_v60   ;;  %5041 = vst [vmem:[%s6115_s13 + $0x2d8] sm:$0xff] %v4804_v61   ;;  %v2399_v7 = vmax.f32 %v1985_v62, 0.0 }
 0x1e8   : > { %v1499_v3 = vpop.f32.mrf.mxu0  ;;  %v1987_v4 = vpop.f32.mrf.mxu1  ;;  %v2277_v12 = vmax.f32 %v1497_v2, 0.0 }
 0x1e9   : > { %v1500_v8 = vadd.f32 %v6347_v17, %v1499_v3  ;;  %v1988_v9 = vadd.f32 %v6347_v17, %v1987_v4  ;;  %v5852_v3 = vld [vmem:[%s5922_s24 + $0x1d8] sm:$0xff]   ;;  %v5853_v4 = vld [vmem:[%s5922_s24 + $0x3c0] sm:$0xff]  }
 0x1ea   : > { %v5343_v10 = vpop.f32.mrf.mxu0  ;;  %v5587_v11 = vpop.f32.mrf.mxu1 }
 0x1eb   : > { %v2278_v13 = vmax.f32 %v1500_v8, 0.0  ;;  %v2400_v14 = vmax.f32 %v1988_v9, 0.0 }
 0x1ec   : > { %v1504_v15 = vpop.f32.mrf.mxu0  ;;  %5441 = vmatmul.mubr.bf16.gmra.mxu0 %v5846_v5  ;;  %v1992_v16 = vpop.f32.mrf.mxu1  ;;  %5685 = vmatmul.mubr.bf16.gmra.mxu1 %v5847_v6 }
 0x1ed   : > { %v4504_v18 = vpack.c.bf16 %v2278_v13, %v2277_v12  ;;  %v4809_v19 = vpack.c.bf16 %v2400_v14, %v2399_v7  ;;  %v1993_v20 = vadd.f32 %v6347_v17, %v1992_v16  ;;  %5444 = vmatprep.mubr.msk.bf16.mxu0 %vm5866_vm0, %v5865_v1  ;;  %5688 = vmatprep.mubr.msk.bf16.mxu1 %vm5866_vm0, %v5865_v1 }
 0x1ee   : > { %v5346_v21 = vpop.f32.mrf.mxu0  ;;  %v5590_v22 = vpop.f32.mrf.mxu1  ;;  %v1505_v23 = vadd.f32 %v6347_v17, %v1504_v15 }
 0x1ef   : > { %4981 = vst [vmem:[%s6115_s13 + $0xf8] sm:$0xff] %v4504_v18   ;;  %5042 = vst [vmem:[%s6115_s13 + $0x2e0] sm:$0xff] %v4809_v19   ;;  %v2401_v27 = vmax.f32 %v1993_v20, 0.0 }
 0x1f0   : > { %v1507_v24 = vpop.f32.mrf.mxu0  ;;  %v1995_v25 = vpop.f32.mrf.mxu1  ;;  %v2279_v32 = vmax.f32 %v1505_v23, 0.0 }
 0x1f1   : > { %v1508_v28 = vadd.f32 %v6347_v17, %v1507_v24  ;;  %v1996_v29 = vadd.f32 %v6347_v17, %v1995_v25  ;;  %v5854_v24 = vld [vmem:[%s5922_s24 + $0x1e0] sm:$0xff]  }
 0x1f2   : > { %v5347_v30 = vpop.f32.mrf.mxu0  ;;  %v5591_v31 = vpop.f32.mrf.mxu1 }
 0x1f3   : > { %v2280_v33 = vmax.f32 %v1508_v28, 0.0  ;;  %v2402_v34 = vmax.f32 %v1996_v29, 0.0 }
 0x1f4   : > { %v1512_v35 = vpop.f32.mrf.mxu0  ;;  %5445 = vmatmul.mubr.bf16.gmra.mxu0 %v5848_v59  ;;  %v2000_v36 = vpop.f32.mrf.mxu1  ;;  %5689 = vmatmul.mubr.bf16.gmra.mxu1 %v5849_v26 }
 0x1f5   : > { %v4509_v37 = vpack.c.bf16 %v2280_v33, %v2279_v32  ;;  %v4814_v38 = vpack.c.bf16 %v2402_v34, %v2401_v27  ;;  %v2001_v39 = vadd.f32 %v6347_v17, %v2000_v36  ;;  %5448 = vmatprep.mubr.msk.bf16.mxu0 %vm5866_vm0, %v5865_v1  ;;  %5692 = vmatprep.mubr.msk.bf16.mxu1 %vm5866_vm0, %v5865_v1 }
 0x1f6   : > { %v5350_v40 = vpop.f32.mrf.mxu0  ;;  %v5594_v41 = vpop.f32.mrf.mxu1  ;;  %v1513_v42 = vadd.f32 %v6347_v17, %v1512_v35 }
 0x1f7   : > { %4982 = vst [vmem:[%s6115_s13 + $0x100] sm:$0xff] %v4509_v37   ;;  %5043 = vst [vmem:[%s6115_s13 + $0x2e8] sm:$0xff] %v4814_v38   ;;  %v2403_v47 = vmax.f32 %v2001_v39, 0.0 }
 0x1f8   : > { %v1515_v43 = vpop.f32.mrf.mxu0  ;;  %v2003_v44 = vpop.f32.mrf.mxu1  ;;  %v2281_v52 = vmax.f32 %v1513_v42, 0.0 }
 0x1f9   : > { %v1516_v48 = vadd.f32 %v6347_v17, %v1515_v43  ;;  %v2004_v49 = vadd.f32 %v6347_v17, %v2003_v44 }
 0x1fa   : > { %v5351_v50 = vpop.f32.mrf.mxu0  ;;  %v5595_v51 = vpop.f32.mrf.mxu1 }
 0x1fb   : > { %v2282_v53 = vmax.f32 %v1516_v48, 0.0  ;;  %v2404_v54 = vmax.f32 %v2004_v49, 0.0 }
 0x1fc   : > { %v1520_v55 = vpop.f32.mrf.mxu0  ;;  %5449 = vmatmul.mubr.bf16.gmra.mxu0 %v5850_v45  ;;  %v2008_v56 = vpop.f32.mrf.mxu1  ;;  %5693 = vmatmul.mubr.bf16.gmra.mxu1 %v5851_v46 }
 0x1fd   : > { %v4514_v57 = vpack.c.bf16 %v2282_v53, %v2281_v52  ;;  %v4819_v58 = vpack.c.bf16 %v2404_v54, %v2403_v47  ;;  %v2009_v60 = vadd.f32 %v6347_v17, %v2008_v56  ;;  %5452 = vmatprep.mubr.msk.bf16.mxu0 %vm5866_vm0, %v5865_v1  ;;  %5696 = vmatprep.mubr.msk.bf16.mxu1 %vm5866_vm0, %v5865_v1 }
 0x1fe   : > { %v5354_v61 = vpop.f32.mrf.mxu0  ;;  %v5598_v62 = vpop.f32.mrf.mxu1  ;;  %v1521_v63 = vadd.f32 %v6347_v17, %v1520_v55 }
 0x1ff   : > { %4983 = vst [vmem:[%s6115_s13 + $0x108] sm:$0xff] %v4514_v57   ;;  %5044 = vst [vmem:[%s6115_s13 + $0x2f0] sm:$0xff] %v4819_v58   ;;  %v2405_v5 = vmax.f32 %v2009_v60, 0.0 }
 0x200   : > { %v1523_v0 = vpop.f32.mrf.mxu0  ;;  %v2011_v2 = vpop.f32.mrf.mxu1  ;;  %v2283_v10 = vmax.f32 %v1521_v63, 0.0 }
 0x201   : > { %v1524_v6 = vadd.f32 %v6347_v17, %v1523_v0  ;;  %v2012_v7 = vadd.f32 %v6347_v17, %v2011_v2 }
 0x202   : > { %v5355_v8 = vpop.f32.mrf.mxu0  ;;  %v5599_v9 = vpop.f32.mrf.mxu1 }
 0x203   : > { %v2284_v11 = vmax.f32 %v1524_v6, 0.0  ;;  %v2406_v12 = vmax.f32 %v2012_v7, 0.0 }
 0x204   : > { %v1528_v13 = vpop.f32.mrf.mxu0  ;;  %5453 = vmatmul.mubr.bf16.gmra.mxu0 %v5852_v3  ;;  %v2016_v14 = vpop.f32.mrf.mxu1  ;;  %5697 = vmatmul.mubr.bf16.gmra.mxu1 %v5853_v4 }
 0x205   : > { %v4519_v15 = vpack.c.bf16 %v2284_v11, %v2283_v10  ;;  %v4824_v16 = vpack.c.bf16 %v2406_v12, %v2405_v5  ;;  %v2017_v18 = vadd.f32 %v6347_v17, %v2016_v14  ;;  %5456 = vmatprep.mubr.msk.bf16.mxu0 %vm5866_vm0, %v5865_v1  ;;  %v1529_v21 = vadd.f32 %v6347_v17, %v1528_v13 }
 0x206   : > { %v5358_v19 = vpop.f32.mrf.mxu0  ;;  %v5602_v20 = vpop.f32.mrf.mxu1 }
 0x207   : > { %4984 = vst [vmem:[%s6115_s13 + $0x110] sm:$0xff] %v4519_v15   ;;  %5045 = vst [vmem:[%s6115_s13 + $0x2f8] sm:$0xff] %v4824_v16   ;;  %v2407_v25 = vmax.f32 %v2017_v18, 0.0  ;;  %v2285_v29 = vmax.f32 %v1529_v21, 0.0 }
 0x208   : > { %v1531_v22 = vpop.f32.mrf.mxu0  ;;  %v2019_v23 = vpop.f32.mrf.mxu1 }
 0x209   : > { %v1532_v59 = vadd.f32 %v6347_v17, %v1531_v22  ;;  %v2020_v26 = vadd.f32 %v6347_v17, %v2019_v23 }
 0x20a   : > { %v5359_v27 = vpop.f32.mrf.mxu0  ;;  %v5603_v28 = vpop.f32.mrf.mxu1 }
 0x20b   : > { %v2286_v1 = vmax.f32 %v1532_v59, 0.0  ;;  %v2408_v30 = vmax.f32 %v2020_v26, 0.0 }
 0x20c   : > { %v1536_v31 = vpop.f32.mrf.mxu0  ;;  %5457 = vmatmul.mubr.bf16.gmra.mxu0 %v5854_v24  ;;  %v2024_v32 = vpop.f32.mrf.mxu1 }
 0x20d   : > { %v4524_v33 = vpack.c.bf16 %v2286_v1, %v2285_v29  ;;  %v4829_v34 = vpack.c.bf16 %v2408_v30, %v2407_v25  ;;  %v2025_v35 = vadd.f32 %v6347_v17, %v2024_v32  ;;  %v1537_v38 = vadd.f32 %v6347_v17, %v1536_v31 }
 0x20e   : > { %v5362_v36 = vpop.f32.mrf.mxu0  ;;  %v5606_v37 = vpop.f32.mrf.mxu1 }
 0x20f   : > { %4985 = vst [vmem:[%s6115_s13 + $0x118] sm:$0xff] %v4524_v33   ;;  %5046 = vst [vmem:[%s6115_s13 + $0x300] sm:$0xff] %v4829_v34   ;;  %v2409_v41 = vmax.f32 %v2025_v35, 0.0  ;;  %v2287_v46 = vmax.f32 %v1537_v38, 0.0 }
 0x210   : > { %v1539_v39 = vpop.f32.mrf.mxu0  ;;  %v2027_v40 = vpop.f32.mrf.mxu1 }
 0x211   : > { %v1540_v42 = vadd.f32 %v6347_v17, %v1539_v39  ;;  %v2028_v43 = vadd.f32 %v6347_v17, %v2027_v40 }
 0x212   : > { %v5363_v44 = vpop.f32.mrf.mxu0  ;;  %v5607_v45 = vpop.f32.mrf.mxu1 }
 0x213   : > { %v2288_v47 = vmax.f32 %v1540_v42, 0.0  ;;  %v2410_v48 = vmax.f32 %v2028_v43, 0.0 }
 0x214   : > { %v1544_v49 = vpop.f32.mrf.mxu0  ;;  %v2032_v50 = vpop.f32.mrf.mxu1 }
 0x215   : > { %v4529_v51 = vpack.c.bf16 %v2288_v47, %v2287_v46  ;;  %v4834_v52 = vpack.c.bf16 %v2410_v48, %v2409_v41  ;;  %v2033_v53 = vadd.f32 %v6347_v17, %v2032_v50  ;;  %v1545_v56 = vadd.f32 %v6347_v17, %v1544_v49 }
 0x216   : > { %v5366_v54 = vpop.f32.mrf.mxu0  ;;  %v5610_v55 = vpop.f32.mrf.mxu1 }
 0x217   : > { %4986 = vst [vmem:[%s6115_s13 + $0x120] sm:$0xff] %v4529_v51   ;;  %5047 = vst [vmem:[%s6115_s13 + $0x308] sm:$0xff] %v4834_v52   ;;  %v2411_v60 = vmax.f32 %v2033_v53, 0.0  ;;  %v2289_v2 = vmax.f32 %v1545_v56, 0.0  ;;  %v6570_v51 = vld [vmem:[%s6698_s2] ss:$0 sm:$0xff] }
 0x218   : > { %v1547_v57 = vpop.f32.mrf.mxu0  ;;  %v2035_v58 = vpop.f32.mrf.mxu1 }
 0x219   : > { %v1548_v61 = vadd.f32 %v6347_v17, %v1547_v57  ;;  %v2036_v62 = vadd.f32 %v6347_v17, %v2035_v58 }
 0x21a   : > { %v5367_v63 = vpop.f32.mrf.mxu0  ;;  %v5611_v0 = vpop.f32.mrf.mxu1 }
 0x21b   : > { %v2290_v3 = vmax.f32 %v1548_v61, 0.0  ;;  %v2412_v4 = vmax.f32 %v2036_v62, 0.0 }
 0x21c   : > { %v1552_v5 = vpop.f32.mrf.mxu0  ;;  %v2040_v6 = vpop.f32.mrf.mxu1 }
 0x21d   : > { %v4534_v7 = vpack.c.bf16 %v2290_v3, %v2289_v2  ;;  %v4839_v8 = vpack.c.bf16 %v2412_v4, %v2411_v60  ;;  %v2041_v9 = vadd.f32 %v6347_v17, %v2040_v6  ;;  %v1553_v12 = vadd.f32 %v6347_v17, %v1552_v5 }
 0x21e   : > { %v5370_v10 = vpop.f32.mrf.mxu0  ;;  %v5614_v11 = vpop.f32.mrf.mxu1 }
 0x21f   : > { %4987 = vst [vmem:[%s6115_s13 + $0x128] sm:$0xff] %v4534_v7   ;;  %5048 = vst [vmem:[%s6115_s13 + $0x310] sm:$0xff] %v4839_v8   ;;  %v2413_v15 = vmax.f32 %v2041_v9, 0.0  ;;  %v2291_v21 = vmax.f32 %v1553_v12, 0.0 }
 0x220   : > { %v1555_v13 = vpop.f32.mrf.mxu0  ;;  %v2043_v14 = vpop.f32.mrf.mxu1 }
 0x221   : > { %v1556_v16 = vadd.f32 %v6347_v17, %v1555_v13  ;;  %v2044_v18 = vadd.f32 %v6347_v17, %v2043_v14 }
 0x222   : > { %v5371_v19 = vpop.f32.mrf.mxu0  ;;  %v5615_v20 = vpop.f32.mrf.mxu1 }
 0x223   : > { %v2292_v22 = vmax.f32 %v1556_v16, 0.0  ;;  %v2414_v23 = vmax.f32 %v2044_v18, 0.0 }
 0x224   : > { %v1560_v24 = vpop.f32.mrf.mxu0  ;;  %v2048_v25 = vpop.f32.mrf.mxu1 }
 0x225   : > { %v4539_v59 = vpack.c.bf16 %v2292_v22, %v2291_v21  ;;  %v4844_v26 = vpack.c.bf16 %v2414_v23, %v2413_v15  ;;  %v2049_v27 = vadd.f32 %v6347_v17, %v2048_v25  ;;  %v1561_v1 = vadd.f32 %v6347_v17, %v1560_v24 }
 0x226   : > { %v5374_v28 = vpop.f32.mrf.mxu0  ;;  %v5618_v29 = vpop.f32.mrf.mxu1 }
 0x227   : > { %4988 = vst [vmem:[%s6115_s13 + $0x130] sm:$0xff] %v4539_v59   ;;  %5049 = vst [vmem:[%s6115_s13 + $0x318] sm:$0xff] %v4844_v26   ;;  %v2415_v32 = vmax.f32 %v2049_v27, 0.0  ;;  %v2293_v37 = vmax.f32 %v1561_v1, 0.0 }
 0x228   : > { %v1563_v30 = vpop.f32.mrf.mxu0  ;;  %v2051_v31 = vpop.f32.mrf.mxu1 }
 0x229   : > { %v1564_v33 = vadd.f32 %v6347_v17, %v1563_v30  ;;  %v2052_v34 = vadd.f32 %v6347_v17, %v2051_v31 }
 0x22a   : > { %v5375_v35 = vpop.f32.mrf.mxu0  ;;  %v5619_v36 = vpop.f32.mrf.mxu1 }
 0x22b   : > { %v2294_v38 = vmax.f32 %v1564_v33, 0.0  ;;  %v2416_v39 = vmax.f32 %v2052_v34, 0.0 }
 0x22c   : > { %v1568_v40 = vpop.f32.mrf.mxu0  ;;  %v2056_v41 = vpop.f32.mrf.mxu1 }
 0x22d   : > { %v4544_v42 = vpack.c.bf16 %v2294_v38, %v2293_v37  ;;  %v4849_v43 = vpack.c.bf16 %v2416_v39, %v2415_v32  ;;  %v2057_v44 = vadd.f32 %v6347_v17, %v2056_v41  ;;  %v1569_v47 = vadd.f32 %v6347_v17, %v1568_v40 }
 0x22e   : > { %v5378_v45 = vpop.f32.mrf.mxu0  ;;  %v5622_v46 = vpop.f32.mrf.mxu1 }
 0x22f   : > { %4989 = vst [vmem:[%s6115_s13 + $0x138] sm:$0xff] %v4544_v42   ;;  %5050 = vst [vmem:[%s6115_s13 + $0x320] sm:$0xff] %v4849_v43   ;;  %v2417_v50 = vmax.f32 %v2057_v44, 0.0  ;;  %v2295_v56 = vmax.f32 %v1569_v47, 0.0 }
 0x230   : > { %v1571_v48 = vpop.f32.mrf.mxu0  ;;  %v2059_v49 = vpop.f32.mrf.mxu1 }
 0x231   : > { %v1572_v52 = vadd.f32 %v6570_v51, %v1571_v48  ;;  %v2060_v53 = vadd.f32 %v6570_v51, %v2059_v49 }
 0x232   : > { %v5379_v54 = vpop.f32.mrf.mxu0  ;;  %v5623_v55 = vpop.f32.mrf.mxu1 }
 0x233   : > { %v2296_v57 = vmax.f32 %v1572_v52, 0.0  ;;  %v2418_v58 = vmax.f32 %v2060_v53, 0.0 }
 0x234   : > { %v1576_v17 = vpop.f32.mrf.mxu0  ;;  %v2064_v60 = vpop.f32.mrf.mxu1 }
 0x235   : > { %v4549_v61 = vpack.c.bf16 %v2296_v57, %v2295_v56  ;;  %v4854_v62 = vpack.c.bf16 %v2418_v58, %v2417_v50  ;;  %v2065_v63 = vadd.f32 %v6570_v51, %v2064_v60  ;;  %v1577_v3 = vadd.f32 %v6570_v51, %v1576_v17 }
 0x236   : > { %v5382_v0 = vpop.f32.mrf.mxu0  ;;  %v5626_v2 = vpop.f32.mrf.mxu1 }
 0x237   : > { %4990 = vst [vmem:[%s6115_s13 + $0x140] sm:$0xff] %v4549_v61   ;;  %5051 = vst [vmem:[%s6115_s13 + $0x328] sm:$0xff] %v4854_v62   ;;  %v2419_v6 = vmax.f32 %v2065_v63, 0.0  ;;  %v2297_v11 = vmax.f32 %v1577_v3, 0.0 }
 0x238   : > { %v1579_v4 = vpop.f32.mrf.mxu0  ;;  %v2067_v5 = vpop.f32.mrf.mxu1 }
 0x239   : > { %v1580_v7 = vadd.f32 %v6570_v51, %v1579_v4  ;;  %v2068_v8 = vadd.f32 %v6570_v51, %v2067_v5 }
 0x23a   : > { %v5383_v9 = vpop.f32.mrf.mxu0  ;;  %v5627_v10 = vpop.f32.mrf.mxu1 }
 0x23b   : > { %v2298_v12 = vmax.f32 %v1580_v7, 0.0  ;;  %v2420_v13 = vmax.f32 %v2068_v8, 0.0 }
 0x23c   : > { %v1584_v14 = vpop.f32.mrf.mxu0  ;;  %v2072_v15 = vpop.f32.mrf.mxu1 }
 0x23d   : > { %v4554_v16 = vpack.c.bf16 %v2298_v12, %v2297_v11  ;;  %v4859_v18 = vpack.c.bf16 %v2420_v13, %v2419_v6  ;;  %v2073_v19 = vadd.f32 %v6570_v51, %v2072_v15  ;;  %v1585_v22 = vadd.f32 %v6570_v51, %v1584_v14 }
 0x23e   : > { %v5386_v20 = vpop.f32.mrf.mxu0  ;;  %v5630_v21 = vpop.f32.mrf.mxu1 }
 0x23f   : > { %4991 = vst [vmem:[%s6115_s13 + $0x148] sm:$0xff] %v4554_v16   ;;  %5052 = vst [vmem:[%s6115_s13 + $0x330] sm:$0xff] %v4859_v18   ;;  %v2421_v25 = vmax.f32 %v2073_v19, 0.0  ;;  %v2299_v29 = vmax.f32 %v1585_v22, 0.0 }
 0x240   : > { %v1587_v23 = vpop.f32.mrf.mxu0  ;;  %v2075_v24 = vpop.f32.mrf.mxu1 }
 0x241   : > { %v1588_v59 = vadd.f32 %v6570_v51, %v1587_v23  ;;  %v2076_v26 = vadd.f32 %v6570_v51, %v2075_v24 }
 0x242   : > { %v5387_v27 = vpop.f32.mrf.mxu0  ;;  %v5631_v28 = vpop.f32.mrf.mxu1 }
 0x243   : > { %v2300_v1 = vmax.f32 %v1588_v59, 0.0  ;;  %v2422_v30 = vmax.f32 %v2076_v26, 0.0 }
 0x244   : > { %v1592_v31 = vpop.f32.mrf.mxu0  ;;  %v2080_v32 = vpop.f32.mrf.mxu1 }
 0x245   : > { %v4559_v33 = vpack.c.bf16 %v2300_v1, %v2299_v29  ;;  %v4864_v34 = vpack.c.bf16 %v2422_v30, %v2421_v25  ;;  %v2081_v35 = vadd.f32 %v6570_v51, %v2080_v32  ;;  %v1593_v38 = vadd.f32 %v6570_v51, %v1592_v31 }
 0x246   : > { %v5390_v36 = vpop.f32.mrf.mxu0  ;;  %v5634_v37 = vpop.f32.mrf.mxu1 }
 0x247   : > { %4992 = vst [vmem:[%s6115_s13 + $0x150] sm:$0xff] %v4559_v33   ;;  %5053 = vst [vmem:[%s6115_s13 + $0x338] sm:$0xff] %v4864_v34   ;;  %v2423_v41 = vmax.f32 %v2081_v35, 0.0  ;;  %v2301_v46 = vmax.f32 %v1593_v38, 0.0 }
 0x248   : > { %v1595_v39 = vpop.f32.mrf.mxu0  ;;  %v2083_v40 = vpop.f32.mrf.mxu1 }
 0x249   : > { %v1596_v42 = vadd.f32 %v6570_v51, %v1595_v39  ;;  %v2084_v43 = vadd.f32 %v6570_v51, %v2083_v40 }
 0x24a   : > { %v5391_v44 = vpop.f32.mrf.mxu0  ;;  %v5635_v45 = vpop.f32.mrf.mxu1 }
 0x24b   : > { %v2302_v47 = vmax.f32 %v1596_v42, 0.0  ;;  %v2424_v48 = vmax.f32 %v2084_v43, 0.0 }
 0x24c   : > { %v1600_v49 = vpop.f32.mrf.mxu0  ;;  %v2088_v50 = vpop.f32.mrf.mxu1 }
 0x24d   : > { %v4564_v52 = vpack.c.bf16 %v2302_v47, %v2301_v46  ;;  %v4869_v53 = vpack.c.bf16 %v2424_v48, %v2423_v41  ;;  %v2089_v54 = vadd.f32 %v6570_v51, %v2088_v50  ;;  %v1601_v57 = vadd.f32 %v6570_v51, %v1600_v49 }
 0x24e   : > { %v5394_v55 = vpop.f32.mrf.mxu0  ;;  %v5638_v56 = vpop.f32.mrf.mxu1 }
 0x24f   : > { %4993 = vst [vmem:[%s6115_s13 + $0x158] sm:$0xff] %v4564_v52   ;;  %5054 = vst [vmem:[%s6115_s13 + $0x340] sm:$0xff] %v4869_v53   ;;  %v2425_v60 = vmax.f32 %v2089_v54, 0.0  ;;  %v2303_v2 = vmax.f32 %v1601_v57, 0.0 }
 0x250   : > { %v1603_v58 = vpop.f32.mrf.mxu0  ;;  %v2091_v17 = vpop.f32.mrf.mxu1 }
 0x251   : > { %v1604_v61 = vadd.f32 %v6570_v51, %v1603_v58  ;;  %v2092_v62 = vadd.f32 %v6570_v51, %v2091_v17 }
 0x252   : > { %v5395_v63 = vpop.f32.mrf.mxu0  ;;  %v5639_v0 = vpop.f32.mrf.mxu1 }
 0x253   : > { %v2304_v3 = vmax.f32 %v1604_v61, 0.0  ;;  %v2426_v4 = vmax.f32 %v2092_v62, 0.0 }
 0x254   : > { %v1608_v5 = vpop.f32.mrf.mxu0  ;;  %v2096_v6 = vpop.f32.mrf.mxu1 }
 0x255   : > { %v4569_v7 = vpack.c.bf16 %v2304_v3, %v2303_v2  ;;  %v4874_v8 = vpack.c.bf16 %v2426_v4, %v2425_v60  ;;  %v2097_v9 = vadd.f32 %v6570_v51, %v2096_v6  ;;  %v1609_v12 = vadd.f32 %v6570_v51, %v1608_v5 }
 0x256   : > { %v5398_v10 = vpop.f32.mrf.mxu0  ;;  %v5642_v11 = vpop.f32.mrf.mxu1 }
 0x257   : > { %4994 = vst [vmem:[%s6115_s13 + $0x160] sm:$0xff] %v4569_v7   ;;  %5055 = vst [vmem:[%s6115_s13 + $0x348] sm:$0xff] %v4874_v8   ;;  %v2427_v15 = vmax.f32 %v2097_v9, 0.0  ;;  %v2305_v21 = vmax.f32 %v1609_v12, 0.0 }
 0x258   : > { %v1611_v13 = vpop.f32.mrf.mxu0  ;;  %v2099_v14 = vpop.f32.mrf.mxu1 }
 0x259   : > { %v1612_v16 = vadd.f32 %v6570_v51, %v1611_v13  ;;  %v2100_v18 = vadd.f32 %v6570_v51, %v2099_v14 }
 0x25a   : > { %v5399_v19 = vpop.f32.mrf.mxu0  ;;  %v5643_v20 = vpop.f32.mrf.mxu1 }
 0x25b   : > { %v2306_v22 = vmax.f32 %v1612_v16, 0.0  ;;  %v2428_v23 = vmax.f32 %v2100_v18, 0.0 }
 0x25c   : > { %v1616_v24 = vpop.f32.mrf.mxu0  ;;  %v2104_v25 = vpop.f32.mrf.mxu1 }
 0x25d   : > { %v4574_v59 = vpack.c.bf16 %v2306_v22, %v2305_v21  ;;  %v4879_v26 = vpack.c.bf16 %v2428_v23, %v2427_v15  ;;  %v2105_v27 = vadd.f32 %v6570_v51, %v2104_v25  ;;  %v1617_v1 = vadd.f32 %v6570_v51, %v1616_v24 }
 0x25e   : > { %v5402_v28 = vpop.f32.mrf.mxu0  ;;  %v5646_v29 = vpop.f32.mrf.mxu1 }
 0x25f   : > { %4995 = vst [vmem:[%s6115_s13 + $0x168] sm:$0xff] %v4574_v59   ;;  %5056 = vst [vmem:[%s6115_s13 + $0x350] sm:$0xff] %v4879_v26   ;;  %v2429_v32 = vmax.f32 %v2105_v27, 0.0  ;;  %v2307_v37 = vmax.f32 %v1617_v1, 0.0 }
 0x260   : > { %v1619_v30 = vpop.f32.mrf.mxu0  ;;  %v2107_v31 = vpop.f32.mrf.mxu1 }
 0x261   : > { %v1620_v33 = vadd.f32 %v6570_v51, %v1619_v30  ;;  %v2108_v34 = vadd.f32 %v6570_v51, %v2107_v31 }
 0x262   : > { %v5403_v35 = vpop.f32.mrf.mxu0  ;;  %v5647_v36 = vpop.f32.mrf.mxu1 }
 0x263   : > { %v2308_v38 = vmax.f32 %v1620_v33, 0.0  ;;  %v2430_v39 = vmax.f32 %v2108_v34, 0.0 }
 0x264   : > { %v1624_v40 = vpop.f32.mrf.mxu0  ;;  %v2112_v41 = vpop.f32.mrf.mxu1 }
 0x265   : > { %v4579_v42 = vpack.c.bf16 %v2308_v38, %v2307_v37  ;;  %v4884_v43 = vpack.c.bf16 %v2430_v39, %v2429_v32  ;;  %v2113_v44 = vadd.f32 %v6570_v51, %v2112_v41  ;;  %v1625_v47 = vadd.f32 %v6570_v51, %v1624_v40 }
 0x266   : > { %v5406_v45 = vpop.f32.mrf.mxu0  ;;  %v5650_v46 = vpop.f32.mrf.mxu1 }
 0x267   : > { %4996 = vst [vmem:[%s6115_s13 + $0x170] sm:$0xff] %v4579_v42   ;;  %5057 = vst [vmem:[%s6115_s13 + $0x358] sm:$0xff] %v4884_v43   ;;  %v2431_v50 = vmax.f32 %v2113_v44, 0.0  ;;  %v2309_v56 = vmax.f32 %v1625_v47, 0.0 }
 0x268   : > { %v1627_v48 = vpop.f32.mrf.mxu0  ;;  %v2115_v49 = vpop.f32.mrf.mxu1 }
 0x269   : > { %v1628_v52 = vadd.f32 %v6570_v51, %v1627_v48  ;;  %v2116_v53 = vadd.f32 %v6570_v51, %v2115_v49 }
 0x26a   : > { %v5407_v54 = vpop.f32.mrf.mxu0  ;;  %v5651_v55 = vpop.f32.mrf.mxu1 }
 0x26b   : > { %v2310_v57 = vmax.f32 %v1628_v52, 0.0  ;;  %v2432_v58 = vmax.f32 %v2116_v53, 0.0 }
 0x26c   : > { %v1632_v17 = vpop.f32.mrf.mxu0  ;;  %v2120_v60 = vpop.f32.mrf.mxu1 }
 0x26d   : > { %v4584_v61 = vpack.c.bf16 %v2310_v57, %v2309_v56  ;;  %v4889_v62 = vpack.c.bf16 %v2432_v58, %v2431_v50  ;;  %v2121_v63 = vadd.f32 %v6570_v51, %v2120_v60  ;;  %v1633_v3 = vadd.f32 %v6570_v51, %v1632_v17 }
 0x26e   : > { %v5410_v0 = vpop.f32.mrf.mxu0  ;;  %v5654_v2 = vpop.f32.mrf.mxu1 }
 0x26f   : > { %4997 = vst [vmem:[%s6115_s13 + $0x178] sm:$0xff] %v4584_v61   ;;  %5058 = vst [vmem:[%s6115_s13 + $0x360] sm:$0xff] %v4889_v62   ;;  %v2433_v6 = vmax.f32 %v2121_v63, 0.0  ;;  %v2311_v11 = vmax.f32 %v1633_v3, 0.0 }
 0x270   : > { %v1635_v4 = vpop.f32.mrf.mxu0  ;;  %v2123_v5 = vpop.f32.mrf.mxu1 }
 0x271   : > { %v1636_v7 = vadd.f32 %v6570_v51, %v1635_v4  ;;  %v2124_v8 = vadd.f32 %v6570_v51, %v2123_v5 }
 0x272   : > { %v5411_v9 = vpop.f32.mrf.mxu0  ;;  %v5655_v10 = vpop.f32.mrf.mxu1 }
 0x273   : > { %v2312_v12 = vmax.f32 %v1636_v7, 0.0  ;;  %v2434_v13 = vmax.f32 %v2124_v8, 0.0 }
 0x274   : > { %v1640_v14 = vpop.f32.mrf.mxu0  ;;  %v2128_v15 = vpop.f32.mrf.mxu1 }
 0x275   : > { %v4589_v16 = vpack.c.bf16 %v2312_v12, %v2311_v11  ;;  %v4894_v18 = vpack.c.bf16 %v2434_v13, %v2433_v6  ;;  %v2129_v19 = vadd.f32 %v6570_v51, %v2128_v15  ;;  %v1641_v22 = vadd.f32 %v6570_v51, %v1640_v14 }
 0x276   : > { %v5414_v20 = vpop.f32.mrf.mxu0  ;;  %v5658_v21 = vpop.f32.mrf.mxu1 }
 0x277   : > { %4998 = vst [vmem:[%s6115_s13 + $0x180] sm:$0xff] %v4589_v16   ;;  %5059 = vst [vmem:[%s6115_s13 + $0x368] sm:$0xff] %v4894_v18   ;;  %v2435_v25 = vmax.f32 %v2129_v19, 0.0  ;;  %v2313_v29 = vmax.f32 %v1641_v22, 0.0 }
 0x278   : > { %v1643_v23 = vpop.f32.mrf.mxu0  ;;  %v2131_v24 = vpop.f32.mrf.mxu1 }
 0x279   : > { %v1644_v59 = vadd.f32 %v6570_v51, %v1643_v23  ;;  %v2132_v26 = vadd.f32 %v6570_v51, %v2131_v24 }
 0x27a   : > { %v5415_v27 = vpop.f32.mrf.mxu0  ;;  %v5659_v28 = vpop.f32.mrf.mxu1 }
 0x27b   : > { %v2314_v1 = vmax.f32 %v1644_v59, 0.0  ;;  %v2436_v30 = vmax.f32 %v2132_v26, 0.0 }
 0x27c   : > { %v1648_v31 = vpop.f32.mrf.mxu0  ;;  %v2136_v32 = vpop.f32.mrf.mxu1 }
 0x27d   : > { %v4594_v33 = vpack.c.bf16 %v2314_v1, %v2313_v29  ;;  %v4899_v34 = vpack.c.bf16 %v2436_v30, %v2435_v25  ;;  %v2137_v35 = vadd.f32 %v6570_v51, %v2136_v32  ;;  %v1649_v38 = vadd.f32 %v6570_v51, %v1648_v31 }
 0x27e   : > { %v5418_v36 = vpop.f32.mrf.mxu0  ;;  %v5662_v37 = vpop.f32.mrf.mxu1 }
 0x27f   : > { %4999 = vst [vmem:[%s6115_s13 + $0x188] sm:$0xff] %v4594_v33   ;;  %5060 = vst [vmem:[%s6115_s13 + $0x370] sm:$0xff] %v4899_v34   ;;  %v2437_v41 = vmax.f32 %v2137_v35, 0.0  ;;  %v2315_v46 = vmax.f32 %v1649_v38, 0.0 }
 0x280   : > { %v1651_v39 = vpop.f32.mrf.mxu0  ;;  %v2139_v40 = vpop.f32.mrf.mxu1 }
 0x281   : > { %v1652_v42 = vadd.f32 %v6570_v51, %v1651_v39  ;;  %v2140_v43 = vadd.f32 %v6570_v51, %v2139_v40 }
 0x282   : > { %v5419_v44 = vpop.f32.mrf.mxu0  ;;  %v5663_v45 = vpop.f32.mrf.mxu1 }
 0x283   : > { %v2316_v47 = vmax.f32 %v1652_v42, 0.0  ;;  %v2438_v48 = vmax.f32 %v2140_v43, 0.0 }
 0x284   : > { %v1656_v49 = vpop.f32.mrf.mxu0  ;;  %v2144_v50 = vpop.f32.mrf.mxu1 }
 0x285   : > { %v4599_v52 = vpack.c.bf16 %v2316_v47, %v2315_v46  ;;  %v4904_v53 = vpack.c.bf16 %v2438_v48, %v2437_v41  ;;  %v2145_v54 = vadd.f32 %v6570_v51, %v2144_v50  ;;  %v1657_v57 = vadd.f32 %v6570_v51, %v1656_v49 }
 0x286   : > { %v5422_v55 = vpop.f32.mrf.mxu0  ;;  %v5666_v56 = vpop.f32.mrf.mxu1 }
 0x287   : > { %5000 = vst [vmem:[%s6115_s13 + $0x190] sm:$0xff] %v4599_v52   ;;  %5061 = vst [vmem:[%s6115_s13 + $0x378] sm:$0xff] %v4904_v53   ;;  %v2439_v60 = vmax.f32 %v2145_v54, 0.0  ;;  %v2317_v2 = vmax.f32 %v1657_v57, 0.0 }
 0x288   : > { %v1659_v58 = vpop.f32.mrf.mxu0  ;;  %v2147_v17 = vpop.f32.mrf.mxu1 }
 0x289   : > { %v1660_v61 = vadd.f32 %v6570_v51, %v1659_v58  ;;  %v2148_v62 = vadd.f32 %v6570_v51, %v2147_v17 }
 0x28a   : > { %v5423_v63 = vpop.f32.mrf.mxu0  ;;  %v5667_v0 = vpop.f32.mrf.mxu1 }
 0x28b   : > { %v2318_v3 = vmax.f32 %v1660_v61, 0.0  ;;  %v2440_v4 = vmax.f32 %v2148_v62, 0.0 }
 0x28c   : > { %v1664_v5 = vpop.f32.mrf.mxu0  ;;  %v2152_v6 = vpop.f32.mrf.mxu1 }
 0x28d   : > { %v4604_v7 = vpack.c.bf16 %v2318_v3, %v2317_v2  ;;  %v4909_v8 = vpack.c.bf16 %v2440_v4, %v2439_v60  ;;  %v2153_v9 = vadd.f32 %v6570_v51, %v2152_v6  ;;  %v1665_v12 = vadd.f32 %v6570_v51, %v1664_v5 }
 0x28e   : > { %v5426_v10 = vpop.f32.mrf.mxu0  ;;  %v5670_v11 = vpop.f32.mrf.mxu1 }
 0x28f   : > { %5001 = vst [vmem:[%s6115_s13 + $0x198] sm:$0xff] %v4604_v7   ;;  %5062 = vst [vmem:[%s6115_s13 + $0x380] sm:$0xff] %v4909_v8   ;;  %v2441_v15 = vmax.f32 %v2153_v9, 0.0  ;;  %v2319_v21 = vmax.f32 %v1665_v12, 0.0 }
 0x290   : > { %v1667_v13 = vpop.f32.mrf.mxu0  ;;  %v2155_v14 = vpop.f32.mrf.mxu1 }
 0x291   : > { %v1668_v16 = vadd.f32 %v6570_v51, %v1667_v13  ;;  %v2156_v18 = vadd.f32 %v6570_v51, %v2155_v14 }
 0x292   : > { %v5427_v19 = vpop.f32.mrf.mxu0  ;;  %v5671_v20 = vpop.f32.mrf.mxu1 }
 0x293   : > { %v2320_v22 = vmax.f32 %v1668_v16, 0.0  ;;  %v2442_v23 = vmax.f32 %v2156_v18, 0.0 }
 0x294   : > { %v1672_v24 = vpop.f32.mrf.mxu0  ;;  %v2160_v25 = vpop.f32.mrf.mxu1 }
 0x295   : > { %v4609_v59 = vpack.c.bf16 %v2320_v22, %v2319_v21  ;;  %v4914_v26 = vpack.c.bf16 %v2442_v23, %v2441_v15  ;;  %v2161_v27 = vadd.f32 %v6570_v51, %v2160_v25  ;;  %v1673_v1 = vadd.f32 %v6570_v51, %v1672_v24 }
 0x296   : > { %v5430_v28 = vpop.f32.mrf.mxu0  ;;  %v5674_v29 = vpop.f32.mrf.mxu1 }
 0x297   : > { %5002 = vst [vmem:[%s6115_s13 + $0x1a0] sm:$0xff] %v4609_v59   ;;  %5063 = vst [vmem:[%s6115_s13 + $0x388] sm:$0xff] %v4914_v26   ;;  %v2443_v32 = vmax.f32 %v2161_v27, 0.0  ;;  %v2321_v37 = vmax.f32 %v1673_v1, 0.0 }
 0x298   : > { %v1675_v30 = vpop.f32.mrf.mxu0  ;;  %v2163_v31 = vpop.f32.mrf.mxu1 }
 0x299   : > { %v1676_v33 = vadd.f32 %v6570_v51, %v1675_v30  ;;  %v2164_v34 = vadd.f32 %v6570_v51, %v2163_v31 }
 0x29a   : > { %v5431_v35 = vpop.f32.mrf.mxu0  ;;  %v5675_v36 = vpop.f32.mrf.mxu1 }
 0x29b   : > { %v2322_v38 = vmax.f32 %v1676_v33, 0.0  ;;  %v2444_v39 = vmax.f32 %v2164_v34, 0.0 }
 0x29c   : > { %v1680_v40 = vpop.f32.mrf.mxu0  ;;  %v2168_v41 = vpop.f32.mrf.mxu1 }
 0x29d   : > { %v4614_v42 = vpack.c.bf16 %v2322_v38, %v2321_v37  ;;  %v4919_v43 = vpack.c.bf16 %v2444_v39, %v2443_v32  ;;  %v2169_v44 = vadd.f32 %v6570_v51, %v2168_v41  ;;  %v1681_v47 = vadd.f32 %v6570_v51, %v1680_v40 }
 0x29e   : > { %v5434_v45 = vpop.f32.mrf.mxu0  ;;  %v5678_v46 = vpop.f32.mrf.mxu1 }
 0x29f   : > { %5003 = vst [vmem:[%s6115_s13 + $0x1a8] sm:$0xff] %v4614_v42   ;;  %5064 = vst [vmem:[%s6115_s13 + $0x390] sm:$0xff] %v4919_v43   ;;  %v2445_v50 = vmax.f32 %v2169_v44, 0.0  ;;  %v2323_v56 = vmax.f32 %v1681_v47, 0.0 }
 0x2a0   : > { %v1683_v48 = vpop.f32.mrf.mxu0  ;;  %v2171_v49 = vpop.f32.mrf.mxu1 }
 0x2a1   : > { %v1684_v52 = vadd.f32 %v6570_v51, %v1683_v48  ;;  %v2172_v53 = vadd.f32 %v6570_v51, %v2171_v49 }
 0x2a2   : > { %v5435_v54 = vpop.f32.mrf.mxu0  ;;  %v5679_v55 = vpop.f32.mrf.mxu1 }
 0x2a3   : > { %v2324_v57 = vmax.f32 %v1684_v52, 0.0  ;;  %v2446_v58 = vmax.f32 %v2172_v53, 0.0 }
 0x2a4   : > { %v1688_v17 = vpop.f32.mrf.mxu0  ;;  %v2176_v60 = vpop.f32.mrf.mxu1 }
 0x2a5   : > { %v4619_v61 = vpack.c.bf16 %v2324_v57, %v2323_v56  ;;  %v4924_v62 = vpack.c.bf16 %v2446_v58, %v2445_v50  ;;  %v2177_v63 = vadd.f32 %v6570_v51, %v2176_v60  ;;  %v1689_v3 = vadd.f32 %v6570_v51, %v1688_v17 }
 0x2a6   : > { %v5438_v0 = vpop.f32.mrf.mxu0  ;;  %v5682_v2 = vpop.f32.mrf.mxu1 }
 0x2a7   : > { %5004 = vst [vmem:[%s6115_s13 + $0x1b0] sm:$0xff] %v4619_v61   ;;  %5065 = vst [vmem:[%s6115_s13 + $0x398] sm:$0xff] %v4924_v62   ;;  %v2447_v6 = vmax.f32 %v2177_v63, 0.0  ;;  %v2325_v11 = vmax.f32 %v1689_v3, 0.0 }
 0x2a8   : > { %v1691_v4 = vpop.f32.mrf.mxu0  ;;  %v2179_v5 = vpop.f32.mrf.mxu1 }
 0x2a9   : > { %v1692_v7 = vadd.f32 %v6570_v51, %v1691_v4  ;;  %v2180_v8 = vadd.f32 %v6570_v51, %v2179_v5 }
 0x2aa   : > { %v5439_v9 = vpop.f32.mrf.mxu0  ;;  %v5683_v10 = vpop.f32.mrf.mxu1 }
 0x2ab   : > { %v2326_v12 = vmax.f32 %v1692_v7, 0.0  ;;  %v2448_v13 = vmax.f32 %v2180_v8, 0.0 }
 0x2ac   : > { %v1696_v14 = vpop.f32.mrf.mxu0  ;;  %v2184_v15 = vpop.f32.mrf.mxu1 }
 0x2ad   : > { %v4624_v16 = vpack.c.bf16 %v2326_v12, %v2325_v11  ;;  %v4929_v18 = vpack.c.bf16 %v2448_v13, %v2447_v6  ;;  %v2185_v19 = vadd.f32 %v6570_v51, %v2184_v15  ;;  %v1697_v22 = vadd.f32 %v6570_v51, %v1696_v14 }
 0x2ae   : > { %v5442_v20 = vpop.f32.mrf.mxu0  ;;  %v5686_v21 = vpop.f32.mrf.mxu1 }
 0x2af   : > { %5005 = vst [vmem:[%s6115_s13 + $0x1b8] sm:$0xff] %v4624_v16   ;;  %5066 = vst [vmem:[%s6115_s13 + $0x3a0] sm:$0xff] %v4929_v18   ;;  %v2449_v25 = vmax.f32 %v2185_v19, 0.0  ;;  %v2327_v29 = vmax.f32 %v1697_v22, 0.0 }
 0x2b0   : > { %v1699_v23 = vpop.f32.mrf.mxu0  ;;  %v2187_v24 = vpop.f32.mrf.mxu1 }
 0x2b1   : > { %v1700_v59 = vadd.f32 %v6570_v51, %v1699_v23  ;;  %v2188_v26 = vadd.f32 %v6570_v51, %v2187_v24 }
 0x2b2   : > { %v5443_v27 = vpop.f32.mrf.mxu0  ;;  %v5687_v28 = vpop.f32.mrf.mxu1 }
 0x2b3   : > { %v2328_v1 = vmax.f32 %v1700_v59, 0.0  ;;  %v2450_v30 = vmax.f32 %v2188_v26, 0.0 }
 0x2b4   : > { %v1704_v31 = vpop.f32.mrf.mxu0  ;;  %v2192_v32 = vpop.f32.mrf.mxu1 }
 0x2b5   : > { %v4629_v33 = vpack.c.bf16 %v2328_v1, %v2327_v29  ;;  %v4934_v34 = vpack.c.bf16 %v2450_v30, %v2449_v25  ;;  %v2193_v35 = vadd.f32 %v6570_v51, %v2192_v32  ;;  %v1705_v38 = vadd.f32 %v6570_v51, %v1704_v31 }
 0x2b6   : > { %v5446_v36 = vpop.f32.mrf.mxu0  ;;  %v5690_v37 = vpop.f32.mrf.mxu1 }
 0x2b7   : > { %5006 = vst [vmem:[%s6115_s13 + $0x1c0] sm:$0xff] %v4629_v33   ;;  %5067 = vst [vmem:[%s6115_s13 + $0x3a8] sm:$0xff] %v4934_v34   ;;  %v2451_v41 = vmax.f32 %v2193_v35, 0.0  ;;  %v2329_v46 = vmax.f32 %v1705_v38, 0.0 }
 0x2b8   : > { %v1707_v39 = vpop.f32.mrf.mxu0  ;;  %v2195_v40 = vpop.f32.mrf.mxu1 }
 0x2b9   : > { %v1708_v42 = vadd.f32 %v6570_v51, %v1707_v39  ;;  %v2196_v43 = vadd.f32 %v6570_v51, %v2195_v40 }
 0x2ba   : > { %v5447_v44 = vpop.f32.mrf.mxu0  ;;  %v5691_v45 = vpop.f32.mrf.mxu1 }
 0x2bb   : > { %v2330_v47 = vmax.f32 %v1708_v42, 0.0  ;;  %v2452_v48 = vmax.f32 %v2196_v43, 0.0 }
 0x2bc   : > { %v1712_v49 = vpop.f32.mrf.mxu0  ;;  %v2200_v50 = vpop.f32.mrf.mxu1 }
 0x2bd   : > { %v4634_v52 = vpack.c.bf16 %v2330_v47, %v2329_v46  ;;  %v4939_v53 = vpack.c.bf16 %v2452_v48, %v2451_v41  ;;  %v2201_v54 = vadd.f32 %v6570_v51, %v2200_v50  ;;  %v1713_v57 = vadd.f32 %v6570_v51, %v1712_v49 }
 0x2be   : > { %v5450_v55 = vpop.f32.mrf.mxu0  ;;  %v5694_v56 = vpop.f32.mrf.mxu1 }
 0x2bf   : > { %5007 = vst [vmem:[%s6115_s13 + $0x1c8] sm:$0xff] %v4634_v52   ;;  %5068 = vst [vmem:[%s6115_s13 + $0x3b0] sm:$0xff] %v4939_v53   ;;  %v2453_v60 = vmax.f32 %v2201_v54, 0.0  ;;  %v2331_v2 = vmax.f32 %v1713_v57, 0.0 }
 0x2c0   : > { %v1715_v58 = vpop.f32.mrf.mxu0  ;;  %v2203_v17 = vpop.f32.mrf.mxu1 }
 0x2c1   : > { %v1716_v61 = vadd.f32 %v6570_v51, %v1715_v58  ;;  %v2204_v62 = vadd.f32 %v6570_v51, %v2203_v17 }
 0x2c2   : > { %v5451_v63 = vpop.f32.mrf.mxu0  ;;  %v5695_v0 = vpop.f32.mrf.mxu1 }
 0x2c3   : > { %v2332_v3 = vmax.f32 %v1716_v61, 0.0  ;;  %v2454_v4 = vmax.f32 %v2204_v62, 0.0 }
 0x2c4   : > { %v1720_v5 = vpop.f32.mrf.mxu0  ;;  %v2208_v6 = vpop.f32.mrf.mxu1 }
 0x2c5   : > { %v4639_v7 = vpack.c.bf16 %v2332_v3, %v2331_v2  ;;  %v4944_v8 = vpack.c.bf16 %v2454_v4, %v2453_v60  ;;  %v2209_v9 = vadd.f32 %v6570_v51, %v2208_v6  ;;  %v1721_v12 = vadd.f32 %v6570_v51, %v1720_v5 }
 0x2c6   : > { %v5454_v10 = vpop.f32.mrf.mxu0  ;;  %v5698_v11 = vpop.f32.mrf.mxu1 }
 0x2c7   : > { %5008 = vst [vmem:[%s6115_s13 + $0x1d0] sm:$0xff] %v4639_v7   ;;  %5069 = vst [vmem:[%s6115_s13 + $0x3b8] sm:$0xff] %v4944_v8   ;;  %v2455_v15 = vmax.f32 %v2209_v9, 0.0  ;;  %v2333_v21 = vmax.f32 %v1721_v12, 0.0 }
 0x2c8   : > { %v1723_v13 = vpop.f32.mrf.mxu0  ;;  %v2211_v14 = vpop.f32.mrf.mxu1 }
 0x2c9   : > { %v1724_v16 = vadd.f32 %v6570_v51, %v1723_v13  ;;  %v2212_v18 = vadd.f32 %v6570_v51, %v2211_v14 }
 0x2ca   : > { %v5455_v19 = vpop.f32.mrf.mxu0  ;;  %v5699_v20 = vpop.f32.mrf.mxu1 }
 0x2cb   : > { %v2334_v22 = vmax.f32 %v1724_v16, 0.0  ;;  %v2456_v23 = vmax.f32 %v2212_v18, 0.0 }
 0x2cc   : > { %v1728_v24 = vpop.f32.mrf.mxu0 }
 0x2cd   : > { %v4644_v25 = vpack.c.bf16 %v2334_v22, %v2333_v21  ;;  %v4949_v59 = vpack.c.bf16 %v2456_v23, %v2455_v15  ;;  %v1729_v27 = vadd.f32 %v6570_v51, %v1728_v24 }
 0x2ce   : > { %v5458_v26 = vpop.f32.mrf.mxu0 }
 0x2cf   : > { %5009 = vst [vmem:[%s6115_s13 + $0x1d8] sm:$0xff] %v4644_v25   ;;  %5070 = vst [vmem:[%s6115_s13 + $0x3c0] sm:$0xff] %v4949_v59   ;;  %v2335_v30 = vmax.f32 %v1729_v27, 0.0 }
 0x2d0   : > { %v1731_v28 = vpop.f32.mrf.mxu0 }
 0x2d1   : > { %v1732_v29 = vadd.f32 %v6570_v51, %v1731_v28 }
 0x2d2   : > { %v5459_v1 = vpop.f32.mrf.mxu0 }
 0x2d3   : > { %v2336_v31 = vmax.f32 %v1732_v29, 0.0 }
 0x2d5   : > { %v4649_v32 = vpack.c.bf16 %v2336_v31, %v2335_v30 }
 0x2d7   : > { %5010 = vst [vmem:[%s6115_s13 + $0x1e0] sm:$0xff] %v4649_v32  }
 0x2d8 PF: > { %s13_s12 = sadd.s32 1, %s5863_s12  }
 0x2d9   : > { %p10_p4 = scmp.ge.s32.totalorder %s13_s12, 4  }
 0x2db   :  { %12 = sbr.rel (!%p10_p4) target bundleno = 1 (0x1), region = 62 }

// kernel: encoder_cnn_forward.5
= control target key start
LH: loop header
LB: loop body
LE: loop exit
PB: predicated region body
PF: predicated region fallthrough
CT: control target
= control target key end

     0   :  { %s2373_s12 = smov 0   ;;  %s2699_s0 = inlined_call_operand.vmem [shape: bf16[800,384], index: 0, kind: input, shape index: {}]   ;;  %s2700_s1 = inlined_call_operand.vmem [shape: bf16[384,128], index: 1, kind: input, shape index: {}]   ;;  %s2701_s2 = inlined_call_operand.vmem [shape: f32[1,128], index: 2, kind: input, shape index: {}]   ;;  %s2702_s3 = inlined_call_operand.vmem [shape: bf16[800,128], index: 3, kind: output, shape index: {}]  }
   0x1 LB: > { %s1699_s13 = sadd.s32 4294967295, %s2348_s12   ;;  %p1703_p0 = scmp.ge.s32.totalorder %s2348_s12, 1  ;;  %s2348_s12 = sphi %s2373_s12, %s13_s12  }
   0x2   : > { %p139_p1 = scmp.lt.s32.totalorder %s2348_s12, 3 }
   0x4   : > { %p140_p2 = pnand %p1703_p0, %p139_p1 }
   0x5   : > { %s164_s20 = smul.u32 (!%p140_p2), 50, %s1699_s13 }
   0x6   : > { %143 = sbr.rel (%p140_p2) target bundleno = 474 (0x1da), region = 32 }
   0x7   : > { %p165_p3 = scmp.lt.s32.totalorder (!%p140_p2), %s164_s20, 99 }
   0xb   : > { %v2218_v0 = vld [vmem:[%s2700_s1 + $0x38] sm:$0xff]   ;;  %v2350_v1 = vmov 0   ;;  %v2219_v2 = vld [vmem:[%s2700_s1 + $0x30] sm:$0xff]   ;;  %v2351_v3 = vmov 0.0   ;;  %vm2352_vm0 = vmmov 0   ;;  %v2220_v4 = vld [vmem:[%s2700_s1 + $0x28] sm:$0xff]  }
   0xc   : > { %877 = vmatprep.subr.bf16.mxu0 %v2350_v1  ;;  %2090 = vmatprep.subr.bf16.mxu1 %v2351_v3  ;;  %v2226_v5 = vld [vmem:[%s2700_s1 + $0xb8] sm:$0xff]   ;;  %v2221_v6 = vld [vmem:[%s2700_s1 + $0x20] sm:$0xff]   ;;  %v2228_v7 = vld [vmem:[%s2700_s1 + $0xb0] sm:$0xff]   ;;  %s2704_s20 = smov (!%p165_p3, %s164_s20), 99 }
   0xd   : > { %878 = vmatpush1.bf16.msra.mxu0 %v2218_v0  ;;  %2106 = vmatprep.mubr.msk.bf16.mxu1 %vm2352_vm0, %v2351_v3  ;;  %v2222_v8 = vld [vmem:[%s2700_s1 + $0x18] sm:$0xff]   ;;  %v2230_v9 = vld [vmem:[%s2700_s1 + $0xa8] sm:$0xff]   ;;  %v2223_v10 = vld [vmem:[%s2700_s1 + $0x10] sm:$0xff]   ;;  %s2206_s8 = smul.u32 12, %s2704_s20 }
   0xe   : > { %879 = vmatprep.subr.bf16.mxu0 %v2350_v1  ;;  %2091 = vmatpush3.bf16.msra.mxu1 %v2226_v5  ;;  %v2232_v11 = vld [vmem:[%s2700_s1 + $0xa0] sm:$0xff]   ;;  %v2224_v12 = vld [vmem:[%s2700_s1 + $0x8] sm:$0xff]   ;;  %v2234_v13 = vld [vmem:[%s2700_s1 + $0x98] sm:$0xff]  }
   0xf   : > { %2092 = vmatprep.subr.bf16.mxu1 %v2351_v3  ;;  %s2435_s16 = scalar_lea.vmem %s2699_s0, %s2206_s8  ;;  %v2225_v14 = vld [vmem:[%s2700_s1] sm:$0xff]   ;;  %v2236_v15 = vld [vmem:[%s2700_s1 + $0x90] sm:$0xff]   ;;  %v2227_v17 = vld [vmem:[%s2700_s1 + $0x78] sm:$0xff]  }
  0x10   : > { %v2245_v16 = vld [vmem:[%s2435_s16 + $0x4] ss:$12 sps:$4 sm:$0xff]   ;;  %v2238_v18 = vld [vmem:[%s2700_s1 + $0x88] sm:$0xff]   ;;  %v2235_v25 = vld [vmem:[%s2700_s1 + $0x58] sm:$0xff]  }
  0x11   : > { %880 = vmatpush1.bf16.msra.mxu0 %v2219_v2  ;;  %909 = vmatprep.mubr.bf16.mxu0 %v2245_v16  ;;  %v2229_v19 = vld [vmem:[%s2700_s1 + $0x70] sm:$0xff]   ;;  %v2240_v20 = vld [vmem:[%s2700_s1 + $0x80] sm:$0xff]   ;;  %v2231_v22 = vld [vmem:[%s2700_s1 + $0x68] sm:$0xff]  }
  0x12   : > { %881 = vmatprep.subr.bf16.mxu0 %v2350_v1  ;;  %2093 = vmatpush3.bf16.msra.mxu1 %v2228_v7  ;;  %v2241_v21 = vld [vmem:[%s2435_s16 + $0x8] ss:$12 sps:$4 sm:$0xff]   ;;  %v2233_v23 = vld [vmem:[%s2700_s1 + $0x60] sm:$0xff]   ;;  %v2254_v31 = vld [vmem:[%s2435_s16 + $0x50] ss:$12 sps:$4 sm:$0xff]  }
  0x13   : > { %2094 = vmatprep.subr.bf16.mxu1 %v2351_v3  ;;  %v2246_v24 = vld [vmem:[%s2435_s16 + $0x20] ss:$12 sps:$4 sm:$0xff]   ;;  %v2237_v26 = vld [vmem:[%s2700_s1 + $0x50] sm:$0xff]   ;;  %v2250_v27 = vld [vmem:[%s2435_s16 + $0x38] ss:$12 sps:$4 sm:$0xff]  }
  0x14   : > { %v2239_v28 = vld [vmem:[%s2700_s1 + $0x48] sm:$0xff]   ;;  %v2242_v29 = vld [vmem:[%s2700_s1 + $0x40] sm:$0xff]   ;;  %v2253_v36 = vld [vmem:[%s2435_s16 + $0x30] ss:$12 sps:$4 sm:$0xff]  }
  0x15   : > { %882 = vmatpush1.bf16.msra.mxu0 %v2220_v4  ;;  %v2243_v30 = vld [vmem:[%s2435_s16] ss:$12 sps:$4 sm:$0xff]   ;;  %v2247_v32 = vld [vmem:[%s2435_s16 + $0x1c] ss:$12 sps:$4 sm:$0xff]   ;;  %v2249_v33 = vld [vmem:[%s2435_s16 + $0x18] ss:$12 sps:$4 sm:$0xff]  }
  0x16   : > { %883 = vmatprep.subr.bf16.mxu0 %v2350_v1  ;;  %2095 = vmatpush3.bf16.msra.mxu1 %v2230_v9  ;;  %v2258_v34 = vld [vmem:[%s2435_s16 + $0x68] ss:$12 sps:$4 sm:$0xff]   ;;  %v2262_v37 = vld [vmem:[%s2435_s16 + $0x80] ss:$12 sps:$4 sm:$0xff]   ;;  %v2266_v40 = vld [vmem:[%s2435_s16 + $0x98] ss:$12 sps:$4 sm:$0xff]  }
  0x17   : > { %2096 = vmatprep.subr.bf16.mxu1 %v2351_v3  ;;  %v2251_v35 = vld [vmem:[%s2435_s16 + $0x34] ss:$12 sps:$4 sm:$0xff]   ;;  %v2255_v38 = vld [vmem:[%s2435_s16 + $0x4c] ss:$12 sps:$4 sm:$0xff]   ;;  %v2259_v41 = vld [vmem:[%s2435_s16 + $0x64] ss:$12 sps:$4 sm:$0xff]  }
  0x18   : > { %v2257_v39 = vld [vmem:[%s2435_s16 + $0x48] ss:$12 sps:$4 sm:$0xff]   ;;  %v2261_v42 = vld [vmem:[%s2435_s16 + $0x60] ss:$12 sps:$4 sm:$0xff]   ;;  %v2270_v43 = vld [vmem:[%s2435_s16 + $0xb0] ss:$12 sps:$4 sm:$0xff]  }
  0x19   : > { %884 = vmatpush1.bf16.msra.mxu0 %v2221_v6  ;;  %v2263_v44 = vld [vmem:[%s2435_s16 + $0x7c] ss:$12 sps:$4 sm:$0xff]   ;;  %v2265_v45 = vld [vmem:[%s2435_s16 + $0x78] ss:$12 sps:$4 sm:$0xff]   ;;  %v2267_v47 = vld [vmem:[%s2435_s16 + $0x94] ss:$12 sps:$4 sm:$0xff]  }
  0x1a   : > { %885 = vmatprep.subr.bf16.mxu0 %v2350_v1  ;;  %2097 = vmatpush3.bf16.msra.mxu1 %v2232_v11  ;;  %v2274_v46 = vld [vmem:[%s2435_s16 + $0xc8] ss:$12 sps:$4 sm:$0xff]   ;;  %v2269_v48 = vld [vmem:[%s2435_s16 + $0x90] ss:$12 sps:$4 sm:$0xff]   ;;  %v2278_v49 = vld [vmem:[%s2435_s16 + $0xe0] ss:$12 sps:$4 sm:$0xff]  }
  0x1b   : > { %2098 = vmatprep.subr.bf16.mxu1 %v2351_v3  ;;  %v2271_v50 = vld [vmem:[%s2435_s16 + $0xac] ss:$12 sps:$4 sm:$0xff]   ;;  %v2273_v51 = vld [vmem:[%s2435_s16 + $0xa8] ss:$12 sps:$4 sm:$0xff]   ;;  %v2275_v53 = vld [vmem:[%s2435_s16 + $0xc4] ss:$12 sps:$4 sm:$0xff]  }
  0x1c   : > { %v2282_v52 = vld [vmem:[%s2435_s16 + $0xf8] ss:$12 sps:$4 sm:$0xff]   ;;  %v2277_v54 = vld [vmem:[%s2435_s16 + $0xc0] ss:$12 sps:$4 sm:$0xff]   ;;  %v2286_v55 = vld [vmem:[%s2435_s16 + $0x110] ss:$12 sps:$4 sm:$0xff]  }
  0x1d   : > { %886 = vmatpush1.bf16.msra.mxu0 %v2222_v8  ;;  %v2279_v56 = vld [vmem:[%s2435_s16 + $0xdc] ss:$12 sps:$4 sm:$0xff]   ;;  %v2281_v57 = vld [vmem:[%s2435_s16 + $0xd8] ss:$12 sps:$4 sm:$0xff]   ;;  %v2283_v59 = vld [vmem:[%s2435_s16 + $0xf4] ss:$12 sps:$4 sm:$0xff]  }
  0x1e   : > { %887 = vmatprep.subr.bf16.mxu0 %v2350_v1  ;;  %2099 = vmatpush3.bf16.msra.mxu1 %v2234_v13  ;;  %v2290_v58 = vld [vmem:[%s2435_s16 + $0x128] ss:$12 sps:$4 sm:$0xff]   ;;  %v2285_v60 = vld [vmem:[%s2435_s16 + $0xf0] ss:$12 sps:$4 sm:$0xff]   ;;  %v2294_v61 = vld [vmem:[%s2435_s16 + $0x140] ss:$12 sps:$4 sm:$0xff]  }
  0x1f   : > { %2100 = vmatprep.subr.bf16.mxu1 %v2351_v3  ;;  %v2287_v62 = vld [vmem:[%s2435_s16 + $0x10c] ss:$12 sps:$4 sm:$0xff]   ;;  %v2289_v63 = vld [vmem:[%s2435_s16 + $0x108] ss:$12 sps:$4 sm:$0xff]   ;;  %v2302_v4 = vld [vmem:[%s2435_s16 + $0x170] ss:$12 sps:$4 sm:$0xff]  }
  0x20   : > { %v2298_v0 = vld [vmem:[%s2435_s16 + $0x158] ss:$12 sps:$4 sm:$0xff]   ;;  %v2293_v2 = vld [vmem:[%s2435_s16 + $0x120] ss:$12 sps:$4 sm:$0xff]   ;;  %v2295_v5 = vld [vmem:[%s2435_s16 + $0x13c] ss:$12 sps:$4 sm:$0xff]  }
  0x21   : > { %888 = vmatpush1.bf16.msra.mxu0 %v2223_v10  ;;  %v2297_v6 = vld [vmem:[%s2435_s16 + $0x138] ss:$12 sps:$4 sm:$0xff]   ;;  %v2306_v7 = vld [vmem:[%s2435_s16 + $0x188] ss:$12 sps:$4 sm:$0xff]   ;;  %v2301_v9 = vld [vmem:[%s2435_s16 + $0x150] ss:$12 sps:$4 sm:$0xff]  }
  0x22   : > { %889 = vmatprep.subr.bf16.mxu0 %v2350_v1  ;;  %2101 = vmatpush3.bf16.msra.mxu1 %v2236_v15  ;;  %v2299_v8 = vld [vmem:[%s2435_s16 + $0x154] ss:$12 sps:$4 sm:$0xff]   ;;  %v2303_v11 = vld [vmem:[%s2435_s16 + $0x16c] ss:$12 sps:$4 sm:$0xff]   ;;  %v2318_v16 = vld [vmem:[%s2435_s16 + $0x1d0] ss:$12 sps:$4 sm:$0xff]  }
  0x23   : > { %2102 = vmatprep.subr.bf16.mxu1 %v2351_v3  ;;  %v2310_v10 = vld [vmem:[%s2435_s16 + $0x1a0] ss:$12 sps:$4 sm:$0xff]   ;;  %v2314_v13 = vld [vmem:[%s2435_s16 + $0x1b8] ss:$12 sps:$4 sm:$0xff]  }
  0x24   : > { %v2309_v15 = vld [vmem:[%s2435_s16 + $0x180] ss:$12 sps:$4 sm:$0xff]  }
  0x25   : > { %890 = vmatpush1.bf16.msra.mxu0 %v2224_v12  ;;  %v2305_v12 = vld [vmem:[%s2435_s16 + $0x168] ss:$12 sps:$4 sm:$0xff]  }
  0x26   : > { %891 = vmatprep.subr.bf16.mxu0 %v2350_v1  ;;  %2103 = vmatpush3.bf16.msra.mxu1 %v2238_v18  ;;  %v2313_v18 = vld [vmem:[%s2435_s16 + $0x198] ss:$12 sps:$4 sm:$0xff]  }
  0x27   : > { %2104 = vmatprep.subr.bf16.mxu1 %v2351_v3 }
  0x29   : > { %892 = vmatpush1.bf16.msra.mxu0 %v2225_v14  ;;  %v2307_v14 = vld [vmem:[%s2435_s16 + $0x184] ss:$12 sps:$4 sm:$0xff]  }
  0x2a   : > { %893 = vmatprep.subr.bf16.mxu0 %v2350_v1  ;;  %2105 = vmatpush3.bf16.msra.mxu1 %v2240_v20  ;;  %v2315_v20 = vld [vmem:[%s2435_s16 + $0x1b4] ss:$12 sps:$4 sm:$0xff]  }
  0x2d   : > { %894 = vmatpush2.bf16.msra.mxu0 %v2227_v17  ;;  %2107 = vmatmul.mubr.bf16.vlgmr.msra.gmra.mxu1 %v2241_v21  ;;  %v2311_v17 = vld [vmem:[%s2435_s16 + $0x19c] ss:$12 sps:$4 sm:$0xff]  }
  0x2e   : > { %895 = vmatprep.subr.bf16.mxu0 %v2350_v1  ;;  %2110 = vmatprep.mubr.msk.bf16.mxu1 %vm2352_vm0, %v2351_v3  ;;  %v2317_v21 = vld [vmem:[%s2435_s16 + $0x1b0] ss:$12 sps:$4 sm:$0xff]  }
  0x31   : > { %896 = vmatpush2.bf16.msra.mxu0 %v2229_v19  ;;  %v2322_v19 = vld [vmem:[%s2435_s16 + $0x1e8] ss:$12 sps:$4 sm:$0xff]  }
  0x32   : > { %897 = vmatprep.subr.bf16.mxu0 %v2350_v1 }
  0x35   : > { %898 = vmatpush2.bf16.msra.mxu0 %v2231_v22  ;;  %2111 = vmatmul.mubr.bf16.gmra.mxu1 %v2246_v24  ;;  %v2326_v22 = vld [vmem:[%s2435_s16 + $0x200] ss:$12 sps:$4 sm:$0xff]   ;;  %v2321_v24 = vld [vmem:[%s2435_s16 + $0x1c8] ss:$12 sps:$4 sm:$0xff]  }
  0x36   : > { %899 = vmatprep.subr.bf16.mxu0 %v2350_v1  ;;  %2114 = vmatprep.mubr.msk.bf16.mxu1 %vm2352_vm0, %v2351_v3 }
  0x39   : > { %900 = vmatpush2.bf16.msra.mxu0 %v2233_v23  ;;  %v2319_v23 = vld [vmem:[%s2435_s16 + $0x1cc] ss:$12 sps:$4 sm:$0xff]  }
  0x3a   : > { %901 = vmatprep.subr.bf16.mxu0 %v2350_v1 }
  0x3d   : > { %902 = vmatpush2.bf16.msra.mxu0 %v2235_v25  ;;  %2115 = vmatmul.mubr.bf16.gmra.mxu1 %v2250_v27  ;;  %v2330_v25 = vld [vmem:[%s2435_s16 + $0x218] ss:$12 sps:$4 sm:$0xff]   ;;  %v2325_v27 = vld [vmem:[%s2435_s16 + $0x1e0] ss:$12 sps:$4 sm:$0xff]  }
  0x3e   : > { %903 = vmatprep.subr.bf16.mxu0 %v2350_v1  ;;  %2118 = vmatprep.mubr.msk.bf16.mxu1 %vm2352_vm0, %v2351_v3 }
  0x41   : > { %904 = vmatpush2.bf16.msra.mxu0 %v2237_v26  ;;  %v2323_v26 = vld [vmem:[%s2435_s16 + $0x1e4] ss:$12 sps:$4 sm:$0xff]  }
  0x42   : > { %905 = vmatprep.subr.bf16.mxu0 %v2350_v1 }
  0x45   : > { %906 = vmatpush2.bf16.msra.mxu0 %v2239_v28  ;;  %2119 = vmatmul.mubr.bf16.gmra.mxu1 %v2254_v31  ;;  %v2334_v28 = vld [vmem:[%s2435_s16 + $0x230] ss:$12 sps:$4 sm:$0xff]   ;;  %v2338_v31 = vld [vmem:[%s2435_s16 + $0x248] ss:$12 sps:$4 sm:$0xff]  }
  0x46   : > { %907 = vmatprep.subr.bf16.mxu0 %v2350_v1  ;;  %2122 = vmatprep.mubr.msk.bf16.mxu1 %vm2352_vm0, %v2351_v3  ;;  %v2291_v1 = vld [vmem:[%s2435_s16 + $0x124] ss:$12 sps:$4 sm:$0xff]  }
  0x49   : > { %908 = vmatpush2.bf16.msra.mxu0 %v2242_v29  ;;  %v2327_v29 = vld [vmem:[%s2435_s16 + $0x1fc] ss:$12 sps:$4 sm:$0xff]  }
  0x4c   : > { %910 = vmatmul.mubr.bf16.vlgmr.msra.gmra.mxu0 %v2243_v30  ;;  %v2329_v30 = vld [vmem:[%s2435_s16 + $0x1f8] ss:$12 sps:$4 sm:$0xff]  }
  0x4d   : > { %917 = vmatprep.mubr.bf16.mxu0 %v2247_v32  ;;  %2123 = vmatmul.mubr.bf16.gmra.mxu1 %v2258_v34  ;;  %v2331_v32 = vld [vmem:[%s2435_s16 + $0x214] ss:$12 sps:$4 sm:$0xff]  }
  0x4e   : > { %2126 = vmatprep.mubr.msk.bf16.mxu1 %vm2352_vm0, %v2351_v3 }
  0x54   : > { %918 = vmatmul.mubr.bf16.gmra.mxu0 %v2249_v33 }
  0x55   : > { %925 = vmatprep.mubr.bf16.mxu0 %v2251_v35  ;;  %2127 = vmatmul.mubr.bf16.gmra.mxu1 %v2262_v37  ;;  %v2333_v35 = vld [vmem:[%s2435_s16 + $0x210] ss:$12 sps:$4 sm:$0xff]   ;;  %v2335_v37 = vld [vmem:[%s2435_s16 + $0x22c] ss:$12 sps:$4 sm:$0xff]  }
  0x56   : > { %2130 = vmatprep.mubr.msk.bf16.mxu1 %vm2352_vm0, %v2351_v3 }
  0x5c   : > { %926 = vmatmul.mubr.bf16.gmra.mxu0 %v2253_v36 }
  0x5d   : > { %933 = vmatprep.mubr.bf16.mxu0 %v2255_v38  ;;  %2131 = vmatmul.mubr.bf16.gmra.mxu1 %v2266_v40 }
  0x5e   : > { %2134 = vmatprep.mubr.msk.bf16.mxu1 %vm2352_vm0, %v2351_v3 }
  0x64   : > { %934 = vmatmul.mubr.bf16.gmra.mxu0 %v2257_v39 }
  0x65   : > { %941 = vmatprep.mubr.bf16.mxu0 %v2259_v41  ;;  %2135 = vmatmul.mubr.bf16.gmra.mxu1 %v2270_v43 }
  0x66   : > { %2138 = vmatprep.mubr.msk.bf16.mxu1 %vm2352_vm0, %v2351_v3 }
  0x6c   : > { %942 = vmatmul.mubr.bf16.gmra.mxu0 %v2261_v42  ;;  %v2339_v42 = vld [vmem:[%s2435_s16 + $0x244] ss:$12 sps:$4 sm:$0xff]  }
  0x6d   : > { %949 = vmatprep.mubr.bf16.mxu0 %v2263_v44  ;;  %2139 = vmatmul.mubr.bf16.gmra.mxu1 %v2274_v46  ;;  %v2341_v46 = vld [vmem:[%s2435_s16 + $0x240] ss:$12 sps:$4 sm:$0xff]  }
  0x6e   : > { %2142 = vmatprep.mubr.msk.bf16.mxu1 %vm2352_vm0, %v2351_v3 }
  0x74   : > { %950 = vmatmul.mubr.bf16.gmra.mxu0 %v2265_v45 }
  0x75   : > { %957 = vmatprep.mubr.bf16.mxu0 %v2267_v47  ;;  %2143 = vmatmul.mubr.bf16.gmra.mxu1 %v2278_v49 }
  0x76   : > { %2146 = vmatprep.mubr.msk.bf16.mxu1 %vm2352_vm0, %v2351_v3 }
  0x7c   : > { %958 = vmatmul.mubr.bf16.gmra.mxu0 %v2269_v48  ;;  %v2613_v48 = vld [vmem:[%s2701_s2] ss:$0 sm:$0xff] }
  0x7d   : > { %965 = vmatprep.mubr.bf16.mxu0 %v2271_v50  ;;  %2147 = vmatmul.mubr.bf16.gmra.mxu1 %v2282_v52 }
  0x7e   : > { %2150 = vmatprep.mubr.msk.bf16.mxu1 %vm2352_vm0, %v2351_v3 }
  0x84   : > { %966 = vmatmul.mubr.bf16.gmra.mxu0 %v2273_v51 }
  0x85   : > { %973 = vmatprep.mubr.bf16.mxu0 %v2275_v53  ;;  %2151 = vmatmul.mubr.bf16.gmra.mxu1 %v2286_v55 }
  0x86   : > { %2154 = vmatprep.mubr.msk.bf16.mxu1 %vm2352_vm0, %v2351_v3 }
  0x8c   : > { %974 = vmatmul.mubr.bf16.gmra.mxu0 %v2277_v54 }
  0x8d   : > { %981 = vmatprep.mubr.bf16.mxu0 %v2279_v56  ;;  %2155 = vmatmul.mubr.bf16.gmra.mxu1 %v2290_v58 }
  0x8e   : > { %2158 = vmatprep.mubr.msk.bf16.mxu1 %vm2352_vm0, %v2351_v3 }
  0x94   : > { %982 = vmatmul.mubr.bf16.gmra.mxu0 %v2281_v57 }
  0x95   : > { %989 = vmatprep.mubr.bf16.mxu0 %v2283_v59  ;;  %2159 = vmatmul.mubr.bf16.gmra.mxu1 %v2294_v61 }
  0x96   : > { %2162 = vmatprep.mubr.msk.bf16.mxu1 %vm2352_vm0, %v2351_v3 }
  0x9c   : > { %990 = vmatmul.mubr.bf16.gmra.mxu0 %v2285_v60 }
  0x9d   : > { %997 = vmatprep.mubr.bf16.mxu0 %v2287_v62  ;;  %2163 = vmatmul.mubr.bf16.gmra.mxu1 %v2298_v0 }
  0x9e   : > { %2166 = vmatprep.mubr.msk.bf16.mxu1 %vm2352_vm0, %v2351_v3 }
  0xa4   : > { %998 = vmatmul.mubr.bf16.gmra.mxu0 %v2289_v63 }
  0xa5   : > { %1005 = vmatprep.mubr.bf16.mxu0 %v2291_v1  ;;  %2167 = vmatmul.mubr.bf16.gmra.mxu1 %v2302_v4 }
  0xa6   : > { %2170 = vmatprep.mubr.msk.bf16.mxu1 %vm2352_vm0, %v2351_v3 }
  0xac   : > { %1006 = vmatmul.mubr.bf16.gmra.mxu0 %v2293_v2 }
  0xad   : > { %1013 = vmatprep.mubr.bf16.mxu0 %v2295_v5  ;;  %2171 = vmatmul.mubr.bf16.gmra.mxu1 %v2306_v7 }
  0xae   : > { %2174 = vmatprep.mubr.msk.bf16.mxu1 %vm2352_vm0, %v2351_v3 }
  0xb4   : > { %1014 = vmatmul.mubr.bf16.gmra.mxu0 %v2297_v6 }
  0xb5   : > { %1021 = vmatprep.mubr.bf16.mxu0 %v2299_v8  ;;  %2175 = vmatmul.mubr.bf16.gmra.mxu1 %v2310_v10 }
  0xb6   : > { %2178 = vmatprep.mubr.msk.bf16.mxu1 %vm2352_vm0, %v2351_v3 }
  0xbc   : > { %1022 = vmatmul.mubr.bf16.gmra.mxu0 %v2301_v9 }
  0xbd   : > { %1029 = vmatprep.mubr.bf16.mxu0 %v2303_v11  ;;  %2179 = vmatmul.mubr.bf16.gmra.mxu1 %v2314_v13 }
  0xbe   : > { %2182 = vmatprep.mubr.msk.bf16.mxu1 %vm2352_vm0, %v2351_v3 }
  0xc4   : > { %1030 = vmatmul.mubr.bf16.gmra.mxu0 %v2305_v12 }
  0xc5   : > { %1037 = vmatprep.mubr.bf16.mxu0 %v2307_v14  ;;  %2183 = vmatmul.mubr.bf16.gmra.mxu1 %v2318_v16 }
  0xc6   : > { %2186 = vmatprep.mubr.msk.bf16.mxu1 %vm2352_vm0, %v2351_v3 }
  0xcc   : > { %1038 = vmatmul.mubr.bf16.gmra.mxu0 %v2309_v15 }
  0xcd   : > { %1045 = vmatprep.mubr.bf16.mxu0 %v2311_v17  ;;  %2187 = vmatmul.mubr.bf16.gmra.mxu1 %v2322_v19 }
  0xce   : > { %2190 = vmatprep.mubr.msk.bf16.mxu1 %vm2352_vm0, %v2351_v3 }
  0xd4   : > { %1046 = vmatmul.mubr.bf16.gmra.mxu0 %v2313_v18 }
  0xd5   : > { %1053 = vmatprep.mubr.bf16.mxu0 %v2315_v20  ;;  %2191 = vmatmul.mubr.bf16.gmra.mxu1 %v2326_v22 }
  0xd6   : > { %2194 = vmatprep.mubr.msk.bf16.mxu1 %vm2352_vm0, %v2351_v3 }
  0xdc   : > { %1054 = vmatmul.mubr.bf16.gmra.mxu0 %v2317_v21 }
  0xdd   : > { %1061 = vmatprep.mubr.bf16.mxu0 %v2319_v23  ;;  %2195 = vmatmul.mubr.bf16.gmra.mxu1 %v2330_v25 }
  0xde   : > { %2198 = vmatprep.mubr.msk.bf16.mxu1 %vm2352_vm0, %v2351_v3 }
  0xe4   : > { %1062 = vmatmul.mubr.bf16.gmra.mxu0 %v2321_v24 }
  0xe5   : > { %1069 = vmatprep.mubr.bf16.mxu0 %v2323_v26  ;;  %2199 = vmatmul.mubr.bf16.gmra.mxu1 %v2334_v28 }
  0xe6   : > { %2202 = vmatprep.mubr.msk.bf16.mxu1 %vm2352_vm0, %v2351_v3  ;;  %v2337_v3 = vld [vmem:[%s2435_s16 + $0x228] ss:$12 sps:$4 sm:$0xff]   ;;  %s1705_s16 = sshll.u32 %s2704_s20, 2 }
  0xe7   : > { %s2622_s22 = scalar_lea.vmem %s2702_s3, %s1705_s16 }
  0xec   : > { %1070 = vmatmul.mubr.bf16.gmra.mxu0 %v2325_v27 }
  0xed   : > { %1077 = vmatprep.mubr.bf16.mxu0 %v2327_v29  ;;  %v1144_v33 = vpop.f32.mrf.mxu1  ;;  %2203 = vmatmul.mubr.bf16.gmra.mxu1 %v2338_v31 }
  0xef   : > { %v2108_v34 = vpop.f32.mrf.mxu1 }
  0xf1   : > { %v1147_v36 = vpop.f32.mrf.mxu1 }
  0xf3   : > { %v2109_v38 = vpop.f32.mrf.mxu1 }
  0xf4   : > { %1078 = vmatmul.mubr.bf16.gmra.mxu0 %v2329_v30 }
  0xf5   : > { %1085 = vmatprep.mubr.bf16.mxu0 %v2331_v32  ;;  %v1152_v39 = vpop.f32.mrf.mxu1 }
  0xf7   : > { %v2112_v40 = vpop.f32.mrf.mxu1 }
  0xf9   : > { %v1155_v41 = vpop.f32.mrf.mxu1 }
  0xfb   : > { %v2113_v43 = vpop.f32.mrf.mxu1 }
  0xfc   : > { %1086 = vmatmul.mubr.bf16.gmra.mxu0 %v2333_v35 }
  0xfd   : > { %1093 = vmatprep.mubr.bf16.mxu0 %v2335_v37  ;;  %v1160_v44 = vpop.f32.mrf.mxu1 }
  0xff   : > { %v2116_v45 = vpop.f32.mrf.mxu1 }
 0x101   : > { %v1163_v47 = vpop.f32.mrf.mxu1 }
 0x103   : > { %v2117_v49 = vpop.f32.mrf.mxu1 }
 0x104   : > { %1094 = vmatmul.mubr.bf16.gmra.mxu0 %v2337_v3 }
 0x105   : > { %1101 = vmatprep.mubr.bf16.mxu0 %v2339_v42  ;;  %v1168_v51 = vpop.f32.mrf.mxu1 }
 0x107   : > { %v2120_v54 = vpop.f32.mrf.mxu1 }
 0x109   : > { %v1171_v56 = vpop.f32.mrf.mxu1 }
 0x10b   : > { %v2121_v60 = vpop.f32.mrf.mxu1 }
 0x10c   : > { %v911_v50 = vpop.f32.mrf.mxu0  ;;  %1102 = vmatmul.mubr.bf16.gmra.mxu0 %v2341_v46 }
 0x10d   : > { %v912_v52 = vadd.f32 %v2613_v48, %v911_v50  ;;  %v1176_v63 = vpop.f32.mrf.mxu1 }
 0x10e   : > { %v913_v53 = vpop.f32.mrf.mxu0 }
 0x10f   : > { %v1145_v57 = vadd.f32 %v1144_v33, %v912_v52  ;;  %v2124_v5 = vpop.f32.mrf.mxu1 }
 0x110   : > { %v914_v55 = vpop.f32.mrf.mxu0 }
 0x111   : > { %v915_v58 = vadd.f32 %v2613_v48, %v914_v55  ;;  %v1343_v0 = vmax.f32 %v1145_v57, 0.0  ;;  %v1179_v8 = vpop.f32.mrf.mxu1 }
 0x112   : > { %v916_v59 = vpop.f32.mrf.mxu0 }
 0x113   : > { %v1148_v61 = vadd.f32 %v1147_v36, %v915_v58  ;;  %v2125_v12 = vpop.f32.mrf.mxu1 }
 0x114   : > { %v919_v62 = vpop.f32.mrf.mxu0 }
 0x115   : > { %v1344_v1 = vmax.f32 %v1148_v61, 0.0  ;;  %v920_v2 = vadd.f32 %v2613_v48, %v919_v62  ;;  %v1184_v15 = vpop.f32.mrf.mxu1 }
 0x116   : > { %v921_v4 = vpop.f32.mrf.mxu0 }
 0x117   : > { %v1911_v6 = vpack.c.bf16 %v1344_v1, %v1343_v0  ;;  %v1153_v9 = vadd.f32 %v1152_v39, %v920_v2  ;;  %v2128_v20 = vpop.f32.mrf.mxu1 }
 0x118   : > { %v922_v7 = vpop.f32.mrf.mxu0 }
 0x119   : > { %1912 = vst [vmem:[%s2622_s22] sm:$0xff] %v1911_v6   ;;  %v923_v10 = vadd.f32 %v2613_v48, %v922_v7  ;;  %v1345_v16 = vmax.f32 %v1153_v9, 0.0  ;;  %v1187_v23 = vpop.f32.mrf.mxu1 }
 0x11a   : > { %v924_v11 = vpop.f32.mrf.mxu0 }
 0x11b   : > { %v1156_v13 = vadd.f32 %v1155_v41, %v923_v10  ;;  %v2129_v27 = vpop.f32.mrf.mxu1 }
 0x11c   : > { %v927_v14 = vpop.f32.mrf.mxu0 }
 0x11d   : > { %v1346_v17 = vmax.f32 %v1156_v13, 0.0  ;;  %v928_v18 = vadd.f32 %v2613_v48, %v927_v14  ;;  %v1192_v30 = vpop.f32.mrf.mxu1 }
 0x11e   : > { %v929_v19 = vpop.f32.mrf.mxu0 }
 0x11f   : > { %v1916_v21 = vpack.c.bf16 %v1346_v17, %v1345_v16  ;;  %v1161_v24 = vadd.f32 %v1160_v44, %v928_v18  ;;  %v2132_v35 = vpop.f32.mrf.mxu1 }
 0x120   : > { %v930_v22 = vpop.f32.mrf.mxu0 }
 0x121   : > { %2033 = vst [vmem:[%s2622_s22 + $0x8] sm:$0xff] %v1916_v21   ;;  %v931_v25 = vadd.f32 %v2613_v48, %v930_v22  ;;  %v1347_v31 = vmax.f32 %v1161_v24, 0.0  ;;  %v1195_v38 = vpop.f32.mrf.mxu1 }
 0x122   : > { %v932_v26 = vpop.f32.mrf.mxu0 }
 0x123   : > { %v1164_v28 = vadd.f32 %v1163_v47, %v931_v25  ;;  %v2133_v41 = vpop.f32.mrf.mxu1 }
 0x124   : > { %v935_v29 = vpop.f32.mrf.mxu0 }
 0x125   : > { %v1348_v32 = vmax.f32 %v1164_v28, 0.0  ;;  %v936_v33 = vadd.f32 %v2613_v48, %v935_v29  ;;  %v1200_v44 = vpop.f32.mrf.mxu1 }
 0x126   : > { %v937_v34 = vpop.f32.mrf.mxu0 }
 0x127   : > { %v1921_v36 = vpack.c.bf16 %v1348_v32, %v1347_v31  ;;  %v1169_v39 = vadd.f32 %v1168_v51, %v936_v33  ;;  %v2136_v50 = vpop.f32.mrf.mxu1 }
 0x128   : > { %v938_v37 = vpop.f32.mrf.mxu0 }
 0x129   : > { %2034 = vst [vmem:[%s2622_s22 + $0x10] sm:$0xff] %v1921_v36   ;;  %v939_v40 = vadd.f32 %v2613_v48, %v938_v37  ;;  %v1349_v45 = vmax.f32 %v1169_v39, 0.0  ;;  %v1203_v54 = vpop.f32.mrf.mxu1 }
 0x12a   : > { %v940_v3 = vpop.f32.mrf.mxu0 }
 0x12b   : > { %v1172_v42 = vadd.f32 %v1171_v56, %v939_v40  ;;  %v2137_v58 = vpop.f32.mrf.mxu1 }
 0x12c   : > { %v943_v43 = vpop.f32.mrf.mxu0 }
 0x12d   : > { %v1350_v46 = vmax.f32 %v1172_v42, 0.0  ;;  %v944_v47 = vadd.f32 %v2613_v48, %v943_v43  ;;  %v1208_v60 = vpop.f32.mrf.mxu1 }
 0x12e   : > { %v945_v49 = vpop.f32.mrf.mxu0 }
 0x12f   : > { %v1926_v52 = vpack.c.bf16 %v1350_v46, %v1349_v45  ;;  %v1177_v55 = vadd.f32 %v1176_v63, %v944_v47  ;;  %v2140_v2 = vpop.f32.mrf.mxu1 }
 0x130   : > { %v946_v53 = vpop.f32.mrf.mxu0 }
 0x131   : > { %2035 = vst [vmem:[%s2622_s22 + $0x18] sm:$0xff] %v1926_v52   ;;  %v947_v51 = vadd.f32 %v2613_v48, %v946_v53  ;;  %v1351_v61 = vmax.f32 %v1177_v55, 0.0  ;;  %v1211_v6 = vpop.f32.mrf.mxu1 }
 0x132   : > { %v948_v57 = vpop.f32.mrf.mxu0 }
 0x133   : > { %v1180_v59 = vadd.f32 %v1179_v8, %v947_v51  ;;  %v2141_v10 = vpop.f32.mrf.mxu1 }
 0x134   : > { %v951_v56 = vpop.f32.mrf.mxu0 }
 0x135   : > { %v1352_v62 = vmax.f32 %v1180_v59, 0.0  ;;  %v952_v0 = vadd.f32 %v2613_v48, %v951_v56  ;;  %v1216_v12 = vpop.f32.mrf.mxu1 }
 0x136   : > { %v953_v1 = vpop.f32.mrf.mxu0 }
 0x137   : > { %v1931_v4 = vpack.c.bf16 %v1352_v62, %v1351_v61  ;;  %v1185_v7 = vadd.f32 %v1184_v15, %v952_v0  ;;  %v2144_v18 = vpop.f32.mrf.mxu1 }
 0x138   : > { %v954_v5 = vpop.f32.mrf.mxu0 }
 0x139   : > { %2036 = vst [vmem:[%s2622_s22 + $0x20] sm:$0xff] %v1931_v4   ;;  %v955_v63 = vadd.f32 %v2613_v48, %v954_v5  ;;  %v1353_v13 = vmax.f32 %v1185_v7, 0.0  ;;  %v1219_v21 = vpop.f32.mrf.mxu1 }
 0x13a   : > { %v956_v9 = vpop.f32.mrf.mxu0 }
 0x13b   : > { %v1188_v11 = vadd.f32 %v1187_v23, %v955_v63  ;;  %v2145_v25 = vpop.f32.mrf.mxu1 }
 0x13c   : > { %v959_v8 = vpop.f32.mrf.mxu0 }
 0x13d   : > { %v1354_v14 = vmax.f32 %v1188_v11, 0.0  ;;  %v960_v16 = vadd.f32 %v2613_v48, %v959_v8  ;;  %v1224_v27 = vpop.f32.mrf.mxu1 }
 0x13e   : > { %v961_v17 = vpop.f32.mrf.mxu0 }
 0x13f   : > { %v1936_v19 = vpack.c.bf16 %v1354_v14, %v1353_v13  ;;  %v1193_v22 = vadd.f32 %v1192_v30, %v960_v16  ;;  %v2148_v33 = vpop.f32.mrf.mxu1 }
 0x140   : > { %v962_v20 = vpop.f32.mrf.mxu0 }
 0x141   : > { %2037 = vst [vmem:[%s2622_s22 + $0x28] sm:$0xff] %v1936_v19   ;;  %v963_v15 = vadd.f32 %v2613_v48, %v962_v20  ;;  %v1355_v28 = vmax.f32 %v1193_v22, 0.0  ;;  %v1227_v36 = vpop.f32.mrf.mxu1 }
 0x142   : > { %v964_v24 = vpop.f32.mrf.mxu0 }
 0x143   : > { %v1196_v26 = vadd.f32 %v1195_v38, %v963_v15  ;;  %v2149_v40 = vpop.f32.mrf.mxu1 }
 0x144   : > { %v967_v23 = vpop.f32.mrf.mxu0 }
 0x145   : > { %v1356_v29 = vmax.f32 %v1196_v26, 0.0  ;;  %v968_v31 = vadd.f32 %v2613_v48, %v967_v23  ;;  %v1232_v41 = vpop.f32.mrf.mxu1 }
 0x146   : > { %v969_v32 = vpop.f32.mrf.mxu0 }
 0x147   : > { %v1941_v34 = vpack.c.bf16 %v1356_v29, %v1355_v28  ;;  %v1201_v37 = vadd.f32 %v1200_v44, %v968_v31  ;;  %v2152_v47 = vpop.f32.mrf.mxu1 }
 0x148   : > { %v970_v35 = vpop.f32.mrf.mxu0 }
 0x149   : > { %2038 = vst [vmem:[%s2622_s22 + $0x30] sm:$0xff] %v1941_v34   ;;  %v971_v30 = vadd.f32 %v2613_v48, %v970_v35  ;;  %v1357_v42 = vmax.f32 %v1201_v37, 0.0  ;;  %v1235_v52 = vpop.f32.mrf.mxu1 }
 0x14a   : > { %v972_v39 = vpop.f32.mrf.mxu0 }
 0x14b   : > { %v1204_v3 = vadd.f32 %v1203_v54, %v971_v30  ;;  %v2153_v51 = vpop.f32.mrf.mxu1 }
 0x14c   : > { %v975_v38 = vpop.f32.mrf.mxu0 }
 0x14d   : > { %v1358_v43 = vmax.f32 %v1204_v3, 0.0  ;;  %v976_v45 = vadd.f32 %v2613_v48, %v975_v38  ;;  %v1240_v58 = vpop.f32.mrf.mxu1 }
 0x14e   : > { %v977_v46 = vpop.f32.mrf.mxu0 }
 0x14f   : > { %v1946_v49 = vpack.c.bf16 %v1358_v43, %v1357_v42  ;;  %v1209_v53 = vadd.f32 %v1208_v60, %v976_v45  ;;  %v2156_v0 = vpop.f32.mrf.mxu1 }
 0x150   : > { %v978_v50 = vpop.f32.mrf.mxu0 }
 0x151   : > { %2039 = vst [vmem:[%s2622_s22 + $0x38] sm:$0xff] %v1946_v49   ;;  %v979_v44 = vadd.f32 %v2613_v48, %v978_v50  ;;  %v1359_v59 = vmax.f32 %v1209_v53, 0.0  ;;  %v1243_v4 = vpop.f32.mrf.mxu1 }
 0x152   : > { %v980_v55 = vpop.f32.mrf.mxu0 }
 0x153   : > { %v1212_v57 = vadd.f32 %v1211_v6, %v979_v44  ;;  %v2157_v63 = vpop.f32.mrf.mxu1 }
 0x154   : > { %v983_v54 = vpop.f32.mrf.mxu0 }
 0x155   : > { %v1360_v56 = vmax.f32 %v1212_v57, 0.0  ;;  %v984_v61 = vadd.f32 %v2613_v48, %v983_v54  ;;  %v1248_v10 = vpop.f32.mrf.mxu1 }
 0x156   : > { %v985_v62 = vpop.f32.mrf.mxu0 }
 0x157   : > { %v1951_v1 = vpack.c.bf16 %v1360_v56, %v1359_v59  ;;  %v1217_v5 = vadd.f32 %v1216_v12, %v984_v61  ;;  %v2160_v16 = vpop.f32.mrf.mxu1 }
 0x158   : > { %v986_v2 = vpop.f32.mrf.mxu0 }
 0x159   : > { %2040 = vst [vmem:[%s2622_s22 + $0x40] sm:$0xff] %v1951_v1   ;;  %v987_v60 = vadd.f32 %v2613_v48, %v986_v2  ;;  %v1361_v11 = vmax.f32 %v1217_v5, 0.0  ;;  %v1251_v19 = vpop.f32.mrf.mxu1 }
 0x15a   : > { %v988_v7 = vpop.f32.mrf.mxu0 }
 0x15b   : > { %v1220_v9 = vadd.f32 %v1219_v21, %v987_v60  ;;  %v2161_v15 = vpop.f32.mrf.mxu1 }
 0x15c   : > { %v991_v6 = vpop.f32.mrf.mxu0 }
 0x15d   : > { %v1362_v8 = vmax.f32 %v1220_v9, 0.0  ;;  %v992_v13 = vadd.f32 %v2613_v48, %v991_v6  ;;  %v1256_v25 = vpop.f32.mrf.mxu1 }
 0x15e   : > { %v993_v14 = vpop.f32.mrf.mxu0 }
 0x15f   : > { %v1956_v17 = vpack.c.bf16 %v1362_v8, %v1361_v11  ;;  %v1225_v20 = vadd.f32 %v1224_v27, %v992_v13  ;;  %v2164_v31 = vpop.f32.mrf.mxu1 }
 0x160   : > { %v994_v18 = vpop.f32.mrf.mxu0 }
 0x161   : > { %2041 = vst [vmem:[%s2622_s22 + $0x48] sm:$0xff] %v1956_v17   ;;  %v995_v12 = vadd.f32 %v2613_v48, %v994_v18  ;;  %v1363_v26 = vmax.f32 %v1225_v20, 0.0  ;;  %v1259_v34 = vpop.f32.mrf.mxu1 }
 0x162   : > { %v996_v22 = vpop.f32.mrf.mxu0 }
 0x163   : > { %v1228_v24 = vadd.f32 %v1227_v36, %v995_v12  ;;  %v2165_v30 = vpop.f32.mrf.mxu1 }
 0x164   : > { %v999_v21 = vpop.f32.mrf.mxu0 }
 0x165   : > { %v1364_v23 = vmax.f32 %v1228_v24, 0.0  ;;  %v1000_v28 = vadd.f32 %v2613_v48, %v999_v21  ;;  %v1264_v40 = vpop.f32.mrf.mxu1 }
 0x166   : > { %v1001_v29 = vpop.f32.mrf.mxu0 }
 0x167   : > { %v1961_v32 = vpack.c.bf16 %v1364_v23, %v1363_v26  ;;  %v1233_v35 = vadd.f32 %v1232_v41, %v1000_v28  ;;  %v2168_v45 = vpop.f32.mrf.mxu1 }
 0x168   : > { %v1002_v33 = vpop.f32.mrf.mxu0 }
 0x169   : > { %2042 = vst [vmem:[%s2622_s22 + $0x50] sm:$0xff] %v1961_v32   ;;  %v1003_v27 = vadd.f32 %v2613_v48, %v1002_v33  ;;  %v1365_v3 = vmax.f32 %v1233_v35, 0.0  ;;  %v1267_v49 = vpop.f32.mrf.mxu1 }
 0x16a   : > { %v1004_v37 = vpop.f32.mrf.mxu0 }
 0x16b   : > { %v1236_v39 = vadd.f32 %v1235_v52, %v1003_v27  ;;  %v2169_v44 = vpop.f32.mrf.mxu1 }
 0x16c   : > { %v1007_v36 = vpop.f32.mrf.mxu0 }
 0x16d   : > { %v1366_v38 = vmax.f32 %v1236_v39, 0.0  ;;  %v1008_v42 = vadd.f32 %v2613_v48, %v1007_v36  ;;  %v1272_v51 = vpop.f32.mrf.mxu1 }
 0x16e   : > { %v1009_v43 = vpop.f32.mrf.mxu0 }
 0x16f   : > { %v1966_v46 = vpack.c.bf16 %v1366_v38, %v1365_v3  ;;  %v1241_v50 = vadd.f32 %v1240_v58, %v1008_v42  ;;  %v2172_v61 = vpop.f32.mrf.mxu1 }
 0x170   : > { %v1010_v47 = vpop.f32.mrf.mxu0 }
 0x171   : > { %2043 = vst [vmem:[%s2622_s22 + $0x58] sm:$0xff] %v1966_v46   ;;  %v1011_v41 = vadd.f32 %v2613_v48, %v1010_v47  ;;  %v1367_v57 = vmax.f32 %v1241_v50, 0.0  ;;  %v1275_v1 = vpop.f32.mrf.mxu1 }
 0x172   : > { %v1012_v53 = vpop.f32.mrf.mxu0 }
 0x173   : > { %v1244_v55 = vadd.f32 %v1243_v4, %v1011_v41  ;;  %v2173_v60 = vpop.f32.mrf.mxu1 }
 0x174   : > { %v1015_v52 = vpop.f32.mrf.mxu0 }
 0x175   : > { %v1368_v54 = vmax.f32 %v1244_v55, 0.0  ;;  %v1016_v59 = vadd.f32 %v2613_v48, %v1015_v52  ;;  %v1280_v63 = vpop.f32.mrf.mxu1 }
 0x176   : > { %v1017_v56 = vpop.f32.mrf.mxu0 }
 0x177   : > { %v1971_v62 = vpack.c.bf16 %v1368_v54, %v1367_v57  ;;  %v1249_v2 = vadd.f32 %v1248_v10, %v1016_v59  ;;  %v2176_v13 = vpop.f32.mrf.mxu1 }
 0x178   : > { %v1018_v0 = vpop.f32.mrf.mxu0 }
 0x179   : > { %2044 = vst [vmem:[%s2622_s22 + $0x60] sm:$0xff] %v1971_v62   ;;  %v1019_v58 = vadd.f32 %v2613_v48, %v1018_v0  ;;  %v1369_v9 = vmax.f32 %v1249_v2, 0.0  ;;  %v1283_v17 = vpop.f32.mrf.mxu1 }
 0x17a   : > { %v1020_v5 = vpop.f32.mrf.mxu0 }
 0x17b   : > { %v1252_v7 = vadd.f32 %v1251_v19, %v1019_v58  ;;  %v2177_v12 = vpop.f32.mrf.mxu1 }
 0x17c   : > { %v1023_v4 = vpop.f32.mrf.mxu0 }
 0x17d   : > { %v1370_v6 = vmax.f32 %v1252_v7, 0.0  ;;  %v1024_v11 = vadd.f32 %v2613_v48, %v1023_v4  ;;  %v1288_v15 = vpop.f32.mrf.mxu1 }
 0x17e   : > { %v1025_v8 = vpop.f32.mrf.mxu0 }
 0x17f   : > { %v1976_v14 = vpack.c.bf16 %v1370_v6, %v1369_v9  ;;  %v1257_v18 = vadd.f32 %v1256_v25, %v1024_v11  ;;  %v2180_v28 = vpop.f32.mrf.mxu1 }
 0x180   : > { %v1026_v16 = vpop.f32.mrf.mxu0 }
 0x181   : > { %2045 = vst [vmem:[%s2622_s22 + $0x68] sm:$0xff] %v1976_v14   ;;  %v1027_v10 = vadd.f32 %v2613_v48, %v1026_v16  ;;  %v1371_v24 = vmax.f32 %v1257_v18, 0.0  ;;  %v1291_v32 = vpop.f32.mrf.mxu1 }
 0x182   : > { %v1028_v20 = vpop.f32.mrf.mxu0 }
 0x183   : > { %v1260_v22 = vadd.f32 %v1259_v34, %v1027_v10  ;;  %v2181_v27 = vpop.f32.mrf.mxu1 }
 0x184   : > { %v1031_v19 = vpop.f32.mrf.mxu0 }
 0x185   : > { %v1372_v21 = vmax.f32 %v1260_v22, 0.0  ;;  %v1032_v26 = vadd.f32 %v2613_v48, %v1031_v19  ;;  %v1296_v30 = vpop.f32.mrf.mxu1 }
 0x186   : > { %v1033_v23 = vpop.f32.mrf.mxu0 }
 0x187   : > { %v1981_v29 = vpack.c.bf16 %v1372_v21, %v1371_v24  ;;  %v1265_v33 = vadd.f32 %v1264_v40, %v1032_v26  ;;  %v2184_v42 = vpop.f32.mrf.mxu1 }
 0x188   : > { %v1034_v31 = vpop.f32.mrf.mxu0 }
 0x189   : > { %2046 = vst [vmem:[%s2622_s22 + $0x70] sm:$0xff] %v1981_v29   ;;  %v1035_v25 = vadd.f32 %v2613_v48, %v1034_v31  ;;  %v1373_v39 = vmax.f32 %v1265_v33, 0.0  ;;  %v1299_v46 = vpop.f32.mrf.mxu1 }
 0x18a   : > { %v1036_v35 = vpop.f32.mrf.mxu0 }
 0x18b   : > { %v1268_v37 = vadd.f32 %v1267_v49, %v1035_v25  ;;  %v2185_v41 = vpop.f32.mrf.mxu1 }
 0x18c   : > { %v1039_v34 = vpop.f32.mrf.mxu0 }
 0x18d   : > { %v1374_v36 = vmax.f32 %v1268_v37, 0.0  ;;  %v1040_v3 = vadd.f32 %v2613_v48, %v1039_v34  ;;  %v1304_v44 = vpop.f32.mrf.mxu1 }
 0x18e   : > { %v1041_v38 = vpop.f32.mrf.mxu0 }
 0x18f   : > { %v1986_v43 = vpack.c.bf16 %v1374_v36, %v1373_v39  ;;  %v1273_v47 = vadd.f32 %v1272_v51, %v1040_v3  ;;  %v2188_v59 = vpop.f32.mrf.mxu1 }
 0x190   : > { %v1042_v45 = vpop.f32.mrf.mxu0 }
 0x191   : > { %2047 = vst [vmem:[%s2622_s22 + $0x78] sm:$0xff] %v1986_v43   ;;  %v1043_v40 = vadd.f32 %v2613_v48, %v1042_v45  ;;  %v1375_v55 = vmax.f32 %v1273_v47, 0.0  ;;  %v1307_v62 = vpop.f32.mrf.mxu1 }
 0x192   : > { %v1044_v50 = vpop.f32.mrf.mxu0 }
 0x193   : > { %v1276_v53 = vadd.f32 %v1275_v1, %v1043_v40  ;;  %v2189_v58 = vpop.f32.mrf.mxu1 }
 0x194   : > { %v1047_v49 = vpop.f32.mrf.mxu0 }
 0x195   : > { %v1376_v52 = vmax.f32 %v1276_v53, 0.0  ;;  %v1048_v57 = vadd.f32 %v2613_v48, %v1047_v49  ;;  %v1312_v60 = vpop.f32.mrf.mxu1 }
 0x196   : > { %v1049_v54 = vpop.f32.mrf.mxu0 }
 0x197   : > { %v1991_v56 = vpack.c.bf16 %v1376_v52, %v1375_v55  ;;  %v1281_v0 = vadd.f32 %v1280_v63, %v1048_v57  ;;  %v2192_v11 = vpop.f32.mrf.mxu1 }
 0x198   : > { %v1050_v61 = vpop.f32.mrf.mxu0 }
 0x199   : > { %2048 = vst [vmem:[%s2622_s22 + $0x80] sm:$0xff] %v1991_v56   ;;  %v1051_v51 = vadd.f32 %v2613_v48, %v1050_v61  ;;  %v1377_v7 = vmax.f32 %v1281_v0, 0.0  ;;  %v1315_v14 = vpop.f32.mrf.mxu1 }
 0x19a   : > { %v1052_v2 = vpop.f32.mrf.mxu0 }
 0x19b   : > { %v1284_v5 = vadd.f32 %v1283_v17, %v1051_v51  ;;  %v2193_v10 = vpop.f32.mrf.mxu1 }
 0x19c   : > { %v1055_v1 = vpop.f32.mrf.mxu0 }
 0x19d   : > { %v1378_v4 = vmax.f32 %v1284_v5, 0.0  ;;  %v1056_v9 = vadd.f32 %v2613_v48, %v1055_v1  ;;  %v1320_v12 = vpop.f32.mrf.mxu1 }
 0x19e   : > { %v1057_v6 = vpop.f32.mrf.mxu0 }
 0x19f   : > { %v1996_v8 = vpack.c.bf16 %v1378_v4, %v1377_v7  ;;  %v1289_v16 = vadd.f32 %v1288_v15, %v1056_v9  ;;  %v2196_v26 = vpop.f32.mrf.mxu1 }
 0x1a0   : > { %v1058_v13 = vpop.f32.mrf.mxu0 }
 0x1a1   : > { %2049 = vst [vmem:[%s2622_s22 + $0x88] sm:$0xff] %v1996_v8   ;;  %v1059_v63 = vadd.f32 %v2613_v48, %v1058_v13  ;;  %v1379_v22 = vmax.f32 %v1289_v16, 0.0  ;;  %v1323_v29 = vpop.f32.mrf.mxu1 }
 0x1a2   : > { %v1060_v18 = vpop.f32.mrf.mxu0 }
 0x1a3   : > { %v1292_v20 = vadd.f32 %v1291_v32, %v1059_v63  ;;  %v2197_v25 = vpop.f32.mrf.mxu1 }
 0x1a4   : > { %v1063_v17 = vpop.f32.mrf.mxu0 }
 0x1a5   : > { %v1380_v19 = vmax.f32 %v1292_v20, 0.0  ;;  %v1064_v24 = vadd.f32 %v2613_v48, %v1063_v17  ;;  %v1328_v27 = vpop.f32.mrf.mxu1 }
 0x1a6   : > { %v1065_v21 = vpop.f32.mrf.mxu0 }
 0x1a7   : > { %v2001_v23 = vpack.c.bf16 %v1380_v19, %v1379_v22  ;;  %v1297_v31 = vadd.f32 %v1296_v30, %v1064_v24  ;;  %v2200_v3 = vpop.f32.mrf.mxu1 }
 0x1a8   : > { %v1066_v28 = vpop.f32.mrf.mxu0 }
 0x1a9   : > { %2050 = vst [vmem:[%s2622_s22 + $0x90] sm:$0xff] %v2001_v23   ;;  %v1067_v15 = vadd.f32 %v2613_v48, %v1066_v28  ;;  %v1381_v37 = vmax.f32 %v1297_v31, 0.0  ;;  %v1331_v43 = vpop.f32.mrf.mxu1 }
 0x1aa   : > { %v1068_v33 = vpop.f32.mrf.mxu0 }
 0x1ab   : > { %v1300_v35 = vadd.f32 %v1299_v46, %v1067_v15  ;;  %v2201_v40 = vpop.f32.mrf.mxu1 }
 0x1ac   : > { %v1071_v32 = vpop.f32.mrf.mxu0 }
 0x1ad   : > { %v1382_v34 = vmax.f32 %v1300_v35, 0.0  ;;  %v1072_v39 = vadd.f32 %v2613_v48, %v1071_v32  ;;  %v1336_v41 = vpop.f32.mrf.mxu1 }
 0x1ae   : > { %v1073_v36 = vpop.f32.mrf.mxu0 }
 0x1af   : > { %v2006_v38 = vpack.c.bf16 %v1382_v34, %v1381_v37  ;;  %v1305_v45 = vadd.f32 %v1304_v44, %v1072_v39  ;;  %v2204_v57 = vpop.f32.mrf.mxu1 }
 0x1b0   : > { %v1074_v42 = vpop.f32.mrf.mxu0 }
 0x1b1   : > { %2051 = vst [vmem:[%s2622_s22 + $0x98] sm:$0xff] %v2006_v38   ;;  %v1075_v30 = vadd.f32 %v2613_v48, %v1074_v42  ;;  %v1383_v53 = vmax.f32 %v1305_v45, 0.0  ;;  %v1339_v56 = vpop.f32.mrf.mxu1 }
 0x1b2   : > { %v1076_v47 = vpop.f32.mrf.mxu0 }
 0x1b3   : > { %v1308_v50 = vadd.f32 %v1307_v62, %v1075_v30  ;;  %v2205_v51 = vpop.f32.mrf.mxu1 }
 0x1b4   : > { %v1079_v46 = vpop.f32.mrf.mxu0 }
 0x1b5   : > { %v1384_v49 = vmax.f32 %v1308_v50, 0.0  ;;  %v1080_v55 = vadd.f32 %v2613_v48, %v1079_v46 }
 0x1b6   : > { %v1081_v52 = vpop.f32.mrf.mxu0 }
 0x1b7   : > { %v2011_v54 = vpack.c.bf16 %v1384_v49, %v1383_v53  ;;  %v1313_v61 = vadd.f32 %v1312_v60, %v1080_v55 }
 0x1b8   : > { %v1082_v59 = vpop.f32.mrf.mxu0 }
 0x1b9   : > { %2052 = vst [vmem:[%s2622_s22 + $0xa0] sm:$0xff] %v2011_v54   ;;  %v1083_v44 = vadd.f32 %v2613_v48, %v1082_v59  ;;  %v1385_v58 = vmax.f32 %v1313_v61, 0.0 }
 0x1ba   : > { %v1084_v0 = vpop.f32.mrf.mxu0 }
 0x1bb   : > { %v1316_v2 = vadd.f32 %v1315_v14, %v1083_v44 }
 0x1bc   : > { %v1087_v62 = vpop.f32.mrf.mxu0 }
 0x1bd   : > { %v1386_v5 = vmax.f32 %v1316_v2, 0.0  ;;  %v1088_v1 = vadd.f32 %v2613_v48, %v1087_v62 }
 0x1be   : > { %v1089_v7 = vpop.f32.mrf.mxu0 }
 0x1bf   : > { %v2016_v4 = vpack.c.bf16 %v1386_v5, %v1385_v58  ;;  %v1321_v6 = vadd.f32 %v1320_v12, %v1088_v1 }
 0x1c0   : > { %v1090_v9 = vpop.f32.mrf.mxu0 }
 0x1c1   : > { %2053 = vst [vmem:[%s2622_s22 + $0xa8] sm:$0xff] %v2016_v4   ;;  %v1091_v11 = vadd.f32 %v2613_v48, %v1090_v9  ;;  %v1387_v16 = vmax.f32 %v1321_v6, 0.0 }
 0x1c2   : > { %v1092_v8 = vpop.f32.mrf.mxu0 }
 0x1c3   : > { %v1324_v60 = vadd.f32 %v1323_v29, %v1091_v11 }
 0x1c4   : > { %v1095_v13 = vpop.f32.mrf.mxu0 }
 0x1c5   : > { %v1388_v63 = vmax.f32 %v1324_v60, 0.0  ;;  %v1096_v14 = vadd.f32 %v2613_v48, %v1095_v13 }
 0x1c6   : > { %v1097_v18 = vpop.f32.mrf.mxu0 }
 0x1c7   : > { %v2021_v10 = vpack.c.bf16 %v1388_v63, %v1387_v16  ;;  %v1329_v17 = vadd.f32 %v1328_v27, %v1096_v14 }
 0x1c8   : > { %v1098_v20 = vpop.f32.mrf.mxu0 }
 0x1c9   : > { %2054 = vst [vmem:[%s2622_s22 + $0xb0] sm:$0xff] %v2021_v10   ;;  %v1099_v22 = vadd.f32 %v2613_v48, %v1098_v20  ;;  %v1389_v21 = vmax.f32 %v1329_v17, 0.0 }
 0x1ca   : > { %v1100_v19 = vpop.f32.mrf.mxu0 }
 0x1cb   : > { %v1332_v24 = vadd.f32 %v1331_v43, %v1099_v22 }
 0x1cc   : > { %v1103_v12 = vpop.f32.mrf.mxu0 }
 0x1cd   : > { %v1390_v26 = vmax.f32 %v1332_v24, 0.0  ;;  %v1104_v23 = vadd.f32 %v2613_v48, %v1103_v12 }
 0x1ce   : > { %v1105_v28 = vpop.f32.mrf.mxu0 }
 0x1cf   : > { %v2026_v29 = vpack.c.bf16 %v1390_v26, %v1389_v21  ;;  %v1337_v15 = vadd.f32 %v1336_v41, %v1104_v23 }
 0x1d0   : > { %v1106_v31 = vpop.f32.mrf.mxu0 }
 0x1d1   : > { %2055 = vst [vmem:[%s2622_s22 + $0xb8] sm:$0xff] %v2026_v29   ;;  %v1107_v33 = vadd.f32 %v2613_v48, %v1106_v31  ;;  %v1391_v32 = vmax.f32 %v1337_v15, 0.0 }
 0x1d2   : > { %v1108_v25 = vpop.f32.mrf.mxu0 }
 0x1d3   : > { %v1340_v35 = vadd.f32 %v1339_v56, %v1107_v33 }
 0x1d5   : > { %v1392_v27 = vmax.f32 %v1340_v35, 0.0 }
 0x1d7   : > { %v2031_v37 = vpack.c.bf16 %v1392_v27, %v1391_v32 }
 0x1d9   : > { %2056 = vst [vmem:[%s2622_s22 + $0xc0] sm:$0xff] %v2031_v37  }
 0x1da PF: > { %s13_s12 = sadd.s32 1, %s2348_s12  }
 0x1db   : > { %p10_p4 = scmp.ge.s32.totalorder %s13_s12, 4  }
 0x1dd   :  { %12 = sbr.rel (!%p10_p4) target bundleno = 1 (0x1), region = 62 }

// kernel: encoder_cnn_forward.6
= control target key start
LH: loop header
LB: loop body
LE: loop exit
PB: predicated region body
PF: predicated region fallthrough
CT: control target
= control target key end

     0   :  { %s1280_s12 = smov 0   ;;  %s1448_s0 = inlined_call_operand.vmem [shape: bf16[128,640], index: 0, kind: input, shape index: {}]   ;;  %s1449_s1 = inlined_call_operand.vmem [shape: bf16[640,128], index: 1, kind: input, shape index: {}]   ;;  %s1450_s2 = inlined_call_operand.vmem [shape: f32[1,128], index: 2, kind: input, shape index: {}]   ;;  %s1451_s3 = inlined_call_operand.vmem [shape: bf16[128,128], index: 3, kind: output, shape index: {}]  }
   0x1 LB: > { %s932_s13 = sadd.s32 4294967295, %s1258_s12   ;;  %p936_p0 = scmp.ge.s32.totalorder %s1258_s12, 1  ;;  %s1258_s12 = sphi %s1280_s12, %s13_s12  }
   0x2   : > { %p139_p1 = scmp.lt.s32.totalorder %s1258_s12, 3 }
   0x4   : > { %p140_p2 = pnand %p936_p0, %p139_p1 }
   0x5   : > { %s937_s19 = sshll.u32 (!%p140_p2), %s932_s13, 3 }
   0x6   : > { %143 = sbr.rel (%p140_p2) target bundleno = 285 (0x11d), region = 32  ;;  %p165_p3 = scmp.lt.s32.totalorder (!%p140_p2), %s937_s19, 15 }
   0xb   : > { %v1184_v0 = vld [vmem:[%s1449_s1 + $0x78] sm:$0xff]   ;;  %v1188_v4 = vld [vmem:[%s1449_s1 + $0x70] sm:$0xff]   ;;  %v1192_v8 = vld [vmem:[%s1449_s1 + $0x68] sm:$0xff]   ;;  %s1453_s19 = smov (!%p165_p3, %s937_s19), 15 }
   0xc   : > { %v1185_v1 = vld [vmem:[%s1449_s1 + $0xf8] sm:$0xff]   ;;  %1043 = vmatprep.subr.bf16.mxu0 %v1184_v0  ;;  %v1189_v5 = vld [vmem:[%s1449_s1 + $0xf0] sm:$0xff]   ;;  %v1193_v9 = vld [vmem:[%s1449_s1 + $0xe8] sm:$0xff]   ;;  %s1175_s16 = smul.u32 20, %s1453_s19  ;;  %s940_s26 = sshll.u32 %s1453_s19, 2 }
   0xd   : > { %v1186_v2 = vld [vmem:[%s1449_s1 + $0x38] sm:$0xff]   ;;  %1083 = vmatprep.subr.bf16.mxu1 %v1185_v1  ;;  %v1190_v6 = vld [vmem:[%s1449_s1 + $0x30] sm:$0xff]   ;;  %v1194_v10 = vld [vmem:[%s1449_s1 + $0x28] sm:$0xff]   ;;  %s175_s28 = scalar_lea.vmem %s1451_s3, %s940_s26 }
   0xe   : > { %v1187_v3 = vld [vmem:[%s1449_s1 + $0xb8] sm:$0xff]   ;;  %1044 = vmatpush3.bf16.msra.mxu0 %v1186_v2  ;;  %v1191_v7 = vld [vmem:[%s1449_s1 + $0xb0] sm:$0xff]   ;;  %v1195_v11 = vld [vmem:[%s1449_s1 + $0xa8] sm:$0xff]   ;;  %s1386_s13 = scalar_lea.vmem %s1448_s0, %s1175_s16 }
   0xf   : > { %1084 = vmatpush3.bf16.msra.mxu1 %v1187_v3  ;;  %1045 = vmatprep.subr.bf16.mxu0 %v1188_v4  ;;  %v1196_v12 = vld [vmem:[%s1449_s1 + $0x60] sm:$0xff]   ;;  %v1200_v16 = vld [vmem:[%s1449_s1 + $0x58] sm:$0xff]   ;;  %v1204_v20 = vld [vmem:[%s1449_s1 + $0x50] sm:$0xff]  }
  0x10   : > { %1085 = vmatprep.subr.bf16.mxu1 %v1189_v5  ;;  %v1197_v13 = vld [vmem:[%s1449_s1 + $0xe0] sm:$0xff]   ;;  %v1201_v17 = vld [vmem:[%s1449_s1 + $0xd8] sm:$0xff]   ;;  %v1205_v21 = vld [vmem:[%s1449_s1 + $0xd0] sm:$0xff]  }
  0x11   : > { %v1198_v14 = vld [vmem:[%s1449_s1 + $0x20] sm:$0xff]   ;;  %v1202_v18 = vld [vmem:[%s1449_s1 + $0x18] sm:$0xff]   ;;  %v1206_v22 = vld [vmem:[%s1449_s1 + $0x10] sm:$0xff]  }
  0x12   : > { %1046 = vmatpush3.bf16.msra.mxu0 %v1190_v6  ;;  %v1199_v15 = vld [vmem:[%s1449_s1 + $0xa0] sm:$0xff]   ;;  %v1203_v19 = vld [vmem:[%s1449_s1 + $0x98] sm:$0xff]   ;;  %v1207_v23 = vld [vmem:[%s1449_s1 + $0x90] sm:$0xff]  }
  0x13   : > { %1086 = vmatpush3.bf16.msra.mxu1 %v1191_v7  ;;  %1047 = vmatprep.subr.bf16.mxu0 %v1192_v8  ;;  %v1208_v24 = vld [vmem:[%s1449_s1 + $0x48] sm:$0xff]   ;;  %v1212_v28 = vld [vmem:[%s1449_s1 + $0x40] sm:$0xff]   ;;  %v1222_v36 = vld [vmem:[%s1449_s1 + $0x138] sm:$0xff]  }
  0x14   : > { %1087 = vmatprep.subr.bf16.mxu1 %v1193_v9  ;;  %v1209_v25 = vld [vmem:[%s1449_s1 + $0xc8] sm:$0xff]   ;;  %v1213_v29 = vld [vmem:[%s1449_s1 + $0xc0] sm:$0xff]   ;;  %v1223_v37 = vld [vmem:[%s1449_s1 + $0x130] sm:$0xff]  }
  0x15   : > { %v1210_v26 = vld [vmem:[%s1449_s1 + $0x8] sm:$0xff]   ;;  %v1214_v30 = vld [vmem:[%s1449_s1] sm:$0xff]   ;;  %v1234_v45 = vld [vmem:[%s1386_s13 + $0x5c] ss:$20 sps:$4 sm:$0xff]  }
  0x16   : > { %1048 = vmatpush3.bf16.msra.mxu0 %v1194_v10  ;;  %v1211_v27 = vld [vmem:[%s1449_s1 + $0x88] sm:$0xff]   ;;  %v1215_v31 = vld [vmem:[%s1449_s1 + $0x80] sm:$0xff]   ;;  %v1238_v46 = vld [vmem:[%s1449_s1 + $0x118] sm:$0xff]  }
  0x17   : > { %1088 = vmatpush3.bf16.msra.mxu1 %v1195_v11  ;;  %1049 = vmatprep.subr.bf16.mxu0 %v1196_v12  ;;  %v1216_v32 = vld [vmem:[%s1386_s13] ss:$20 sps:$4 sm:$0xff]   ;;  %v1218_v33 = vld [vmem:[%s1386_s13 + $0x4] ss:$20 sps:$4 sm:$0xff]   ;;  %v1219_v34 = vld [vmem:[%s1386_s13 + $0x8] ss:$20 sps:$4 sm:$0xff]  }
  0x18   : > { %1089 = vmatprep.subr.bf16.mxu1 %v1197_v13  ;;  %v1221_v35 = vld [vmem:[%s1386_s13 + $0xc] ss:$20 sps:$4 sm:$0xff]   ;;  %665 = vmatprep.mubr.bf16.mxu0 %v1218_v33  ;;  %v1226_v39 = vld [vmem:[%s1386_s13 + $0x34] ss:$20 sps:$4 sm:$0xff]   ;;  %v1229_v42 = vld [vmem:[%s1386_s13 + $0x30] ss:$20 sps:$4 sm:$0xff]  }
  0x19   : > { %730 = vmatprep.mubr.bf16.mxu1 %v1221_v35  ;;  %v1224_v38 = vld [vmem:[%s1386_s13 + $0x2c] ss:$20 sps:$4 sm:$0xff]   ;;  %v1228_v40 = vld [vmem:[%s1386_s13 + $0x28] ss:$20 sps:$4 sm:$0xff]   ;;  %v1236_v47 = vld [vmem:[%s1386_s13 + $0x50] ss:$20 sps:$4 sm:$0xff]  }
  0x1a   : > { %1050 = vmatpush3.bf16.msra.mxu0 %v1198_v14  ;;  %v1230_v41 = vld [vmem:[%s1449_s1 + $0x128] sm:$0xff]   ;;  %v1231_v44 = vld [vmem:[%s1449_s1 + $0x120] sm:$0xff]   ;;  %v1240_v49 = vld [vmem:[%s1386_s13 + $0x7c] ss:$20 sps:$4 sm:$0xff]  }
  0x1b   : > { %1090 = vmatpush3.bf16.msra.mxu1 %v1199_v15  ;;  %1051 = vmatprep.subr.bf16.mxu0 %v1200_v16  ;;  %v1232_v43 = vld [vmem:[%s1386_s13 + $0x54] ss:$20 sps:$4 sm:$0xff]   ;;  %v1237_v48 = vld [vmem:[%s1386_s13 + $0x58] ss:$20 sps:$4 sm:$0xff]   ;;  %v1248_v55 = vld [vmem:[%s1386_s13 + $0x10] ss:$20 sps:$4 sm:$0xff]  }
  0x1c   : > { %1091 = vmatprep.subr.bf16.mxu1 %v1201_v17  ;;  %v1242_v50 = vld [vmem:[%s1386_s13 + $0x84] ss:$20 sps:$4 sm:$0xff]   ;;  %v1239_v51 = vld [vmem:[%s1449_s1 + $0x110] sm:$0xff]   ;;  %v1246_v52 = vld [vmem:[%s1449_s1 + $0x108] sm:$0xff]  }
  0x1d   : > { %v1244_v53 = vld [vmem:[%s1386_s13 + $0x78] ss:$20 sps:$4 sm:$0xff]   ;;  %v1245_v54 = vld [vmem:[%s1386_s13 + $0x80] ss:$20 sps:$4 sm:$0xff]   ;;  %v1251_v59 = vld [vmem:[%s1386_s13 + $0x88] ss:$20 sps:$4 sm:$0xff]  }
  0x1e   : > { %1052 = vmatpush3.bf16.msra.mxu0 %v1202_v18  ;;  %v1249_v56 = vld [vmem:[%s1386_s13 + $0x60] ss:$20 sps:$4 sm:$0xff]   ;;  %v1250_v58 = vld [vmem:[%s1386_s13 + $0x38] ss:$20 sps:$4 sm:$0xff]  }
  0x1f   : > { %1092 = vmatpush3.bf16.msra.mxu1 %v1203_v19  ;;  %1053 = vmatprep.subr.bf16.mxu0 %v1204_v20  ;;  %v1247_v57 = vld [vmem:[%s1449_s1 + $0x100] sm:$0xff]  }
  0x20   : > { %1093 = vmatprep.subr.bf16.mxu1 %v1205_v21 }
  0x22   : > { %1054 = vmatpush3.bf16.msra.mxu0 %v1206_v22 }
  0x23   : > { %1094 = vmatpush3.bf16.msra.mxu1 %v1207_v23  ;;  %1055 = vmatprep.subr.bf16.mxu0 %v1208_v24 }
  0x24   : > { %1095 = vmatprep.subr.bf16.mxu1 %v1209_v25 }
  0x26   : > { %1056 = vmatpush3.bf16.msra.mxu0 %v1210_v26  ;;  %v941_v26 = vld [vmem:[%s1450_s2] ss:$0 sm:$0xff] }
  0x27   : > { %1096 = vmatpush3.bf16.msra.mxu1 %v1211_v27  ;;  %1057 = vmatprep.subr.bf16.mxu0 %v1212_v28 }
  0x28   : > { %1097 = vmatprep.subr.bf16.mxu1 %v1213_v29 }
  0x2a   : > { %1058 = vmatpush3.bf16.msra.mxu0 %v1214_v30 }
  0x2b   : > { %1098 = vmatpush3.bf16.msra.mxu1 %v1215_v31  ;;  %1135 = vmatprep.subr.bf16.mxu0 %v1222_v36 }
  0x2c   : > { %1159 = vmatprep.subr.bf16.mxu1 %v1222_v36 }
  0x2d   : > { %666 = vmatmul.mubr.bf16.vlgmr.msra.gmra.mxu0 %v1216_v32 }
  0x2e   : > { %731 = vmatmul.mubr.bf16.vlgmr.msra.gmra.mxu1 %v1219_v34  ;;  %1136 = vmatpush3.bf16.msra.mxu0 %v1222_v36 }
  0x2f   : > { %1167 = vmatpush3.bf16.msra.mxu1 %v1222_v36  ;;  %1137 = vmatprep.subr.bf16.mxu0 %v1223_v37 }
  0x30   : > { %1160 = vmatprep.subr.bf16.mxu1 %v1223_v37  ;;  %673 = vmatprep.mubr.bf16.mxu0 %v1224_v38 }
  0x31   : > { %738 = vmatprep.mubr.bf16.mxu1 %v1226_v39 }
  0x32   : > { %1138 = vmatpush3.bf16.msra.mxu0 %v1223_v37 }
  0x33   : > { %1168 = vmatpush3.bf16.msra.mxu1 %v1223_v37  ;;  %1139 = vmatprep.subr.bf16.mxu0 %v1230_v41 }
  0x34   : > { %1161 = vmatprep.subr.bf16.mxu1 %v1230_v41 }
  0x35   : > { %674 = vmatmul.mubr.bf16.gmra.mxu0 %v1228_v40 }
  0x36   : > { %739 = vmatmul.mubr.bf16.gmra.mxu1 %v1229_v42  ;;  %681 = vmatprep.mubr.bf16.mxu0 %v1232_v43 }
  0x37   : > { %1140 = vmatpush3.bf16.msra.mxu0 %v1230_v41  ;;  %746 = vmatprep.mubr.bf16.mxu1 %v1234_v45 }
  0x38   : > { %1169 = vmatpush3.bf16.msra.mxu1 %v1230_v41  ;;  %1141 = vmatprep.subr.bf16.mxu0 %v1231_v44 }
  0x39   : > { %1162 = vmatprep.subr.bf16.mxu1 %v1231_v44 }
  0x3b   : > { %1142 = vmatpush3.bf16.msra.mxu0 %v1231_v44 }
  0x3c   : > { %1170 = vmatpush3.bf16.msra.mxu1 %v1231_v44  ;;  %1143 = vmatprep.subr.bf16.mxu0 %v1238_v46 }
  0x3d   : > { %682 = vmatmul.mubr.bf16.gmra.mxu0 %v1236_v47  ;;  %1163 = vmatprep.subr.bf16.mxu1 %v1238_v46 }
  0x3e   : > { %747 = vmatmul.mubr.bf16.gmra.mxu1 %v1237_v48  ;;  %689 = vmatprep.mubr.bf16.mxu0 %v1240_v49 }
  0x3f   : > { %1144 = vmatpush3.bf16.msra.mxu0 %v1238_v46  ;;  %754 = vmatprep.mubr.bf16.mxu1 %v1242_v50 }
  0x40   : > { %1171 = vmatpush3.bf16.msra.mxu1 %v1238_v46  ;;  %1145 = vmatprep.subr.bf16.mxu0 %v1239_v51 }
  0x41   : > { %1164 = vmatprep.subr.bf16.mxu1 %v1239_v51 }
  0x43   : > { %1146 = vmatpush3.bf16.msra.mxu0 %v1239_v51 }
  0x44   : > { %1172 = vmatpush3.bf16.msra.mxu1 %v1239_v51  ;;  %1147 = vmatprep.subr.bf16.mxu0 %v1246_v52 }
  0x45   : > { %690 = vmatmul.mubr.bf16.gmra.mxu0 %v1244_v53  ;;  %1165 = vmatprep.subr.bf16.mxu1 %v1246_v52 }
  0x46   : > { %755 = vmatmul.mubr.bf16.gmra.mxu1 %v1245_v54  ;;  %1151 = vmatprep.mubr.bf16.mxu0 %v1248_v55 }
  0x47   : > { %1148 = vmatpush3.bf16.msra.mxu0 %v1246_v52  ;;  %1155 = vmatprep.mubr.bf16.mxu1 %v1249_v56 }
  0x48   : > { %1173 = vmatpush3.bf16.msra.mxu1 %v1246_v52  ;;  %1149 = vmatprep.subr.bf16.mxu0 %v1247_v57 }
  0x49   : > { %1166 = vmatprep.subr.bf16.mxu1 %v1247_v57 }
  0x4b   : > { %1150 = vmatpush3.bf16.msra.mxu0 %v1247_v57 }
  0x4c   : > { %1174 = vmatpush3.bf16.msra.mxu1 %v1247_v57 }
  0x4e   : > { %1152 = vmatmul.mubr.bf16.vlgmr.msra.gmra.mxu0 %v1250_v58 }
  0x4f   : > { %1156 = vmatmul.mubr.bf16.vlgmr.msra.gmra.mxu1 %v1251_v59 }
  0xed   : > { %v1059_v60 = vpop.f32.mrf.mxu0 }
  0xee   : > { %v1099_v61 = vpop.f32.mrf.mxu1 }
  0xef   : > { %v1060_v62 = vpop.f32.mrf.mxu0 }
  0xf0   : > { %v1100_v63 = vpop.f32.mrf.mxu1  ;;  %v1061_v27 = vadd.f32 %v1060_v62, %v1059_v60 }
  0xf1   : > { %v1062_v0 = vpop.f32.mrf.mxu0  ;;  %v1101_v48 = vadd.f32 %v1100_v63, %v1099_v61 }
  0xf2   : > { %v1102_v1 = vpop.f32.mrf.mxu1  ;;  %v668_v40 = vadd.f32 %v1061_v27, %v941_v26 }
  0xf3   : > { %v1063_v2 = vpop.f32.mrf.mxu0 }
  0xf4   : > { %v1103_v3 = vpop.f32.mrf.mxu1  ;;  %v1064_v33 = vadd.f32 %v1063_v2, %v1062_v0  ;;  %v733_v59 = vadd.f32 %v1101_v48, %v668_v40 }
  0xf5   : > { %v1065_v4 = vpop.f32.mrf.mxu0  ;;  %v1104_v57 = vadd.f32 %v1103_v3, %v1102_v1 }
  0xf6   : > { %v1105_v5 = vpop.f32.mrf.mxu1  ;;  %v671_v49 = vadd.f32 %v1064_v33, %v941_v26 }
  0xf7   : > { %v1066_v6 = vpop.f32.mrf.mxu0 }
  0xf8   : > { %v1106_v7 = vpop.f32.mrf.mxu1  ;;  %v1067_v22 = vadd.f32 %v1066_v6, %v1065_v4 }
  0xf9   : > { %v1068_v8 = vpop.f32.mrf.mxu0  ;;  %v1107_v41 = vadd.f32 %v1106_v7, %v1105_v5  ;;  %v736_v7 = vadd.f32 %v1104_v57, %v671_v49 }
  0xfa   : > { %v1108_v9 = vpop.f32.mrf.mxu1  ;;  %v676_v34 = vadd.f32 %v1067_v22, %v941_v26 }
  0xfb   : > { %v1069_v10 = vpop.f32.mrf.mxu0 }
  0xfc   : > { %v1109_v11 = vpop.f32.mrf.mxu1  ;;  %v1070_v28 = vadd.f32 %v1069_v10, %v1068_v8  ;;  %v741_v51 = vadd.f32 %v1107_v41, %v676_v34 }
  0xfd   : > { %v1071_v12 = vpop.f32.mrf.mxu0  ;;  %v1110_v50 = vadd.f32 %v1109_v11, %v1108_v9 }
  0xfe   : > { %v1111_v13 = vpop.f32.mrf.mxu1  ;;  %v679_v42 = vadd.f32 %v1070_v28, %v941_v26 }
  0xff   : > { %v1072_v14 = vpop.f32.mrf.mxu0 }
 0x100   : > { %v1112_v15 = vpop.f32.mrf.mxu1  ;;  %v1073_v30 = vadd.f32 %v1072_v14, %v1071_v12  ;;  %v744_v62 = vadd.f32 %v1110_v50, %v679_v42 }
 0x101   : > { %v1074_v16 = vpop.f32.mrf.mxu0  ;;  %v1113_v53 = vadd.f32 %v1112_v15, %v1111_v13 }
 0x102   : > { %v1114_v17 = vpop.f32.mrf.mxu1  ;;  %v684_v43 = vadd.f32 %v1073_v30, %v941_v26 }
 0x103   : > { %v1075_v18 = vpop.f32.mrf.mxu0 }
 0x104   : > { %v1115_v19 = vpop.f32.mrf.mxu1  ;;  %v1076_v36 = vadd.f32 %v1075_v18, %v1074_v16  ;;  %v749_v4 = vadd.f32 %v1113_v53, %v684_v43 }
 0x105   : > { %v1077_v20 = vpop.f32.mrf.mxu0  ;;  %v1116_v0 = vadd.f32 %v1115_v19, %v1114_v17 }
 0x106   : > { %v1117_v21 = vpop.f32.mrf.mxu1  ;;  %v687_v54 = vadd.f32 %v1076_v36, %v941_v26 }
 0x107   : > { %v1078_v23 = vpop.f32.mrf.mxu0 }
 0x108   : > { %v1079_v24 = vadd.f32 %v1078_v23, %v1077_v20  ;;  %v1118_v25 = vpop.f32.mrf.mxu1  ;;  %v752_v11 = vadd.f32 %v1116_v0, %v687_v54 }
 0x109   : > { %v1080_v29 = vpop.f32.mrf.mxu0  ;;  %v1119_v37 = vadd.f32 %v1118_v25, %v1117_v21 }
 0x10a   : > { %v692_v31 = vadd.f32 %v1079_v24, %v941_v26  ;;  %v1120_v32 = vpop.f32.mrf.mxu1 }
 0x10b   : > { %v1081_v35 = vpop.f32.mrf.mxu0 }
 0x10c   : > { %v1082_v38 = vadd.f32 %v1081_v35, %v1080_v29  ;;  %v1121_v39 = vpop.f32.mrf.mxu1  ;;  %v757_v47 = vadd.f32 %v1119_v37, %v692_v31 }
 0x10d   : > { %v1122_v45 = vadd.f32 %v1121_v39, %v1120_v32 }
 0x10e   : > { %v695_v44 = vadd.f32 %v1082_v38, %v941_v26  ;;  %v1153_v46 = vpop.f32.mrf.mxu0 }
 0x10f   : > { %v1157_v52 = vpop.f32.mrf.mxu1  ;;  %v806_v58 = vadd.f32 %v1153_v46, %v741_v51 }
 0x110   : > { %v797_v55 = vpop.f32.mrf.mxu0  ;;  %v760_v56 = vadd.f32 %v1122_v45, %v695_v44  ;;  %v822_v2 = vadd.f32 %v1157_v52, %v757_v47 }
 0x111   : > { %v813_v60 = vpop.f32.mrf.mxu1  ;;  %v798_v6 = vadd.f32 %v797_v55, %v733_v59  ;;  %v830_v12 = vmax.f32 %v806_v58, 0.0 }
 0x112   : > { %v1154_v5 = vpop.f32.mrf.mxu0  ;;  %v814_v8 = vadd.f32 %v813_v60, %v749_v4  ;;  %v834_v14 = vmax.f32 %v822_v2, 0.0 }
 0x113   : > { %v809_v61 = vadd.f32 %v1154_v5, %v744_v62  ;;  %v1158_v63 = vpop.f32.mrf.mxu1  ;;  %v828_v17 = vmax.f32 %v798_v6, 0.0 }
 0x114   : > { %v825_v9 = vadd.f32 %v1158_v63, %v760_v56  ;;  %v800_v10 = vpop.f32.mrf.mxu0  ;;  %v832_v20 = vmax.f32 %v814_v8, 0.0 }
 0x115   : > { %v831_v13 = vmax.f32 %v809_v61, 0.0  ;;  %v801_v1 = vadd.f32 %v800_v10, %v736_v7  ;;  %v816_v3 = vpop.f32.mrf.mxu1 }
 0x116   : > { %v835_v15 = vmax.f32 %v825_v9, 0.0  ;;  %v817_v16 = vadd.f32 %v816_v3, %v752_v11 }
 0x117   : > { %v1028_v18 = vpack.c.bf16 %v831_v13, %v830_v12  ;;  %v829_v19 = vmax.f32 %v801_v1, 0.0 }
 0x118   : > { %v1038_v21 = vpack.c.bf16 %v835_v15, %v834_v14  ;;  %v833_v22 = vmax.f32 %v817_v16, 0.0 }
 0x119   : > { %1040 = vst [vmem:[%s175_s28 + $0x8] sm:$0xff] %v1028_v18   ;;  %v1023_v23 = vpack.c.bf16 %v829_v19, %v828_v17 }
 0x11a   : > { %1042 = vst [vmem:[%s175_s28 + $0x18] sm:$0xff] %v1038_v21   ;;  %v1033_v24 = vpack.c.bf16 %v833_v22, %v832_v20 }
 0x11b   : > { %1024 = vst [vmem:[%s175_s28] sm:$0xff] %v1023_v23  }
 0x11c   : > { %1041 = vst [vmem:[%s175_s28 + $0x10] sm:$0xff] %v1033_v24  }
 0x11d PF: > { %s13_s12 = sadd.s32 1, %s1258_s12  }
 0x11e   : > { %p10_p4 = scmp.ge.s32.totalorder %s13_s12, 4  }
 0x120   :  { %12 = sbr.rel (!%p10_p4) target bundleno = 1 (0x1), region = 62 }

// kernel: encoder_cnn_forward.7
= control target key start
LH: loop header
LB: loop body
LE: loop exit
PB: predicated region body
PF: predicated region fallthrough
CT: control target
= control target key end

     0   :  { %v2409_v2 = vmov 0   ;;  %s3060_s0 = inlined_call_operand.vmem [shape: bf16[16,8,128], index: 0, kind: input, shape index: {}]   ;;  %s3061_s1 = inlined_call_operand.vmem [shape: bf16[9,128,256], index: 1, kind: input, shape index: {}]   ;;  %s3062_s2 = inlined_call_operand.vmem [shape: f32[1,256], index: 2, kind: input, shape index: {}]   ;;  %s3063_s3 = inlined_call_operand.vmem [shape: bf16[256,128], index: 3, kind: input, shape index: {}]   ;;  %s3064_s4 = inlined_call_operand.vmem [shape: f32[1,128], index: 4, kind: input, shape index: {}]   ;;  %s3065_s5 = inlined_call_operand.vmem [shape: bf16[128,128], index: 5, kind: input, shape index: {}]   ;;  %s3066_s6 = inlined_call_operand.vmem [shape: f32[1,128], index: 6, kind: input, shape index: {}]   ;;  %s3067_s7 = inlined_call_operand.vmem [shape: bf16[128,128], index: 7, kind: input, shape index: {}]   ;;  %s3068_s8 = inlined_call_operand.vmem [shape: f32[1,128], index: 8, kind: input, shape index: {}]   ;;  %s3069_s9 = inlined_call_operand.hbm [shape: f32[8,128], index: 9, kind: output, shape index: {}]  }
   0x1   :  { %v2139_v0 = vld [vmem:[%s3061_s1 + $0xf4] ss:$8 sps:$4 sm:$0xff]   ;;  %182 = vmatprep.mubr.bf16.mxu0 %v2409_v2  ;;  %303 = vmatprep.mubr.bf16.mxu1 %v2409_v2  ;;  %v2143_v3 = vld [vmem:[%s3061_s1 + $0xf0] ss:$8 sps:$4 sm:$0xff]   ;;  %v2145_v5 = vld [vmem:[%s3061_s1 + $0xe4] ss:$8 sps:$4 sm:$0xff]  }
   0x2   :  { %v2141_v1 = vld [vmem:[%s3061_s1 + $0x74] ss:$8 sps:$4 sm:$0xff]   ;;  %150 = vmatprep.subr.bf16.mxu0 %v2139_v0  ;;  %v2144_v4 = vld [vmem:[%s3061_s1 + $0x70] ss:$8 sps:$4 sm:$0xff]   ;;  %v2147_v6 = vld [vmem:[%s3061_s1 + $0x64] ss:$8 sps:$4 sm:$0xff]  }
   0x3   :  { %271 = vmatprep.subr.bf16.mxu1 %v2141_v1  ;;  %151 = vmatpush1.bf16.msra.mxu0 %v2143_v3  ;;  %v2149_v7 = vld [vmem:[%s3061_s1 + $0xe0] ss:$8 sps:$4 sm:$0xff]   ;;  %v2151_v9 = vld [vmem:[%s3061_s1 + $0xd4] ss:$8 sps:$4 sm:$0xff]   ;;  %v2155_v11 = vld [vmem:[%s3061_s1 + $0xd0] ss:$8 sps:$4 sm:$0xff]  }
   0x4   :  { %272 = vmatpush1.bf16.msra.mxu1 %v2144_v4  ;;  %152 = vmatprep.subr.bf16.mxu0 %v2145_v5  ;;  %v2150_v8 = vld [vmem:[%s3061_s1 + $0x60] ss:$8 sps:$4 sm:$0xff]   ;;  %v2153_v10 = vld [vmem:[%s3061_s1 + $0x54] ss:$8 sps:$4 sm:$0xff]   ;;  %v2156_v12 = vld [vmem:[%s3061_s1 + $0x50] ss:$8 sps:$4 sm:$0xff]  }
   0x5   :  { %273 = vmatprep.subr.bf16.mxu1 %v2147_v6  ;;  %v2157_v13 = vld [vmem:[%s3061_s1 + $0xc4] ss:$8 sps:$4 sm:$0xff]   ;;  %v2161_v15 = vld [vmem:[%s3061_s1 + $0xc0] ss:$8 sps:$4 sm:$0xff]   ;;  %v2163_v17 = vld [vmem:[%s3061_s1 + $0xb4] ss:$8 sps:$4 sm:$0xff]  }
   0x6   :  { %v2159_v14 = vld [vmem:[%s3061_s1 + $0x44] ss:$8 sps:$4 sm:$0xff]   ;;  %v2162_v16 = vld [vmem:[%s3061_s1 + $0x40] ss:$8 sps:$4 sm:$0xff]   ;;  %v2165_v18 = vld [vmem:[%s3061_s1 + $0x34] ss:$8 sps:$4 sm:$0xff]  }
   0x7   :  { %153 = vmatpush1.bf16.msra.mxu0 %v2149_v7  ;;  %v2167_v19 = vld [vmem:[%s3061_s1 + $0xb0] ss:$8 sps:$4 sm:$0xff]   ;;  %v2169_v21 = vld [vmem:[%s3061_s1 + $0xa4] ss:$8 sps:$4 sm:$0xff]   ;;  %v2173_v23 = vld [vmem:[%s3061_s1 + $0xa0] ss:$8 sps:$4 sm:$0xff]  }
   0x8   :  { %274 = vmatpush1.bf16.msra.mxu1 %v2150_v8  ;;  %154 = vmatprep.subr.bf16.mxu0 %v2151_v9  ;;  %v2168_v20 = vld [vmem:[%s3061_s1 + $0x30] ss:$8 sps:$4 sm:$0xff]   ;;  %v2171_v22 = vld [vmem:[%s3061_s1 + $0x24] ss:$8 sps:$4 sm:$0xff]   ;;  %v2174_v24 = vld [vmem:[%s3061_s1 + $0x20] ss:$8 sps:$4 sm:$0xff]  }
   0x9   :  { %275 = vmatprep.subr.bf16.mxu1 %v2153_v10  ;;  %v2175_v25 = vld [vmem:[%s3061_s1 + $0x94] ss:$8 sps:$4 sm:$0xff]   ;;  %v2179_v27 = vld [vmem:[%s3061_s1 + $0x90] ss:$8 sps:$4 sm:$0xff]   ;;  %v2181_v29 = vld [vmem:[%s3061_s1 + $0x84] ss:$8 sps:$4 sm:$0xff]  }
   0xa   :  { %v2177_v26 = vld [vmem:[%s3061_s1 + $0x14] ss:$8 sps:$4 sm:$0xff]   ;;  %v2180_v28 = vld [vmem:[%s3061_s1 + $0x10] ss:$8 sps:$4 sm:$0xff]   ;;  %v2183_v30 = vld [vmem:[%s3061_s1 + $0x4] ss:$8 sps:$4 sm:$0xff]  }
   0xb   :  { %155 = vmatpush1.bf16.msra.mxu0 %v2155_v11  ;;  %v2185_v31 = vld [vmem:[%s3061_s1 + $0x80] ss:$8 sps:$4 sm:$0xff]   ;;  %v2189_v33 = vld [vmem:[%s3061_s1 + $0x174] ss:$8 sps:$4 sm:$0xff]   ;;  %v1740_v35 = vld [vmem:[%s3060_s0 + $0x4] sm:$0xf] }
   0xc   :  { %276 = vmatpush1.bf16.msra.mxu1 %v2156_v12  ;;  %156 = vmatprep.subr.bf16.mxu0 %v2157_v13  ;;  %v2186_v32 = vld [vmem:[%s3061_s1] ss:$8 sps:$4 sm:$0xff]   ;;  %v2192_v34 = vld [vmem:[%s3061_s1 + $0x1f4] ss:$8 sps:$4 sm:$0xff]   ;;  %v2187_v37 = vld [vmem:[%s3061_s1 + $0x170] ss:$8 sps:$4 sm:$0xff]  }
   0xd   :  { %277 = vmatprep.subr.bf16.mxu1 %v2159_v14  ;;  %v34_v36 = vld [vmem:[%s3060_s0] sm:$0xf]  ;;  %v2190_v38 = vld [vmem:[%s3061_s1 + $0x1f0] ss:$8 sps:$4 sm:$0xff]   ;;  %v2195_v39 = vld [vmem:[%s3061_s1 + $0x164] ss:$8 sps:$4 sm:$0xff]  }
   0xe   :  { %v2198_v40 = vld [vmem:[%s3061_s1 + $0x1e4] ss:$8 sps:$4 sm:$0xff]   ;;  %v2193_v41 = vld [vmem:[%s3061_s1 + $0x160] ss:$8 sps:$4 sm:$0xff]   ;;  %v2201_v43 = vld [vmem:[%s3061_s1 + $0x154] ss:$8 sps:$4 sm:$0xff]  }
   0xf   :  { %157 = vmatpush1.bf16.msra.mxu0 %v2161_v15  ;;  %v2196_v42 = vld [vmem:[%s3061_s1 + $0x1e0] ss:$8 sps:$4 sm:$0xff]   ;;  %v2204_v44 = vld [vmem:[%s3061_s1 + $0x1d4] ss:$8 sps:$4 sm:$0xff]   ;;  %v2199_v45 = vld [vmem:[%s3061_s1 + $0x150] ss:$8 sps:$4 sm:$0xff]  }
  0x10   :  { %278 = vmatpush1.bf16.msra.mxu1 %v2162_v16  ;;  %158 = vmatprep.subr.bf16.mxu0 %v2163_v17  ;;  %v2202_v46 = vld [vmem:[%s3061_s1 + $0x1d0] ss:$8 sps:$4 sm:$0xff]   ;;  %v2207_v47 = vld [vmem:[%s3061_s1 + $0x144] ss:$8 sps:$4 sm:$0xff]   ;;  %v2205_v49 = vld [vmem:[%s3061_s1 + $0x140] ss:$8 sps:$4 sm:$0xff]  }
  0x11   :  { %279 = vmatprep.subr.bf16.mxu1 %v2165_v18  ;;  %v2210_v48 = vld [vmem:[%s3061_s1 + $0x1c4] ss:$8 sps:$4 sm:$0xff]   ;;  %v2208_v50 = vld [vmem:[%s3061_s1 + $0x1c0] ss:$8 sps:$4 sm:$0xff]   ;;  %v2213_v51 = vld [vmem:[%s3061_s1 + $0x134] ss:$8 sps:$4 sm:$0xff]  }
  0x12   :  { %v2216_v52 = vld [vmem:[%s3061_s1 + $0x1b4] ss:$8 sps:$4 sm:$0xff]   ;;  %v2211_v53 = vld [vmem:[%s3061_s1 + $0x130] ss:$8 sps:$4 sm:$0xff]   ;;  %v2219_v55 = vld [vmem:[%s3061_s1 + $0x124] ss:$8 sps:$4 sm:$0xff]  }
  0x13   :  { %159 = vmatpush1.bf16.msra.mxu0 %v2167_v19  ;;  %v2214_v54 = vld [vmem:[%s3061_s1 + $0x1b0] ss:$8 sps:$4 sm:$0xff]   ;;  %v2222_v56 = vld [vmem:[%s3061_s1 + $0x1a4] ss:$8 sps:$4 sm:$0xff]   ;;  %v2217_v57 = vld [vmem:[%s3061_s1 + $0x120] ss:$8 sps:$4 sm:$0xff]  }
  0x14   :  { %280 = vmatpush1.bf16.msra.mxu1 %v2168_v20  ;;  %160 = vmatprep.subr.bf16.mxu0 %v2169_v21  ;;  %v2220_v58 = vld [vmem:[%s3061_s1 + $0x1a0] ss:$8 sps:$4 sm:$0xff]   ;;  %v2225_v59 = vld [vmem:[%s3061_s1 + $0x114] ss:$8 sps:$4 sm:$0xff]   ;;  %v2223_v61 = vld [vmem:[%s3061_s1 + $0x110] ss:$8 sps:$4 sm:$0xff]  }
  0x15   :  { %281 = vmatprep.subr.bf16.mxu1 %v2171_v22  ;;  %v2228_v60 = vld [vmem:[%s3061_s1 + $0x194] ss:$8 sps:$4 sm:$0xff]   ;;  %v2226_v62 = vld [vmem:[%s3061_s1 + $0x190] ss:$8 sps:$4 sm:$0xff]   ;;  %v2231_v63 = vld [vmem:[%s3061_s1 + $0x104] ss:$8 sps:$4 sm:$0xff]  }
  0x16   :  { %v2234_v0 = vld [vmem:[%s3061_s1 + $0x184] ss:$8 sps:$4 sm:$0xff]   ;;  %v2229_v1 = vld [vmem:[%s3061_s1 + $0x100] ss:$8 sps:$4 sm:$0xff]   ;;  %v2237_v4 = vld [vmem:[%s3061_s1 + $0x274] ss:$8 sps:$4 sm:$0xff]  }
  0x17   :  { %161 = vmatpush1.bf16.msra.mxu0 %v2173_v23  ;;  %v2232_v3 = vld [vmem:[%s3061_s1 + $0x180] ss:$8 sps:$4 sm:$0xff]   ;;  %v2240_v5 = vld [vmem:[%s3061_s1 + $0x2f4] ss:$8 sps:$4 sm:$0xff]   ;;  %v2235_v7 = vld [vmem:[%s3061_s1 + $0x270] ss:$8 sps:$4 sm:$0xff]  }
  0x18   :  { %282 = vmatpush1.bf16.msra.mxu1 %v2174_v24  ;;  %162 = vmatprep.subr.bf16.mxu0 %v2175_v25  ;;  %v1789_v6 = vld [vmem:[%s3060_s0 + $0x8] sm:$0xf]  ;;  %v1822_v8 = vld [vmem:[%s3060_s0 + $0x10] sm:$0xf]  ;;  %v2243_v10 = vld [vmem:[%s3061_s1 + $0x264] ss:$8 sps:$4 sm:$0xff]  }
  0x19   :  { %283 = vmatprep.subr.bf16.mxu1 %v2177_v26  ;;  %v2238_v9 = vld [vmem:[%s3061_s1 + $0x2f0] ss:$8 sps:$4 sm:$0xff]   ;;  %v2246_v11 = vld [vmem:[%s3061_s1 + $0x2e4] ss:$8 sps:$4 sm:$0xff]   ;;  %v2241_v12 = vld [vmem:[%s3061_s1 + $0x260] ss:$8 sps:$4 sm:$0xff]  }
  0x1a   :  { %v2244_v13 = vld [vmem:[%s3061_s1 + $0x2e0] ss:$8 sps:$4 sm:$0xff]   ;;  %v2249_v14 = vld [vmem:[%s3061_s1 + $0x254] ss:$8 sps:$4 sm:$0xff]   ;;  %v2247_v16 = vld [vmem:[%s3061_s1 + $0x250] ss:$8 sps:$4 sm:$0xff]  }
  0x1b   :  { %163 = vmatpush1.bf16.msra.mxu0 %v2179_v27  ;;  %v2252_v15 = vld [vmem:[%s3061_s1 + $0x2d4] ss:$8 sps:$4 sm:$0xff]   ;;  %v2250_v17 = vld [vmem:[%s3061_s1 + $0x2d0] ss:$8 sps:$4 sm:$0xff]   ;;  %v2255_v18 = vld [vmem:[%s3061_s1 + $0x244] ss:$8 sps:$4 sm:$0xff]  }
  0x1c   :  { %284 = vmatpush1.bf16.msra.mxu1 %v2180_v28  ;;  %164 = vmatprep.subr.bf16.mxu0 %v2181_v29  ;;  %v2258_v19 = vld [vmem:[%s3061_s1 + $0x2c4] ss:$8 sps:$4 sm:$0xff]   ;;  %v2253_v20 = vld [vmem:[%s3061_s1 + $0x240] ss:$8 sps:$4 sm:$0xff]   ;;  %v2261_v22 = vld [vmem:[%s3061_s1 + $0x234] ss:$8 sps:$4 sm:$0xff]  }
  0x1d   :  { %285 = vmatprep.subr.bf16.mxu1 %v2183_v30  ;;  %v2256_v21 = vld [vmem:[%s3061_s1 + $0x2c0] ss:$8 sps:$4 sm:$0xff]   ;;  %v2264_v23 = vld [vmem:[%s3061_s1 + $0x2b4] ss:$8 sps:$4 sm:$0xff]   ;;  %v2259_v24 = vld [vmem:[%s3061_s1 + $0x230] ss:$8 sps:$4 sm:$0xff]  }
  0x1e   :  { %v2262_v25 = vld [vmem:[%s3061_s1 + $0x2b0] ss:$8 sps:$4 sm:$0xff]   ;;  %v2267_v26 = vld [vmem:[%s3061_s1 + $0x224] ss:$8 sps:$4 sm:$0xff]   ;;  %v2265_v28 = vld [vmem:[%s3061_s1 + $0x220] ss:$8 sps:$4 sm:$0xff]  }
  0x1f   :  { %165 = vmatpush1.bf16.msra.mxu0 %v2185_v31  ;;  %v2270_v27 = vld [vmem:[%s3061_s1 + $0x2a4] ss:$8 sps:$4 sm:$0xff]   ;;  %v2268_v29 = vld [vmem:[%s3061_s1 + $0x2a0] ss:$8 sps:$4 sm:$0xff]   ;;  %v2273_v30 = vld [vmem:[%s3061_s1 + $0x214] ss:$8 sps:$4 sm:$0xff]  }
  0x20   :  { %286 = vmatpush1.bf16.msra.mxu1 %v2186_v32  ;;  %411 = vmatprep.subr.bf16.mxu0 %v2189_v33  ;;  %v2276_v31 = vld [vmem:[%s3061_s1 + $0x294] ss:$8 sps:$4 sm:$0xff]   ;;  %v2271_v32 = vld [vmem:[%s3061_s1 + $0x210] ss:$8 sps:$4 sm:$0xff]  }
  0x21   :  { %553 = vmatprep.subr.bf16.mxu1 %v2192_v34  ;;  %v2274_v33 = vld [vmem:[%s3061_s1 + $0x290] ss:$8 sps:$4 sm:$0xff]   ;;  %v2279_v34 = vld [vmem:[%s3061_s1 + $0x204] ss:$8 sps:$4 sm:$0xff]  }
  0x22   :  { %183 = vmatmul.mubr.bf16.vlgmr.msra.gmra.mxu0 %v1740_v35  ;;  %v2282_v35 = vld [vmem:[%s3061_s1 + $0x284] ss:$8 sps:$4 sm:$0xff]  }
  0x23   :  { %304 = vmatmul.mubr.bf16.vlgmr.msra.gmra.mxu1 %v34_v36  ;;  %412 = vmatpush1.bf16.msra.mxu0 %v2187_v37  ;;  %v2277_v36 = vld [vmem:[%s3061_s1 + $0x200] ss:$8 sps:$4 sm:$0xff]  }
  0x24   :  { %554 = vmatpush1.bf16.msra.mxu1 %v2190_v38  ;;  %413 = vmatprep.subr.bf16.mxu0 %v2195_v39  ;;  %v2280_v37 = vld [vmem:[%s3061_s1 + $0x280] ss:$8 sps:$4 sm:$0xff]   ;;  %v2285_v38 = vld [vmem:[%s3061_s1 + $0x374] ss:$8 sps:$4 sm:$0xff]  }
  0x25   :  { %555 = vmatprep.subr.bf16.mxu1 %v2198_v40  ;;  %443 = vmatprep.mubr.bf16.mxu0 %v2409_v2  ;;  %v2288_v39 = vld [vmem:[%s3061_s1 + $0x3f4] ss:$8 sps:$4 sm:$0xff]  }
  0x26   :  { %585 = vmatprep.mubr.bf16.mxu1 %v2409_v2  ;;  %v1855_v40 = vld [vmem:[%s3060_s0 + $0x14] sm:$0xf] }
  0x27   :  { %414 = vmatpush1.bf16.msra.mxu0 %v2193_v41  ;;  %v2283_v41 = vld [vmem:[%s3061_s1 + $0x370] ss:$8 sps:$4 sm:$0xff]  }
  0x28   :  { %556 = vmatpush1.bf16.msra.mxu1 %v2196_v42  ;;  %415 = vmatprep.subr.bf16.mxu0 %v2201_v43  ;;  %v1888_v42 = vld [vmem:[%s3060_s0 + $0x18] sm:$0xf] }
  0x29   :  { %557 = vmatprep.subr.bf16.mxu1 %v2204_v44  ;;  %v2286_v43 = vld [vmem:[%s3061_s1 + $0x3f0] ss:$8 sps:$4 sm:$0xff]   ;;  %v2291_v44 = vld [vmem:[%s3061_s1 + $0x364] ss:$8 sps:$4 sm:$0xff]  }
  0x2b   :  { %416 = vmatpush1.bf16.msra.mxu0 %v2199_v45  ;;  %v2294_v45 = vld [vmem:[%s3061_s1 + $0x3e4] ss:$8 sps:$4 sm:$0xff]  }
  0x2c   :  { %558 = vmatpush1.bf16.msra.mxu1 %v2202_v46  ;;  %417 = vmatprep.subr.bf16.mxu0 %v2207_v47  ;;  %v2289_v46 = vld [vmem:[%s3061_s1 + $0x360] ss:$8 sps:$4 sm:$0xff]  }
  0x2d   :  { %559 = vmatprep.subr.bf16.mxu1 %v2210_v48  ;;  %v2292_v47 = vld [vmem:[%s3061_s1 + $0x3e0] ss:$8 sps:$4 sm:$0xff]   ;;  %v2297_v48 = vld [vmem:[%s3061_s1 + $0x354] ss:$8 sps:$4 sm:$0xff]  }
  0x2f   :  { %418 = vmatpush1.bf16.msra.mxu0 %v2205_v49  ;;  %v2300_v49 = vld [vmem:[%s3061_s1 + $0x3d4] ss:$8 sps:$4 sm:$0xff]  }
  0x30   :  { %560 = vmatpush1.bf16.msra.mxu1 %v2208_v50  ;;  %419 = vmatprep.subr.bf16.mxu0 %v2213_v51  ;;  %v2295_v50 = vld [vmem:[%s3061_s1 + $0x350] ss:$8 sps:$4 sm:$0xff]  }
  0x31   :  { %561 = vmatprep.subr.bf16.mxu1 %v2216_v52  ;;  %v2298_v51 = vld [vmem:[%s3061_s1 + $0x3d0] ss:$8 sps:$4 sm:$0xff]   ;;  %v2303_v52 = vld [vmem:[%s3061_s1 + $0x344] ss:$8 sps:$4 sm:$0xff]  }
  0x33   :  { %420 = vmatpush1.bf16.msra.mxu0 %v2211_v53  ;;  %v2306_v53 = vld [vmem:[%s3061_s1 + $0x3c4] ss:$8 sps:$4 sm:$0xff]  }
  0x34   :  { %562 = vmatpush1.bf16.msra.mxu1 %v2214_v54  ;;  %421 = vmatprep.subr.bf16.mxu0 %v2219_v55  ;;  %v2301_v54 = vld [vmem:[%s3061_s1 + $0x340] ss:$8 sps:$4 sm:$0xff]  }
  0x35   :  { %563 = vmatprep.subr.bf16.mxu1 %v2222_v56  ;;  %v2304_v55 = vld [vmem:[%s3061_s1 + $0x3c0] ss:$8 sps:$4 sm:$0xff]   ;;  %v2309_v56 = vld [vmem:[%s3061_s1 + $0x334] ss:$8 sps:$4 sm:$0xff]  }
  0x37   :  { %422 = vmatpush1.bf16.msra.mxu0 %v2217_v57  ;;  %v2312_v57 = vld [vmem:[%s3061_s1 + $0x3b4] ss:$8 sps:$4 sm:$0xff]  }
  0x38   :  { %564 = vmatpush1.bf16.msra.mxu1 %v2220_v58  ;;  %423 = vmatprep.subr.bf16.mxu0 %v2225_v59  ;;  %v2307_v58 = vld [vmem:[%s3061_s1 + $0x330] ss:$8 sps:$4 sm:$0xff]  }
  0x39   :  { %565 = vmatprep.subr.bf16.mxu1 %v2228_v60  ;;  %v2310_v59 = vld [vmem:[%s3061_s1 + $0x3b0] ss:$8 sps:$4 sm:$0xff]   ;;  %v2315_v60 = vld [vmem:[%s3061_s1 + $0x324] ss:$8 sps:$4 sm:$0xff]  }
  0x3b   :  { %424 = vmatpush1.bf16.msra.mxu0 %v2223_v61  ;;  %v2318_v61 = vld [vmem:[%s3061_s1 + $0x3a4] ss:$8 sps:$4 sm:$0xff]  }
  0x3c   :  { %566 = vmatpush1.bf16.msra.mxu1 %v2226_v62  ;;  %425 = vmatprep.subr.bf16.mxu0 %v2231_v63  ;;  %v2313_v62 = vld [vmem:[%s3061_s1 + $0x320] ss:$8 sps:$4 sm:$0xff]  }
  0x3d   :  { %567 = vmatprep.subr.bf16.mxu1 %v2234_v0  ;;  %v2316_v63 = vld [vmem:[%s3061_s1 + $0x3a0] ss:$8 sps:$4 sm:$0xff]   ;;  %v2321_v0 = vld [vmem:[%s3061_s1 + $0x314] ss:$8 sps:$4 sm:$0xff]  }
  0x3f   :  { %426 = vmatpush1.bf16.msra.mxu0 %v2229_v1  ;;  %v2324_v1 = vld [vmem:[%s3061_s1 + $0x394] ss:$8 sps:$4 sm:$0xff]  }
  0x40   :  { %568 = vmatpush1.bf16.msra.mxu1 %v2232_v3  ;;  %695 = vmatprep.subr.bf16.mxu0 %v2237_v4  ;;  %v2319_v3 = vld [vmem:[%s3061_s1 + $0x310] ss:$8 sps:$4 sm:$0xff]  }
  0x41   :  { %837 = vmatprep.subr.bf16.mxu1 %v2240_v5  ;;  %v2322_v4 = vld [vmem:[%s3061_s1 + $0x390] ss:$8 sps:$4 sm:$0xff]  }
  0x42   :  { %444 = vmatmul.mubr.bf16.vlgmr.msra.gmra.mxu0 %v1789_v6 }
  0x43   :  { %586 = vmatmul.mubr.bf16.vlgmr.msra.gmra.mxu1 %v1822_v8  ;;  %696 = vmatpush1.bf16.msra.mxu0 %v2235_v7 }
  0x44   :  { %838 = vmatpush1.bf16.msra.mxu1 %v2238_v9  ;;  %697 = vmatprep.subr.bf16.mxu0 %v2243_v10 }
  0x45   :  { %839 = vmatprep.subr.bf16.mxu1 %v2246_v11  ;;  %727 = vmatprep.mubr.bf16.mxu0 %v2409_v2 }
  0x46   :  { %869 = vmatprep.mubr.bf16.mxu1 %v2409_v2 }
  0x47   :  { %698 = vmatpush1.bf16.msra.mxu0 %v2241_v12 }
  0x48   :  { %840 = vmatpush1.bf16.msra.mxu1 %v2244_v13  ;;  %699 = vmatprep.subr.bf16.mxu0 %v2249_v14 }
  0x49   :  { %841 = vmatprep.subr.bf16.mxu1 %v2252_v15 }
  0x4b   :  { %700 = vmatpush1.bf16.msra.mxu0 %v2247_v16 }
  0x4c   :  { %842 = vmatpush1.bf16.msra.mxu1 %v2250_v17  ;;  %701 = vmatprep.subr.bf16.mxu0 %v2255_v18 }
  0x4d   :  { %843 = vmatprep.subr.bf16.mxu1 %v2258_v19 }
  0x4f   :  { %702 = vmatpush1.bf16.msra.mxu0 %v2253_v20 }
  0x50   :  { %844 = vmatpush1.bf16.msra.mxu1 %v2256_v21  ;;  %703 = vmatprep.subr.bf16.mxu0 %v2261_v22 }
  0x51   :  { %845 = vmatprep.subr.bf16.mxu1 %v2264_v23 }
  0x53   :  { %704 = vmatpush1.bf16.msra.mxu0 %v2259_v24 }
  0x54   :  { %846 = vmatpush1.bf16.msra.mxu1 %v2262_v25  ;;  %705 = vmatprep.subr.bf16.mxu0 %v2267_v26 }
  0x55   :  { %847 = vmatprep.subr.bf16.mxu1 %v2270_v27 }
  0x57   :  { %706 = vmatpush1.bf16.msra.mxu0 %v2265_v28 }
  0x58   :  { %848 = vmatpush1.bf16.msra.mxu1 %v2268_v29  ;;  %707 = vmatprep.subr.bf16.mxu0 %v2273_v30 }
  0x59   :  { %849 = vmatprep.subr.bf16.mxu1 %v2276_v31 }
  0x5b   :  { %708 = vmatpush1.bf16.msra.mxu0 %v2271_v32 }
  0x5c   :  { %850 = vmatpush1.bf16.msra.mxu1 %v2274_v33  ;;  %709 = vmatprep.subr.bf16.mxu0 %v2279_v34 }
  0x5d   :  { %851 = vmatprep.subr.bf16.mxu1 %v2282_v35 }
  0x5f   :  { %710 = vmatpush1.bf16.msra.mxu0 %v2277_v36 }
  0x60   :  { %852 = vmatpush1.bf16.msra.mxu1 %v2280_v37  ;;  %979 = vmatprep.subr.bf16.mxu0 %v2285_v38 }
  0x61   :  { %1121 = vmatprep.subr.bf16.mxu1 %v2288_v39 }
  0x62   :  { %728 = vmatmul.mubr.bf16.vlgmr.msra.gmra.mxu0 %v1855_v40 }
  0x63   :  { %870 = vmatmul.mubr.bf16.vlgmr.msra.gmra.mxu1 %v1888_v42  ;;  %980 = vmatpush1.bf16.msra.mxu0 %v2283_v41 }
  0x64   :  { %1122 = vmatpush1.bf16.msra.mxu1 %v2286_v43  ;;  %981 = vmatprep.subr.bf16.mxu0 %v2291_v44 }
  0x65   :  { %1123 = vmatprep.subr.bf16.mxu1 %v2294_v45  ;;  %1011 = vmatprep.mubr.bf16.mxu0 %v2409_v2 }
  0x66   :  { %1153 = vmatprep.mubr.bf16.mxu1 %v2409_v2 }
  0x67   :  { %982 = vmatpush1.bf16.msra.mxu0 %v2289_v46 }
  0x68   :  { %1124 = vmatpush1.bf16.msra.mxu1 %v2292_v47  ;;  %983 = vmatprep.subr.bf16.mxu0 %v2297_v48 }
  0x69   :  { %1125 = vmatprep.subr.bf16.mxu1 %v2300_v49 }
  0x6b   :  { %984 = vmatpush1.bf16.msra.mxu0 %v2295_v50 }
  0x6c   :  { %1126 = vmatpush1.bf16.msra.mxu1 %v2298_v51  ;;  %985 = vmatprep.subr.bf16.mxu0 %v2303_v52 }
  0x6d   :  { %1127 = vmatprep.subr.bf16.mxu1 %v2306_v53 }
  0x6f   :  { %986 = vmatpush1.bf16.msra.mxu0 %v2301_v54 }
  0x70   :  { %1128 = vmatpush1.bf16.msra.mxu1 %v2304_v55  ;;  %987 = vmatprep.subr.bf16.mxu0 %v2309_v56 }
  0x71   :  { %1129 = vmatprep.subr.bf16.mxu1 %v2312_v57 }
  0x73   :  { %988 = vmatpush1.bf16.msra.mxu0 %v2307_v58 }
  0x74   :  { %1130 = vmatpush1.bf16.msra.mxu1 %v2310_v59  ;;  %989 = vmatprep.subr.bf16.mxu0 %v2315_v60 }
  0x75   :  { %1131 = vmatprep.subr.bf16.mxu1 %v2318_v61 }
  0x77   :  { %990 = vmatpush1.bf16.msra.mxu0 %v2313_v62 }
  0x78   :  { %1132 = vmatpush1.bf16.msra.mxu1 %v2316_v63 }
  0x79   :  { %14 = vsyncpa [#allocation3], 0  ;;  %991 = vmatprep.subr.bf16.mxu0 %v2321_v0  ;;  %1133 = vmatprep.subr.bf16.mxu1 %v2324_v1  ;;  %v2327_v5 = vld [vmem:[%s3061_s1 + $0x304] ss:$8 sps:$4 sm:$0xff]   ;;  %v2325_v7 = vld [vmem:[%s3061_s1 + $0x300] ss:$8 sps:$4 sm:$0xff]  }
  0x7a   :  { %v2330_v6 = vld [vmem:[%s3061_s1 + $0x384] ss:$8 sps:$4 sm:$0xff]   ;;  %v2328_v8 = vld [vmem:[%s3061_s1 + $0x380] ss:$8 sps:$4 sm:$0xff]   ;;  %v2333_v9 = vld [vmem:[%s3061_s1 + $0x474] ss:$8 sps:$4 sm:$0xff]  }
  0x7b   :  { %992 = vmatpush1.bf16.msra.mxu0 %v2319_v3  ;;  %v1921_v10 = vld [vmem:[%s3060_s0 + $0x20] sm:$0xf]  ;;  %v2331_v11 = vld [vmem:[%s3061_s1 + $0x470] ss:$8 sps:$4 sm:$0xff]   ;;  %v1954_v12 = vld [vmem:[%s3060_s0 + $0x24] sm:$0xf] }
  0x7c   :  { %1134 = vmatpush1.bf16.msra.mxu1 %v2322_v4  ;;  %993 = vmatprep.subr.bf16.mxu0 %v2327_v5  ;;  %v2336_v13 = vld [vmem:[%s3061_s1 + $0x464] ss:$8 sps:$4 sm:$0xff]   ;;  %v2334_v14 = vld [vmem:[%s3061_s1 + $0x460] ss:$8 sps:$4 sm:$0xff]   ;;  %v2339_v15 = vld [vmem:[%s3061_s1 + $0x454] ss:$8 sps:$4 sm:$0xff]  }
  0x7d   :  { %1135 = vmatprep.subr.bf16.mxu1 %v2330_v6  ;;  %v2337_v16 = vld [vmem:[%s3061_s1 + $0x450] ss:$8 sps:$4 sm:$0xff]   ;;  %v2342_v17 = vld [vmem:[%s3061_s1 + $0x444] ss:$8 sps:$4 sm:$0xff]   ;;  %v2345_v18 = vld [vmem:[%s3061_s1 + $0x434] ss:$8 sps:$4 sm:$0xff]  }
  0x7e   :  { %v2343_v19 = vld [vmem:[%s3061_s1 + $0x430] ss:$8 sps:$4 sm:$0xff]   ;;  %v2348_v20 = vld [vmem:[%s3061_s1 + $0x424] ss:$8 sps:$4 sm:$0xff]   ;;  %v2346_v21 = vld [vmem:[%s3061_s1 + $0x420] ss:$8 sps:$4 sm:$0xff]  }
  0x7f   :  { %994 = vmatpush1.bf16.msra.mxu0 %v2325_v7  ;;  %v2351_v22 = vld [vmem:[%s3061_s1 + $0x414] ss:$8 sps:$4 sm:$0xff]   ;;  %v2349_v23 = vld [vmem:[%s3061_s1 + $0x410] ss:$8 sps:$4 sm:$0xff]   ;;  %v2354_v24 = vld [vmem:[%s3061_s1 + $0x404] ss:$8 sps:$4 sm:$0xff]  }
  0x80   :  { %1136 = vmatpush1.bf16.msra.mxu1 %v2328_v8  ;;  %1263 = vmatprep.subr.bf16.mxu0 %v2333_v9  ;;  %v2352_v25 = vld [vmem:[%s3061_s1 + $0x400] ss:$8 sps:$4 sm:$0xff]   ;;  %v2355_v27 = vld [vmem:[%s3063_s3 + $0x78] sm:$0xff]   ;;  %v2357_v29 = vld [vmem:[%s3063_s3 + $0x70] sm:$0xff]   ;;  %v2410_v54 = vmov 0.0   ;;  %vm2411_vm0 = vmmov 0  }
  0x81   :  { %v1987_v26 = vld [vmem:[%s3060_s0 + $0x28] sm:$0xf]  ;;  %v2356_v28 = vld [vmem:[%s3063_s3 + $0x38] sm:$0xff]   ;;  %2055 = vmatprep.subr.bf16.mxu1 %v2355_v27  ;;  %v2358_v30 = vld [vmem:[%s3063_s3 + $0x30] sm:$0xff]   ;;  %s2412_s18 = smov [#allocation2]  }
  0x82   :  { %1012 = vmatmul.mubr.bf16.vlgmr.msra.gmra.mxu0 %v1921_v10  ;;  %v2359_v31 = vld [vmem:[%s3063_s3 + $0x68] sm:$0xff]   ;;  %v2361_v33 = vld [vmem:[%s3063_s3 + $0x60] sm:$0xff]   ;;  %v2363_v35 = vld [vmem:[%s3063_s3 + $0x58] sm:$0xff]   ;;  %s1732_s19 = sshll.u32 %s2412_s18, 4  ;;  %s1733_s19 = int_to_ptr.vmem [resolvable:$true] %s1732_s19 }
  0x83   :  { %1154 = vmatmul.mubr.bf16.vlgmr.msra.gmra.mxu1 %v1954_v12  ;;  %1264 = vmatpush1.bf16.msra.mxu0 %v2331_v11  ;;  %v2360_v32 = vld [vmem:[%s3063_s3 + $0x28] sm:$0xff]   ;;  %v2362_v34 = vld [vmem:[%s3063_s3 + $0x20] sm:$0xff]   ;;  %v2364_v36 = vld [vmem:[%s3063_s3 + $0x18] sm:$0xff]   ;;  %p2392_p1 = scmp.lt.s32.totalorder %s1733_s19, %s1733_s19 }
  0x84   :  { %1295 = vmatprep.mubr.bf16.mxu0 %v2409_v2  ;;  %1265 = vmatprep.subr.bf16.mxu0 %v2336_v13  ;;  %v2340_v2 = vld [vmem:[%s3061_s1 + $0x440] ss:$8 sps:$4 sm:$0xff]   ;;  %v2365_v37 = vld [vmem:[%s3063_s3 + $0x50] sm:$0xff]   ;;  %v2371_v53 = vld [vmem:[%s3065_s5 + $0x38] sm:$0xff]  }
  0x85   :  { %2056 = vmatpush3.bf16.msra.mxu1 %v2356_v28  ;;  %v2366_v38 = vld [vmem:[%s3063_s3 + $0x10] sm:$0xff]   ;;  %v2367_v44 = vld [vmem:[%s3063_s3 + $0x48] sm:$0xff]   ;;  %v2369_v51 = vld [vmem:[%s3063_s3 + $0x40] sm:$0xff]  }
  0x86   :  { %2057 = vmatprep.subr.bf16.mxu1 %v2357_v29  ;;  %v2368_v46 = vld [vmem:[%s3063_s3 + $0x8] sm:$0xff]   ;;  %v2370_v52 = vld [vmem:[%s3063_s3] sm:$0xff]   ;;  %v2372_v55 = vld [vmem:[%s3065_s5 + $0x30] sm:$0xff]  }
  0x87   :  { %1266 = vmatpush1.bf16.msra.mxu0 %v2334_v14  ;;  %v2373_v56 = vld [vmem:[%s3065_s5 + $0x28] sm:$0xff]   ;;  %v2374_v57 = vld [vmem:[%s3065_s5 + $0x20] sm:$0xff]   ;;  %v2375_v58 = vld [vmem:[%s3065_s5 + $0x18] sm:$0xff]  }
  0x88   :  { %1267 = vmatprep.subr.bf16.mxu0 %v2339_v15 }
  0x89   :  { %2058 = vmatpush3.bf16.msra.mxu1 %v2358_v30 }
  0x8a   :  { %2059 = vmatprep.subr.bf16.mxu1 %v2359_v31  ;;  %v1306_v31 = vld [vmem:[%s3062_s2] sm:$0x3] }
  0x8b   :  { %1268 = vmatpush1.bf16.msra.mxu0 %v2337_v16 }
  0x8c   :  { %1269 = vmatprep.subr.bf16.mxu0 %v2342_v17 }
  0x8d   :  { %2060 = vmatpush3.bf16.msra.mxu1 %v2360_v32 }
  0x8e   :  { %2061 = vmatprep.subr.bf16.mxu1 %v2361_v33 }
  0x8f   :  { %1270 = vmatpush1.bf16.msra.mxu0 %v2340_v2 }
  0x90   :  { %1271 = vmatprep.subr.bf16.mxu0 %v2345_v18 }
  0x91   :  { %2062 = vmatpush3.bf16.msra.mxu1 %v2362_v34 }
  0x92   :  { %2063 = vmatprep.subr.bf16.mxu1 %v2363_v35 }
  0x93   :  { %1272 = vmatpush1.bf16.msra.mxu0 %v2343_v19 }
  0x94   :  { %1273 = vmatprep.subr.bf16.mxu0 %v2348_v20 }
  0x95   :  { %2064 = vmatpush3.bf16.msra.mxu1 %v2364_v36 }
  0x96   :  { %2065 = vmatprep.subr.bf16.mxu1 %v2365_v37 }
  0x97   :  { %1274 = vmatpush1.bf16.msra.mxu0 %v2346_v21 }
  0x98   :  { %1275 = vmatprep.subr.bf16.mxu0 %v2351_v22 }
  0x99   :  { %2066 = vmatpush3.bf16.msra.mxu1 %v2366_v38 }
  0x9a   :  { %2067 = vmatprep.subr.bf16.mxu1 %v2367_v44 }
  0x9b   :  { %1276 = vmatpush1.bf16.msra.mxu0 %v2349_v23  ;;  %v1308_v23 = vlaneseq }
  0x9c   :  { %1277 = vmatprep.subr.bf16.mxu0 %v2354_v24 }
  0x9d   :  { %2068 = vmatpush3.bf16.msra.mxu1 %v2368_v46 }
  0x9e   :  { %2069 = vmatprep.subr.bf16.mxu1 %v2369_v51  ;;  %v2377_v51 = vld [vmem:[%s3065_s5 + $0x8] sm:$0xff]  }
  0x9f   :  { %1278 = vmatpush1.bf16.msra.mxu0 %v2352_v25 }
  0xa0   :  { %2095 = vmatprep.subr.bf16.mxu0 %v2410_v54 }
  0xa1   :  { %2070 = vmatpush3.bf16.msra.mxu1 %v2370_v52  ;;  %v2378_v52 = vld [vmem:[%s3065_s5] sm:$0xff]  }
  0xa2   :  { %1296 = vmatmul.mubr.bf16.vlgmr.msra.gmra.mxu0 %v1987_v26  ;;  %2115 = vmatprep.subr.bf16.mxu1 %v2410_v54  ;;  %v1309_v26 = vshrl.u32 %v1308_v23, 7 }
  0xa3   :  { %2096 = vmatpush3.bf16.msra.mxu0 %v2371_v53  ;;  %2111 = vmatprep.mubr.msk.bf16.mxu0 %vm2411_vm0, %v2410_v54  ;;  %v2379_v53 = vld [vmem:[%s3067_s7 + $0x38] sm:$0xff]  }
  0xa4   :  { %2097 = vmatprep.subr.bf16.mxu0 %v2410_v54  ;;  %v1310_v30 = vsub.s32 0, %v1309_v26  ;;  %v1314_v33 = vsub.s32 1, %v1309_v26 }
  0xa6   :  { %v1311_v35 = vrot.slane %v1306_v31, %v1310_v30 }
  0xa7   :  { %2098 = vmatpush3.bf16.msra.mxu0 %v2372_v55  ;;  %v2380_v55 = vld [vmem:[%s3067_s7 + $0x30] sm:$0xff]  }
  0xa8   :  { %2099 = vmatprep.subr.bf16.mxu0 %v2410_v54 }
  0xab   :  { %2100 = vmatpush3.bf16.msra.mxu0 %v2373_v56  ;;  %v2381_v56 = vld [vmem:[%s3067_s7 + $0x28] sm:$0xff]  }
  0xac   :  { %2101 = vmatprep.subr.bf16.mxu0 %v2410_v54 }
  0xaf   :  { %2102 = vmatpush3.bf16.msra.mxu0 %v2374_v57  ;;  %v2382_v57 = vld [vmem:[%s3067_s7 + $0x20] sm:$0xff]  }
  0xb0   :  { %2103 = vmatprep.subr.bf16.mxu0 %v2410_v54 }
  0xb3   :  { %2104 = vmatpush3.bf16.msra.mxu0 %v2375_v58  ;;  %v2383_v58 = vld [vmem:[%s3067_s7 + $0x18] sm:$0xff]  }
  0xb4   :  { %2105 = vmatprep.subr.bf16.mxu0 %v2410_v54 }
  0xe2   :  { %v184_v39 = vpop.f32.mrf.mxu0 }
  0xe3   :  { %v305_v40 = vpop.f32.mrf.mxu1 }
  0xe4   :  { %v306_v41 = vadd.f32 %v305_v40, %v184_v39  ;;  %v186_v42 = vpop.f32.mrf.mxu0  ;;  %v1315_v39 = vrot.slane %v1306_v31, %v1314_v33 }
  0xe5   :  { %v307_v43 = vpop.f32.mrf.mxu1 }
  0xe6   :  { %v308_v45 = vadd.f32 %v307_v43, %v186_v42  ;;  %v188_v47 = vpop.f32.mrf.mxu0 }
  0xe7   :  { %v309_v48 = vpop.f32.mrf.mxu1 }
  0xe8   :  { %v189_v49 = vpop.f32.mrf.mxu0 }
  0xe9   :  { %v310_v50 = vpop.f32.mrf.mxu1 }
  0xea   :  { %v2376_v50 = vld [vmem:[%s3065_s5 + $0x10] sm:$0xff]  }
  0xeb   :  { %2106 = vmatpush3.bf16.msra.mxu0 %v2376_v50 }
  0xec   :  { %2107 = vmatprep.subr.bf16.mxu0 %v2410_v54 }
  0xef   :  { %2108 = vmatpush3.bf16.msra.mxu0 %v2377_v51 }
  0xf0   :  { %2109 = vmatprep.subr.bf16.mxu0 %v2410_v54 }
  0xf3   :  { %2110 = vmatpush3.bf16.msra.mxu0 %v2378_v52 }
 0x102   :  { %v445_v59 = vpop.f32.mrf.mxu0 }
 0x103   :  { %v587_v60 = vpop.f32.mrf.mxu1  ;;  %v452_v61 = vadd.f32 %v445_v59, %v306_v41  ;;  %v2384_v59 = vld [vmem:[%s3067_s7 + $0x10] sm:$0xff]  }
 0x104   :  { %v447_v62 = vpop.f32.mrf.mxu0 }
 0x105   :  { %v589_v63 = vpop.f32.mrf.mxu1  ;;  %v453_v0 = vadd.f32 %v447_v62, %v308_v45  ;;  %v594_v1 = vadd.f32 %v587_v60, %v452_v61  ;;  %v2020_v61 = vld [vmem:[%s3064_s4] ss:$0 sm:$0xff] }
 0x106   :  { %v449_v3 = vpop.f32.mrf.mxu0 }
 0x107   :  { %v591_v4 = vpop.f32.mrf.mxu1  ;;  %v595_v5 = vadd.f32 %v589_v63, %v453_v0 }
 0x108   :  { %v450_v6 = vpop.f32.mrf.mxu0 }
 0x109   :  { %v592_v7 = vpop.f32.mrf.mxu1  ;;  %v2385_v6 = vld [vmem:[%s3067_s7 + $0x8] sm:$0xff]  }
 0x10a   :  { %v2386_v7 = vld [vmem:[%s3067_s7] sm:$0xff]  }
 0x122   :  { %v729_v8 = vpop.f32.mrf.mxu0 }
 0x123   :  { %v871_v9 = vpop.f32.mrf.mxu1  ;;  %v736_v24 = vadd.f32 %v729_v8, %v594_v1  ;;  %v2037_v8 = vld [vmem:[%s3066_s6] ss:$0 sm:$0xff]  ;;  %s2387_s6 = scalar_lea.vmem %s1733_s19, 128 }
 0x124   :  { %v731_v10 = vpop.f32.mrf.mxu0  ;;  %p2388_p0 = scmp.ne.s32.totalorder %s1733_s19, %s2387_s6  ;;  %p2393_p2 = scmp.lt.s32.totalorder %s2387_s6, %s2387_s6 }
 0x125   :  { %v873_v11 = vpop.f32.mrf.mxu1  ;;  %v737_v25 = vadd.f32 %v731_v10, %v595_v5  ;;  %v878_v27 = vadd.f32 %v871_v9, %v736_v24 }
 0x126   :  { %v733_v12 = vpop.f32.mrf.mxu0  ;;  %p2394_p3 = por %p2393_p2, %p2392_p1 }
 0x127   :  { %v875_v13 = vpop.f32.mrf.mxu1  ;;  %v879_v28 = vadd.f32 %v873_v11, %v737_v25 }
 0x128   :  { %v734_v14 = vpop.f32.mrf.mxu0  ;;  %p2395_p4 = pnand %p2394_p3, %p2388_p0 }
 0x129   :  { %v876_v15 = vpop.f32.mrf.mxu1 }
 0x142   :  { %v1013_v16 = vpop.f32.mrf.mxu0 }
 0x143   :  { %v1155_v17 = vpop.f32.mrf.mxu1  ;;  %v1020_v29 = vadd.f32 %v1013_v16, %v878_v27 }
 0x144   :  { %v1015_v2 = vpop.f32.mrf.mxu0 }
 0x145   :  { %v1157_v18 = vpop.f32.mrf.mxu1  ;;  %v1021_v32 = vadd.f32 %v1015_v2, %v879_v28  ;;  %v1162_v34 = vadd.f32 %v1155_v17, %v1020_v29 }
 0x146   :  { %v1017_v19 = vpop.f32.mrf.mxu0 }
 0x147   :  { %v1159_v20 = vpop.f32.mrf.mxu1  ;;  %v1163_v37 = vadd.f32 %v1157_v18, %v1021_v32 }
 0x148   :  { %v1018_v21 = vpop.f32.mrf.mxu0 }
 0x149   :  { %v1160_v22 = vpop.f32.mrf.mxu1 }
 0x162   :  { %v1297_v36 = vpop.f32.mrf.mxu0 }
 0x163   :  { %v1304_v38 = vadd.f32 %v1297_v36, %v1162_v34 }
 0x164   :  { %v1299_v40 = vpop.f32.mrf.mxu0 }
 0x165   :  { %v1318_v41 = vadd.f32 %v1311_v35, %v1304_v38  ;;  %v1305_v42 = vadd.f32 %v1299_v40, %v1163_v37 }
 0x166   :  { %v1301_v43 = vpop.f32.mrf.mxu0 }
 0x167   :  { %v1319_v44 = vadd.f32 %v1315_v39, %v1305_v42  ;;  %v1320_v45 = vmax.f32 %v1318_v41, 0.0 }
 0x168   :  { %v1302_v46 = vpop.f32.mrf.mxu0 }
 0x169   :  { %v1321_v47 = vmax.f32 %v1319_v44, 0.0  ;;  %v1322_v49 = vpack.c.bf16 %v1320_v45, %v1320_v45 }
 0x16b   :  { %v1323_v48 = vpack.c.bf16 %v1321_v47, %v1321_v47 }
 0x16d   :  { %1491 = vmatprep.mubr.bf16.mxu1 %v1323_v48 }
 0x16e   :  { %1492 = vmatmul.mubr.bf16.vlgmr.msra.gmra.mxu1 %v1322_v49 }
 0x16f   :  { %2131 = vmatprep.mubr.msk.bf16.mxu1 %vm2411_vm0, %v2410_v54  ;;  %2116 = vmatpush3.bf16.msra.mxu1 %v2379_v53 }
 0x170   :  { %2117 = vmatprep.subr.bf16.mxu1 %v2410_v54 }
 0x173   :  { %2118 = vmatpush3.bf16.msra.mxu1 %v2380_v55 }
 0x174   :  { %2119 = vmatprep.subr.bf16.mxu1 %v2410_v54 }
 0x177   :  { %2120 = vmatpush3.bf16.msra.mxu1 %v2381_v56 }
 0x178   :  { %2121 = vmatprep.subr.bf16.mxu1 %v2410_v54 }
 0x17b   :  { %2122 = vmatpush3.bf16.msra.mxu1 %v2382_v57 }
 0x17c   :  { %2123 = vmatprep.subr.bf16.mxu1 %v2410_v54 }
 0x17f   :  { %2124 = vmatpush3.bf16.msra.mxu1 %v2383_v58 }
 0x180   :  { %2125 = vmatprep.subr.bf16.mxu1 %v2410_v54 }
 0x183   :  { %2126 = vmatpush3.bf16.msra.mxu1 %v2384_v59 }
 0x184   :  { %2127 = vmatprep.subr.bf16.mxu1 %v2410_v54 }
 0x187   :  { %2128 = vmatpush3.bf16.msra.mxu1 %v2385_v6 }
 0x188   :  { %2129 = vmatprep.subr.bf16.mxu1 %v2410_v54  ;;  %v2046_v54 = vld [vmem:[%s3068_s8] ss:$0 sm:$0xff] }
 0x18b   :  { %2130 = vmatpush3.bf16.msra.mxu1 %v2386_v7 }
 0x22e   :  { %v2071_v60 = vpop.f32.mrf.mxu1 }
 0x230   :  { %v2072_v62 = vpop.f32.mrf.mxu1 }
 0x231   :  { %v2073_v63 = vadd.f32 %v2072_v62, %v2071_v60 }
 0x232   :  { %v2074_v0 = vpop.f32.mrf.mxu1 }
 0x233   :  { %v1494_v1 = vadd.f32 %v2073_v63, %v2020_v61 }
 0x234   :  { %v2075_v3 = vpop.f32.mrf.mxu1 }
 0x235   :  { %v1499_v4 = vmax.f32 %v1494_v1, 0.0 }
 0x237   :  { %v1500_v5 = vpack.c.bf16 %v1499_v4, %v1499_v4 }
 0x239   :  { %2112 = vmatmul.mubr.bf16.vlgmr.msra.gmra.mxu0 %v1500_v5 }
 0x2f9   :  { %v1606_v9 = vpop.f32.mrf.mxu0 }
 0x2fa   :  { %v1607_v10 = vadd.f32 %v2037_v8, %v1606_v9 }
 0x2fb   :  { %v2113_v11 = vpop.f32.mrf.mxu0 }
 0x2fc   :  { %v1612_v12 = vmax.f32 %v1607_v10, 0.0 }
 0x2fd   :  { %v1609_v13 = vpop.f32.mrf.mxu0 }
 0x2fe   :  { %v1613_v14 = vpack.c.bf16 %v1612_v12, %v1612_v12 }
 0x2ff   :  { %v2114_v15 = vpop.f32.mrf.mxu0 }
 0x300   :  { %2132 = vmatmul.mubr.bf16.vlgmr.msra.gmra.mxu1 %v1613_v14 }
 0x3c0   :  { %v1719_v16 = vpop.f32.mrf.mxu1 }
 0x3c1   :  { %v1720_v17 = vadd.f32 %v2046_v54, %v1719_v16 }
 0x3c2   :  { %v2133_v2 = vpop.f32.mrf.mxu1 }
 0x3c3   :  { %1725 = vst [vmem:[#allocation2] sm:$0xff] %v1720_v17 }
 0x3c4   :  { %v1722_v18 = vpop.f32.mrf.mxu1 }
 0x3c5   :  { %2398 = shalt.err (!%p2395_p4)
}
 0x3c6   :  { %1735 = dma.vmem_to_hbm [thread:$0]  %s1733_s19, 128, %s3069_s9, [#allocation3]   ;;  %v2134_v19 = vpop.f32.mrf.mxu1 }
 0x3c7   :  { %2407 = dma.done.wait [#allocation3], 128  }
 0x3c8   :  { %2408 = vsyncadd [#allocation3], 4294967168 }
 0x3c9   :  { %1739 = vsyncpa [#allocation3], 1 }

</bundles_post_ra>
